<compile_context>
chip_gen: v7x
topology: tpu7x:2x2x1
jax: 0.10.0
libtpu: 0.0.40
codegen_flags: <defaults>
</compile_context>

<pallas_src>
import functools

import jax
import jax.numpy as jnp
import numpy as np
from jax import lax
from jax.experimental import pallas as pl
from jax.experimental.pallas import tpu as pltpu


# --------------------------------- helpers ---------------------------------- #
def _round_up(x, m):
    return ((x + m - 1) // m) * m


def _vmem_limit_bytes():
    """Raise the scoped-VMEM limit (defaults 16/32 MiB) but stay well under the
    physical capacity (64 MiB on v7x, 128 MiB on v5e/v6e)."""
    try:
        cap = pltpu.get_tpu_info().vmem_capacity_bytes
        return int(min(cap * 3 // 4, 96 * 1024 * 1024))
    except Exception:
        return None


def _compiler_params(dims):
    kwargs = dict(dimension_semantics=dims)
    lim = _vmem_limit_bytes()
    if lim is not None:
        kwargs["vmem_limit_bytes"] = lim
    return pltpu.CompilerParams(**kwargs)


def _spec(shape, index_map, bufs=None):
    """BlockSpec, optionally with deeper multi-buffering for long streamed grids."""
    if bufs is not None and bufs > 2:
        try:
            return pl.BlockSpec(shape, index_map, pipeline_mode=pl.Buffered(bufs))
        except Exception:  # older jax: no pipeline_mode kwarg
            pass
    return pl.BlockSpec(shape, index_map)


def _choose_tm(M):
    # >=2 grid steps so both v7x TensorCores get work; cap rows at 512
    # (v5e/v6e roofline sweet spot, VMEM-safe on v7x for wide K).
    return max(8, min(512, _round_up(pl.cdiv(M, 2), 8)))


# ------------------------------ Pallas kernels ------------------------------ #
def _conv_relu_kernel(x_ref, w_ref, b_ref, o_ref):
    """One M-tile of: im2col @ W + b -> ReLU (head conv)."""
    acc = jnp.dot(x_ref[...], w_ref[...], preferred_element_type=jnp.float32)
    o_ref[...] = jnp.maximum(acc + b_ref[...], 0.0)


def _tail_kernel(*refs, stride, n_res_block, Hp, Wp):
    """Fused encoder tail for one image (one grid step).

      stride==4:  y = ReLU(x0 @ W2 + b2)         (conv2, premade im2col rows)
                  x = conv3x3(y)                 (in-kernel tap accumulation)
      stride==2:  x = conv3x3(x0)                (x0 = padded conv1 output)
      then per ResBlock:
                  x = x + (ReLU(conv3x3(ReLU(x))) @ W1x1 + b)
      finally:    out = ReLU(x)

    Activations live on the zero-guarded "padded grid" of Hp*Wp rows; each 3x3
    conv reads statically row-shifted slices of a VMEM scratch, so nothing
    round-trips HBM between stages and no im2col is built for them.
    """
    Mp = Hp * Wp
    g = Wp + 1                       # outer guard rows on each end of scratch
    nin = 2 + (4 if stride == 4 else 2) + 4 * n_res_block
    x0_ref, mask_ref = refs[0], refs[1]
    o_ref, xs = refs[nin], refs[nin + 1]

    mask = mask_ref[...]             # (Mp, 1): 1 on real pixels, 0 on the ring
    xs[...] = jnp.zeros_like(xs)     # zero guards (interior overwritten below)

    def set_xs(v):                   # store current (masked) activation
        xs[pl.ds(g, Mp), :] = v

    def conv3x3(w_ref, b_ref, relu_in):
        acc = None
        t = 0
        for kh in range(3):
            for kw in range(3):
                d = (kh - 1) * Wp + (kw - 1)      # static row shift of this tap
                xt = xs[pl.ds(g + d, Mp), :]
                if relu_in:
                    xt = jnp.maximum(xt, 0.0)
                c = jnp.dot(xt, w_ref[t], preferred_element_type=jnp.float32)
                acc = c if acc is None else acc + c
                t += 1
        return acc + b_ref[...]

    widx = 2
    if stride == 4:
        w2_ref, b2_ref, w3_ref, b3_ref = refs[widx:widx + 4]
        widx += 4
        y = jnp.dot(x0_ref[...], w2_ref[...], preferred_element_type=jnp.float32)
        y = jnp.maximum(y + b2_ref[...], 0.0) * mask        # conv2 + ReLU
        set_xs(y)
        x = conv3x3(w3_ref, b3_ref, relu_in=False) * mask   # conv3
    else:  # stride == 2
        w2_ref, b2_ref = refs[widx:widx + 2]
        widx += 2
        set_xs(x0_ref[...])                                 # conv1 out (post-ReLU)
        x = conv3x3(w2_ref, b2_ref, relu_in=False) * mask   # conv2

    for _ in range(n_res_block):
        w1_ref, b1_ref, wo_ref, bo_ref = refs[widx:widx + 4]
        widx += 4
        set_xs(x)
        h = jnp.maximum(conv3x3(w1_ref, b1_ref, relu_in=True), 0.0)
        out = jnp.dot(h, wo_ref[...], preferred_element_type=jnp.float32)
        x = (x + out + bo_ref[...]) * mask                  # residual add

    o_ref[...] = jnp.maximum(x, 0.0)                        # final encoder ReLU


# ---------------------------- pallas_call wrappers --------------------------- #
def _conv_relu_call(x2d, w2d, b2d):
    M, K = x2d.shape
    Cout = w2d.shape[1]
    TM = _choose_tm(M)
    steps = pl.cdiv(M, TM)
    cost = pl.CostEstimate(flops=2 * M * K * Cout, transcendentals=0,
                           bytes_accessed=4 * (M * K + K * Cout + M * Cout))
    return pl.pallas_call(
        _conv_relu_kernel,
        out_shape=jax.ShapeDtypeStruct((M, Cout), jnp.float32),
        grid=(steps,),
        in_specs=[
            _spec((TM, K), lambda i: (i, 0), bufs=3 if steps >= 3 else None),
            pl.BlockSpec((K, Cout), lambda i: (0, 0)),      # resident weights
            pl.BlockSpec((1, Cout), lambda i: (0, 0)),      # resident bias
        ],
        out_specs=pl.BlockSpec((TM, Cout), lambda i: (i, 0)),
        compiler_params=_compiler_params(("parallel",)),
        cost_estimate=cost,
    )(x2d, w2d, b2d)


def _tail_call(x0, mask, wlist, *, stride, n_res_block, Hp, Wp, C):
    N, Mp, K0 = x0.shape
    g = Wp + 1

    in_specs = [
        _spec((None, Mp, K0), lambda i: (i, 0, 0), bufs=3 if N >= 3 else None),
        pl.BlockSpec((None, Mp, 1), lambda i: (0, 0, 0)),   # shared guard mask
    ]
    for w in wlist:                                         # resident weights
        in_specs.append(pl.BlockSpec(w.shape, lambda i, nd=w.ndim: (0,) * nd))

    if stride == 4:
        flops = 2 * N * Mp * (K0 * C + 9 * C * C)
    else:
        flops = 2 * N * Mp * 9 * K0 * C
    base = 4 if stride == 4 else 2
    for i in range(n_res_block):
        cr = wlist[base + 4 * i].shape[-1]
        flops += 2 * N * Mp * (9 * C * cr + cr * C)
    bytes_accessed = 4 * (int(x0.size) + int(mask.size)
                          + sum(int(w.size) for w in wlist) + N * Mp * C)

    kern = functools.partial(_tail_kernel, stride=stride,
                             n_res_block=n_res_block, Hp=Hp, Wp=Wp)
    return pl.pallas_call(
        kern,
        out_shape=jax.ShapeDtypeStruct((N, Mp, C), jnp.float32),
        grid=(N,),
        in_specs=in_specs,
        out_specs=pl.BlockSpec((None, Mp, C), lambda i: (i, 0, 0)),
        scratch_shapes=[pltpu.VMEM((Mp + 2 * g, C), jnp.float32)],
        compiler_params=_compiler_params(("parallel",)),
        cost_estimate=pl.CostEstimate(flops=int(flops), transcendentals=0,
                                      bytes_accessed=int(bytes_accessed)),
    )(x0, mask, *wlist)


# ------------------------------ wrapper helpers ------------------------------ #
def _im2col_tapmajor(x, KH, KW, stride, padding):
    """NHWC -> (N, OH, OW, KH*KW*C) patches, tap-major (kh, kw, c) ordering.
    Built with concatenate so the (replicated) patches tensor is never
    transposed; the matching permutation is applied to the tiny weights."""
    N, H, W, C = x.shape
    OH = (H + 2 * padding - KH) // stride + 1
    OW = (W + 2 * padding - KW) // stride + 1
    xp = jnp.pad(x, ((0, 0), (padding, padding), (padding, padding), (0, 0)))
    cols = [xp[:, kh:kh + stride * OH:stride, kw:kw + stride * OW:stride, :]
            for kh in range(KH) for kw in range(KW)]
    return jnp.concatenate(cols, axis=-1), OH, OW


def _w_tapmajor_2d(w):
    """PyTorch (Cout, Cin, KH, KW) -> (KH*KW*Cin, Cout), (kh, kw, cin)-major."""
    cout, cin, KH, KW = w.shape
    return jnp.transpose(w, (2, 3, 1, 0)).reshape(KH * KW * cin, cout)


def _w_tap3d(w):
    """PyTorch (Cout, Cin, 3, 3) -> (9, Cin, Cout) for in-kernel tap accumulation."""
    cout, cin, KH, KW = w.shape
    return jnp.transpose(w, (2, 3, 1, 0)).reshape(KH * KW, cin, cout)


# ------------------------------ Encoder params ------------------------------- #
def init_encoder_params(key, in_channel, channel, n_res_block,
                        n_res_channel, stride):
    def _conv_init(k, cout, cin, kh, kw):
        kw_key, kb_key = jax.random.split(k)
        fan_in = cin * kh * kw
        wgt = jax.random.normal(kw_key, (cout, cin, kh, kw), jnp.float32)
        wgt = wgt / np.sqrt(fan_in)
        bia = 0.01 * jax.random.normal(kb_key, (cout,), jnp.float32)
        return wgt, bia

    params = {}
    keys = jax.random.split(key, 3 + 2 * n_res_block)
    if stride == 4:
        params["c1"] = _conv_init(keys[0], channel // 2, in_channel, 4, 4)
        params["c2"] = _conv_init(keys[1], channel, channel // 2, 4, 4)
        params["c3"] = _conv_init(keys[2], channel, channel, 3, 3)
    elif stride == 2:
        params["c1"] = _conv_init(keys[0], channel // 2, in_channel, 4, 4)
        params["c2"] = _conv_init(keys[1], channel, channel // 2, 3, 3)
    for i in range(n_res_block):
        params[f"rb{i}_1"] = _conv_init(keys[3 + 2 * i],
                                        n_res_channel, channel, 3, 3)
        params[f"rb{i}_2"] = _conv_init(keys[3 + 2 * i + 1],
                                        channel, n_res_channel, 1, 1)
    return params


# ------------------------------ Encoder (Pallas) ----------------------------- #
def encoder_pallas(x_nchw, params, n_res_block, stride):
    if stride not in (2, 4):
        raise ValueError(f"unsupported stride {stride}")
    x = jnp.transpose(x_nchw, (0, 2, 3, 1)).astype(jnp.float32)   # NHWC
    N = x.shape[0]

    # -- head conv: 4x4 / stride 2 / pad 1 + ReLU (one pallas_call) --
    w1, b1 = params["c1"]
    C1 = w1.shape[0]
    p1, OH1, OW1 = _im2col_tapmajor(x, 4, 4, 2, 1)
    y1 = _conv_relu_call(p1.reshape(N * OH1 * OW1, -1), _w_tapmajor_2d(w1),
                         b1.reshape(1, -1))
    y1 = y1.reshape(N, OH1, OW1, C1)

    # -- fused tail: remaining conv(s) + all ResBlocks + final ReLU --
    if stride == 4:
        w2, b2 = params["c2"]
        w3, b3 = params["c3"]
        C = w2.shape[0]
        p2, OH, OW = _im2col_tapmajor(y1, 4, 4, 2, 1)       # conv2 patches (s2)
        Hp, Wp = OH + 2, OW + 2
        x0 = jnp.pad(p2, ((0, 0), (1, 1), (1, 1), (0, 0))).reshape(N, Hp * Wp, -1)
        wlist = [_w_tapmajor_2d(w2), b2.reshape(1, -1),
                 _w_tap3d(w3), b3.reshape(1, -1)]
    else:                                                    # stride == 2
        w2, b2 = params["c2"]
        C = w2.shape[0]
        OH, OW = OH1, OW1
        Hp, Wp = OH + 2, OW + 2
        y1p = jnp.pad(y1, ((0, 0), (1, 1), (1, 1), (0, 0)))
        if C1 < C:                 # single scratch channel width in the kernel
            y1p = jnp.pad(y1p, ((0, 0), (0, 0), (0, 0), (0, C - C1)))
            w2 = jnp.pad(w2, ((0, 0), (0, C - C1), (0, 0), (0, 0)))
        x0 = y1p.reshape(N, Hp * Wp, C)
        wlist = [_w_tap3d(w2), b2.reshape(1, -1)]

    for i in range(n_res_block):
        wa, ba = params[f"rb{i}_1"]
        wb, bb = params[f"rb{i}_2"]
        wlist += [_w_tap3d(wa), ba.reshape(1, -1),
                  wb.reshape(wb.shape[0], wb.shape[1]).T,    # 1x1: (Cin, Cout)
                  bb.reshape(1, -1)]

    mask_np = np.zeros((Hp, Wp), np.float32)
    mask_np[1:OH + 1, 1:OW + 1] = 1.0
    mask = jnp.asarray(mask_np).reshape(1, Hp * Wp, 1)

    yt = _tail_call(x0, mask, wlist, stride=stride, n_res_block=n_res_block,
                    Hp=Hp, Wp=Wp, C=C)
    y = yt.reshape(N, Hp, Wp, C)[:, 1:OH + 1, 1:OW + 1, :]
    return jnp.transpose(y, (0, 3, 1, 2))                    # back to NCHW


# --------------------------- Reference (pure JAX) ---------------------------- #
def _conv_ref(x, w, b, stride, padding):
    y = lax.conv_general_dilated(
        x, jnp.transpose(w, (2, 3, 1, 0)),
        window_strides=(stride, stride),
        padding=[(padding, padding), (padding, padding)],
        dimension_numbers=("NHWC", "HWIO", "NHWC"))
    return y + b.reshape(1, 1, 1, -1)


def encoder_ref(x_nchw, params, n_res_block, stride):
    x = jnp.transpose(x_nchw, (0, 2, 3, 1)).astype(jnp.float32)
    if stride == 4:
        x = jax.nn.relu(_conv_ref(x, *params["c1"], 2, 1))
        x = jax.nn.relu(_conv_ref(x, *params["c2"], 2, 1))
        x = _conv_ref(x, *params["c3"], 1, 1)
    elif stride == 2:
        x = jax.nn.relu(_conv_ref(x, *params["c1"], 2, 1))
        x = _conv_ref(x, *params["c2"], 1, 1)
    for i in range(n_res_block):
        h = jax.nn.relu(_conv_ref(jax.nn.relu(x), *params[f"rb{i}_1"], 1, 1))
        x = x + _conv_ref(h, *params[f"rb{i}_2"], 1, 0)
    x = jax.nn.relu(x)
    return jnp.transpose(x, (0, 3, 1, 2))


# ---------------------------------- main ------------------------------------- #
if __name__ == "__main__":
    in_channel, channel = 3, 32
    n_res_block, n_res_channel, stride = 2, 8, 4
    batch, spatial = 2, 16

    key = jax.random.PRNGKey(0)
    k_x, k_p = jax.random.split(key)
    x = jax.random.normal(k_x, (batch, in_channel, spatial, spatial),
                          jnp.float32)
    params = init_encoder_params(k_p, in_channel, channel, n_res_block,
                                 n_res_channel, stride)

    enc = jax.jit(functools.partial(encoder_pallas,
                                    n_res_block=n_res_block, stride=stride))
    out = jax.block_until_ready(enc(x, params))

    ref = jax.block_until_ready(encoder_ref(x, params, n_res_block, stride))
    assert out.shape == (batch, channel, spatial // 4, spatial // 4), out.shape
    np.testing.assert_allclose(np.asarray(out), np.asarray(ref),
                               rtol=1e-3, atol=1e-3)
    print("KERNEL_OK")
</pallas_src>

<mosaic_0001>
module attributes {stable_mosaic.version = 11 : i64} {
  func.func @_conv_relu_kernel(%arg0: i32, %arg1: memref<64x48xf32, #tpu.memory_space<vmem>>, %arg2: memref<48x16xf32, #tpu.memory_space<vmem>>, %arg3: memref<1x16xf32, #tpu.memory_space<vmem>>, %arg4: memref<64x16xf32, #tpu.memory_space<vmem>>) attributes {dimension_semantics = [#tpu.dimension_semantics<parallel>], iteration_bounds = array<i64: 2>, scalar_prefetch = 0 : i64, scratch_operands = 0 : i64, tpu.core_type = #tpu.core_type<tc>, window_params = [{transform_indices = @transform_0, window_bounds = array<i64: 64, 48>}, {pipeline_mode = #tpu.pipeline_mode<synchronous>, transform_indices = @transform_1, window_bounds = array<i64: 48, 16>}, {pipeline_mode = #tpu.pipeline_mode<synchronous>, transform_indices = @transform_2, window_bounds = array<i64: 1, 16>}, {transform_indices = @transform_3, window_bounds = array<i64: 64, 16>}]} {
    %c0 = arith.constant 0 : index
    %c0_0 = arith.constant 0 : index
    %0 = vector.load %arg1[%c0, %c0_0] : memref<64x48xf32, #tpu.memory_space<vmem>>, vector<64x48xf32>
    %c0_1 = arith.constant 0 : index
    %c0_2 = arith.constant 0 : index
    %1 = vector.load %arg2[%c0_1, %c0_2] : memref<48x16xf32, #tpu.memory_space<vmem>>, vector<48x16xf32>
    %cst = arith.constant dense<0.000000e+00> : vector<64x16xf32>
    %2 = tpu.matmul %0, %1, %cst {dimension_numbers = #tpu.dot_dimension_numbers<[1], [0], [0], [1], [0, 0, 1, 1], [], []>} : vector<64x48xf32>, vector<48x16xf32>, vector<64x16xf32> -> vector<64x16xf32>
    %c0_3 = arith.constant 0 : index
    %c0_4 = arith.constant 0 : index
    %3 = vector.load %arg3[%c0_3, %c0_4] : memref<1x16xf32, #tpu.memory_space<vmem>>, vector<1x16xf32>
    %4 = vector.broadcast %3 : vector<1x16xf32> to vector<64x16xf32>
    %5 = arith.addf %2, %4 : vector<64x16xf32>
    %cst_5 = arith.constant 0.000000e+00 : f32
    %6 = vector.broadcast %cst_5 : f32 to vector<64x16xf32>
    %7 = arith.maximumf %5, %6 : vector<64x16xf32>
    %c0_6 = arith.constant 0 : index
    %c0_7 = arith.constant 0 : index
    %8 = vector.load %arg4[%c0_6, %c0_7] : memref<64x16xf32, #tpu.memory_space<vmem>>, vector<64x16xf32>
    tpu.vector_store %arg4[%c0_6, %c0_7], %7 {strides = array<i32>} : memref<64x16xf32, #tpu.memory_space<vmem>>, vector<64x16xf32>,
    return
  }
  func.func @transform_0(%arg0: i32) -> (i32, i32) {
    %c0_i32 = arith.constant 0 : i32
    %c0_i32_0 = arith.constant 0 : i32
    return %arg0, %c0_i32 : i32, i32
  }
  func.func @transform_1(%arg0: i32) -> (i32, i32) {
    %c0_i32 = arith.constant 0 : i32
    %c0_i32_0 = arith.constant 0 : i32
    %c0_i32_1 = arith.constant 0 : i32
    return %c0_i32, %c0_i32_0 : i32, i32
  }
  func.func @transform_2(%arg0: i32) -> (i32, i32) {
    %c0_i32 = arith.constant 0 : i32
    %c0_i32_0 = arith.constant 0 : i32
    %c0_i32_1 = arith.constant 0 : i32
    return %c0_i32, %c0_i32_0 : i32, i32
  }
  func.func @transform_3(%arg0: i32) -> (i32, i32) {
    %c0_i32 = arith.constant 0 : i32
    %c0_i32_0 = arith.constant 0 : i32
    return %arg0, %c0_i32 : i32, i32
  }
}

module attributes {stable_mosaic.version = 11 : i64} {
  func.func @_tail_kernel(%arg0: i32, %arg1: memref<1x36x256xf32, #tpu.memory_space<vmem>>, %arg2: memref<1x36x1xf32, #tpu.memory_space<vmem>>, %arg3: memref<256x32xf32, #tpu.memory_space<vmem>>, %arg4: memref<1x32xf32, #tpu.memory_space<vmem>>, %arg5: memref<9x32x32xf32, #tpu.memory_space<vmem>>, %arg6: memref<1x32xf32, #tpu.memory_space<vmem>>, %arg7: memref<9x32x8xf32, #tpu.memory_space<vmem>>, %arg8: memref<1x8xf32, #tpu.memory_space<vmem>>, %arg9: memref<8x32xf32, #tpu.memory_space<vmem>>, %arg10: memref<1x32xf32, #tpu.memory_space<vmem>>, %arg11: memref<9x32x8xf32, #tpu.memory_space<vmem>>, %arg12: memref<1x8xf32, #tpu.memory_space<vmem>>, %arg13: memref<8x32xf32, #tpu.memory_space<vmem>>, %arg14: memref<1x32xf32, #tpu.memory_space<vmem>>, %arg15: memref<1x36x32xf32, #tpu.memory_space<vmem>>, %arg16: memref<50x32xf32, #tpu.memory_space<vmem>>) attributes {dimension_semantics = [#tpu.dimension_semantics<parallel>], iteration_bounds = array<i64: 2>, scalar_prefetch = 0 : i64, scratch_operands = 1 : i64, tpu.core_type = #tpu.core_type<tc>, window_params = [{transform_indices = @transform_0, window_bounds = array<i64: 1, 36, 256>}, {pipeline_mode = #tpu.pipeline_mode<synchronous>, transform_indices = @transform_1, window_bounds = array<i64: 1, 36, 1>}, {pipeline_mode = #tpu.pipeline_mode<synchronous>, transform_indices = @transform_2, window_bounds = array<i64: 256, 32>}, {pipeline_mode = #tpu.pipeline_mode<synchronous>, transform_indices = @transform_3, window_bounds = array<i64: 1, 32>}, {pipeline_mode = #tpu.pipeline_mode<synchronous>, transform_indices = @transform_4, window_bounds = array<i64: 9, 32, 32>}, {pipeline_mode = #tpu.pipeline_mode<synchronous>, transform_indices = @transform_5, window_bounds = array<i64: 1, 32>}, {pipeline_mode = #tpu.pipeline_mode<synchronous>, transform_indices = @transform_6, window_bounds = array<i64: 9, 32, 8>}, {pipeline_mode = #tpu.pipeline_mode<synchronous>, transform_indices = @transform_7, window_bounds = array<i64: 1, 8>}, {pipeline_mode = #tpu.pipeline_mode<synchronous>, transform_indices = @transform_8, window_bounds = array<i64: 8, 32>}, {pipeline_mode = #tpu.pipeline_mode<synchronous>, transform_indices = @transform_9, window_bounds = array<i64: 1, 32>}, {pipeline_mode = #tpu.pipeline_mode<synchronous>, transform_indices = @transform_10, window_bounds = array<i64: 9, 32, 8>}, {pipeline_mode = #tpu.pipeline_mode<synchronous>, transform_indices = @transform_11, window_bounds = array<i64: 1, 8>}, {pipeline_mode = #tpu.pipeline_mode<synchronous>, transform_indices = @transform_12, window_bounds = array<i64: 8, 32>}, {pipeline_mode = #tpu.pipeline_mode<synchronous>, transform_indices = @transform_13, window_bounds = array<i64: 1, 32>}, {transform_indices = @transform_14, window_bounds = array<i64: 1, 36, 32>}]} {
    %c0 = arith.constant 0 : index
    %c0_0 = arith.constant 0 : index
    %c0_1 = arith.constant 0 : index
    %0 = vector.load %arg2[%c0, %c0_0, %c0_1] : memref<1x36x1xf32, #tpu.memory_space<vmem>>, vector<1x36x1xf32>
    %1 = vector.shape_cast %0 : vector<1x36x1xf32> to vector<36x1xf32>
    %cst = arith.constant 0.000000e+00 : f32
    %2 = vector.broadcast %cst : f32 to vector<50x32xf32>
    %c0_2 = arith.constant 0 : index
    %c0_3 = arith.constant 0 : index
    %3 = vector.load %arg16[%c0_2, %c0_3] : memref<50x32xf32, #tpu.memory_space<vmem>>, vector<50x32xf32>
    tpu.vector_store %arg16[%c0_2, %c0_3], %2 {strides = array<i32>} : memref<50x32xf32, #tpu.memory_space<vmem>>, vector<50x32xf32>,
    %c0_4 = arith.constant 0 : index
    %c0_5 = arith.constant 0 : index
    %c0_6 = arith.constant 0 : index
    %4 = vector.load %arg1[%c0_4, %c0_5, %c0_6] : memref<1x36x256xf32, #tpu.memory_space<vmem>>, vector<1x36x256xf32>
    %5 = vector.shape_cast %4 : vector<1x36x256xf32> to vector<36x256xf32>
    %c0_7 = arith.constant 0 : index
    %c0_8 = arith.constant 0 : index
    %6 = vector.load %arg3[%c0_7, %c0_8] : memref<256x32xf32, #tpu.memory_space<vmem>>, vector<256x32xf32>
    %cst_9 = arith.constant dense<0.000000e+00> : vector<36x32xf32>
    %7 = tpu.matmul %5, %6, %cst_9 {dimension_numbers = #tpu.dot_dimension_numbers<[1], [0], [0], [1], [0, 0, 1, 1], [], []>} : vector<36x256xf32>, vector<256x32xf32>, vector<36x32xf32> -> vector<36x32xf32>
    %c0_10 = arith.constant 0 : index
    %c0_11 = arith.constant 0 : index
    %8 = vector.load %arg4[%c0_10, %c0_11] : memref<1x32xf32, #tpu.memory_space<vmem>>, vector<1x32xf32>
    %9 = vector.broadcast %8 : vector<1x32xf32> to vector<36x32xf32>
    %10 = arith.addf %7, %9 : vector<36x32xf32>
    %cst_12 = arith.constant 0.000000e+00 : f32
    %11 = vector.broadcast %cst_12 : f32 to vector<36x32xf32>
    %12 = arith.maximumf %10, %11 : vector<36x32xf32>
    %13 = vector.broadcast %1 : vector<36x1xf32> to vector<36x32xf32>
    %14 = arith.mulf %12, %13 : vector<36x32xf32>
    %c7 = arith.constant 7 : index
    %c0_13 = arith.constant 0 : index
    %15 = vector.load %arg16[%c7, %c0_13] : memref<50x32xf32, #tpu.memory_space<vmem>>, vector<36x32xf32>
    tpu.vector_store %arg16[%c7, %c0_13], %14 {strides = array<i32>} : memref<50x32xf32, #tpu.memory_space<vmem>>, vector<36x32xf32>,
    %c0_14 = arith.constant 0 : index
    %c0_15 = arith.constant 0 : index
    %16 = vector.load %arg16[%c0_14, %c0_15] : memref<50x32xf32, #tpu.memory_space<vmem>>, vector<36x32xf32>
    %c0_16 = arith.constant 0 : index
    %c0_17 = arith.constant 0 : index
    %c0_18 = arith.constant 0 : index
    %17 = vector.load %arg5[%c0_16, %c0_17, %c0_18] : memref<9x32x32xf32, #tpu.memory_space<vmem>>, vector<1x32x32xf32>
    %18 = vector.shape_cast %17 : vector<1x32x32xf32> to vector<32x32xf32>
    %cst_19 = arith.constant dense<0.000000e+00> : vector<36x32xf32>
    %19 = tpu.matmul %16, %18, %cst_19 {dimension_numbers = #tpu.dot_dimension_numbers<[1], [0], [0], [1], [0, 0, 1, 1], [], []>} : vector<36x32xf32>, vector<32x32xf32>, vector<36x32xf32> -> vector<36x32xf32>
    %c1 = arith.constant 1 : index
    %c0_20 = arith.constant 0 : index
    %20 = vector.load %arg16[%c1, %c0_20] : memref<50x32xf32, #tpu.memory_space<vmem>>, vector<36x32xf32>
    %c1_21 = arith.constant 1 : index
    %c0_22 = arith.constant 0 : index
    %c0_23 = arith.constant 0 : index
    %21 = vector.load %arg5[%c1_21, %c0_22, %c0_23] : memref<9x32x32xf32, #tpu.memory_space<vmem>>, vector<1x32x32xf32>
    %22 = vector.shape_cast %21 : vector<1x32x32xf32> to vector<32x32xf32>
    %cst_24 = arith.constant dense<0.000000e+00> : vector<36x32xf32>
    %23 = tpu.matmul %20, %22, %cst_24 {dimension_numbers = #tpu.dot_dimension_numbers<[1], [0], [0], [1], [0, 0, 1, 1], [], []>} : vector<36x32xf32>, vector<32x32xf32>, vector<36x32xf32> -> vector<36x32xf32>
    %24 = arith.addf %19, %23 : vector<36x32xf32>
    %c2 = arith.constant 2 : index
    %c0_25 = arith.constant 0 : index
    %25 = vector.load %arg16[%c2, %c0_25] : memref<50x32xf32, #tpu.memory_space<vmem>>, vector<36x32xf32>
    %c2_26 = arith.constant 2 : index
    %c0_27 = arith.constant 0 : index
    %c0_28 = arith.constant 0 : index
    %26 = vector.load %arg5[%c2_26, %c0_27, %c0_28] : memref<9x32x32xf32, #tpu.memory_space<vmem>>, vector<1x32x32xf32>
    %27 = vector.shape_cast %26 : vector<1x32x32xf32> to vector<32x32xf32>
    %cst_29 = arith.constant dense<0.000000e+00> : vector<36x32xf32>
    %28 = tpu.matmul %25, %27, %cst_29 {dimension_numbers = #tpu.dot_dimension_numbers<[1], [0], [0], [1], [0, 0, 1, 1], [], []>} : vector<36x32xf32>, vector<32x32xf32>, vector<36x32xf32> -> vector<36x32xf32>
    %29 = arith.addf %24, %28 : vector<36x32xf32>
    %c6 = arith.constant 6 : index
    %c0_30 = arith.constant 0 : index
    %30 = vector.load %arg16[%c6, %c0_30] : memref<50x32xf32, #tpu.memory_space<vmem>>, vector<36x32xf32>
    %c3 = arith.constant 3 : index
    %c0_31 = arith.constant 0 : index
    %c0_32 = arith.constant 0 : index
    %31 = vector.load %arg5[%c3, %c0_31, %c0_32] : memref<9x32x32xf32, #tpu.memory_space<vmem>>, vector<1x32x32xf32>
    %32 = vector.shape_cast %31 : vector<1x32x32xf32> to vector<32x32xf32>
    %cst_33 = arith.constant dense<0.000000e+00> : vector<36x32xf32>
    %33 = tpu.matmul %30, %32, %cst_33 {dimension_numbers = #tpu.dot_dimension_numbers<[1], [0], [0], [1], [0, 0, 1, 1], [], []>} : vector<36x32xf32>, vector<32x32xf32>, vector<36x32xf32> -> vector<36x32xf32>
    %34 = arith.addf %29, %33 : vector<36x32xf32>
    %c7_34 = arith.constant 7 : index
    %c0_35 = arith.constant 0 : index
    %35 = vector.load %arg16[%c7_34, %c0_35] : memref<50x32xf32, #tpu.memory_space<vmem>>, vector<36x32xf32>
    %c4 = arith.constant 4 : index
    %c0_36 = arith.constant 0 : index
    %c0_37 = arith.constant 0 : index
    %36 = vector.load %arg5[%c4, %c0_36, %c0_37] : memref<9x32x32xf32, #tpu.memory_space<vmem>>, vector<1x32x32xf32>
    %37 = vector.shape_cast %36 : vector<1x32x32xf32> to vector<32x32xf32>
    %cst_38 = arith.constant dense<0.000000e+00> : vector<36x32xf32>
    %38 = tpu.matmul %35, %37, %cst_38 {dimension_numbers = #tpu.dot_dimension_numbers<[1], [0], [0], [1], [0, 0, 1, 1], [], []>} : vector<36x32xf32>, vector<32x32xf32>, vector<36x32xf32> -> vector<36x32xf32>
    %39 = arith.addf %34, %38 : vector<36x32xf32>
    %c8 = arith.constant 8 : index
    %c0_39 = arith.constant 0 : index
    %40 = vector.load %arg16[%c8, %c0_39] : memref<50x32xf32, #tpu.memory_space<vmem>>, vector<36x32xf32>
    %c5 = arith.constant 5 : index
    %c0_40 = arith.constant 0 : index
    %c0_41 = arith.constant 0 : index
    %41 = vector.load %arg5[%c5, %c0_40, %c0_41] : memref<9x32x32xf32, #tpu.memory_space<vmem>>, vector<1x32x32xf32>
    %42 = vector.shape_cast %41 : vector<1x32x32xf32> to vector<32x32xf32>
    %cst_42 = arith.constant dense<0.000000e+00> : vector<36x32xf32>
    %43 = tpu.matmul %40, %42, %cst_42 {dimension_numbers = #tpu.dot_dimension_numbers<[1], [0], [0], [1], [0, 0, 1, 1], [], []>} : vector<36x32xf32>, vector<32x32xf32>, vector<36x32xf32> -> vector<36x32xf32>
    %44 = arith.addf %39, %43 : vector<36x32xf32>
    %c12 = arith.constant 12 : index
    %c0_43 = arith.constant 0 : index
    %45 = vector.load %arg16[%c12, %c0_43] : memref<50x32xf32, #tpu.memory_space<vmem>>, vector<36x32xf32>
    %c6_44 = arith.constant 6 : index
    %c0_45 = arith.constant 0 : index
    %c0_46 = arith.constant 0 : index
    %46 = vector.load %arg5[%c6_44, %c0_45, %c0_46] : memref<9x32x32xf32, #tpu.memory_space<vmem>>, vector<1x32x32xf32>
    %47 = vector.shape_cast %46 : vector<1x32x32xf32> to vector<32x32xf32>
    %cst_47 = arith.constant dense<0.000000e+00> : vector<36x32xf32>
    %48 = tpu.matmul %45, %47, %cst_47 {dimension_numbers = #tpu.dot_dimension_numbers<[1], [0], [0], [1], [0, 0, 1, 1], [], []>} : vector<36x32xf32>, vector<32x32xf32>, vector<36x32xf32> -> vector<36x32xf32>
    %49 = arith.addf %44, %48 : vector<36x32xf32>
    %c13 = arith.constant 13 : index
    %c0_48 = arith.constant 0 : index
    %50 = vector.load %arg16[%c13, %c0_48] : memref<50x32xf32, #tpu.memory_space<vmem>>, vector<36x32xf32>
    %c7_49 = arith.constant 7 : index
    %c0_50 = arith.constant 0 : index
    %c0_51 = arith.constant 0 : index
    %51 = vector.load %arg5[%c7_49, %c0_50, %c0_51] : memref<9x32x32xf32, #tpu.memory_space<vmem>>, vector<1x32x32xf32>
    %52 = vector.shape_cast %51 : vector<1x32x32xf32> to vector<32x32xf32>
    %cst_52 = arith.constant dense<0.000000e+00> : vector<36x32xf32>
    %53 = tpu.matmul %50, %52, %cst_52 {dimension_numbers = #tpu.dot_dimension_numbers<[1], [0], [0], [1], [0, 0, 1, 1], [], []>} : vector<36x32xf32>, vector<32x32xf32>, vector<36x32xf32> -> vector<36x32xf32>
    %54 = arith.addf %49, %53 : vector<36x32xf32>
    %c14 = arith.constant 14 : index
    %c0_53 = arith.constant 0 : index
    %55 = vector.load %arg16[%c14, %c0_53] : memref<50x32xf32, #tpu.memory_space<vmem>>, vector<36x32xf32>
    %c8_54 = arith.constant 8 : index
    %c0_55 = arith.constant 0 : index
    %c0_56 = arith.constant 0 : index
    %56 = vector.load %arg5[%c8_54, %c0_55, %c0_56] : memref<9x32x32xf32, #tpu.memory_space<vmem>>, vector<1x32x32xf32>
    %57 = vector.shape_cast %56 : vector<1x32x32xf32> to vector<32x32xf32>
    %cst_57 = arith.constant dense<0.000000e+00> : vector<36x32xf32>
    %58 = tpu.matmul %55, %57, %cst_57 {dimension_numbers = #tpu.dot_dimension_numbers<[1], [0], [0], [1], [0, 0, 1, 1], [], []>} : vector<36x32xf32>, vector<32x32xf32>, vector<36x32xf32> -> vector<36x32xf32>
    %59 = arith.addf %54, %58 : vector<36x32xf32>
    %c0_58 = arith.constant 0 : index
    %c0_59 = arith.constant 0 : index
    %60 = vector.load %arg6[%c0_58, %c0_59] : memref<1x32xf32, #tpu.memory_space<vmem>>, vector<1x32xf32>
    %61 = vector.broadcast %60 : vector<1x32xf32> to vector<36x32xf32>
    %62 = arith.addf %59, %61 : vector<36x32xf32>
    %63 = vector.broadcast %1 : vector<36x1xf32> to vector<36x32xf32>
    %64 = arith.mulf %62, %63 : vector<36x32xf32>
    %c7_60 = arith.constant 7 : index
    %c0_61 = arith.constant 0 : index
    %65 = vector.load %arg16[%c7_60, %c0_61] : memref<50x32xf32, #tpu.memory_space<vmem>>, vector<36x32xf32>
    tpu.vector_store %arg16[%c7_60, %c0_61], %64 {strides = array<i32>} : memref<50x32xf32, #tpu.memory_space<vmem>>, vector<36x32xf32>,
    %c0_62 = arith.constant 0 : index
    %c0_63 = arith.constant 0 : index
    %66 = vector.load %arg16[%c0_62, %c0_63] : memref<50x32xf32, #tpu.memory_space<vmem>>, vector<36x32xf32>
    %cst_64 = arith.constant 0.000000e+00 : f32
    %67 = vector.broadcast %cst_64 : f32 to vector<36x32xf32>
    %68 = arith.maximumf %66, %67 : vector<36x32xf32>
    %c0_65 = arith.constant 0 : index
    %c0_66 = arith.constant 0 : index
    %c0_67 = arith.constant 0 : index
    %69 = vector.load %arg7[%c0_65, %c0_66, %c0_67] : memref<9x32x8xf32, #tpu.memory_space<vmem>>, vector<1x32x8xf32>
    %70 = vector.shape_cast %69 : vector<1x32x8xf32> to vector<32x8xf32>
    %cst_68 = arith.constant dense<0.000000e+00> : vector<36x8xf32>
    %71 = tpu.matmul %68, %70, %cst_68 {dimension_numbers = #tpu.dot_dimension_numbers<[1], [0], [0], [1], [0, 0, 1, 1], [], []>} : vector<36x32xf32>, vector<32x8xf32>, vector<36x8xf32> -> vector<36x8xf32>
    %c1_69 = arith.constant 1 : index
    %c0_70 = arith.constant 0 : index
    %72 = vector.load %arg16[%c1_69, %c0_70] : memref<50x32xf32, #tpu.memory_space<vmem>>, vector<36x32xf32>
    %cst_71 = arith.constant 0.000000e+00 : f32
    %73 = vector.broadcast %cst_71 : f32 to vector<36x32xf32>
    %74 = arith.maximumf %72, %73 : vector<36x32xf32>
    %c1_72 = arith.constant 1 : index
    %c0_73 = arith.constant 0 : index
    %c0_74 = arith.constant 0 : index
    %75 = vector.load %arg7[%c1_72, %c0_73, %c0_74] : memref<9x32x8xf32, #tpu.memory_space<vmem>>, vector<1x32x8xf32>
    %76 = vector.shape_cast %75 : vector<1x32x8xf32> to vector<32x8xf32>
    %cst_75 = arith.constant dense<0.000000e+00> : vector<36x8xf32>
    %77 = tpu.matmul %74, %76, %cst_75 {dimension_numbers = #tpu.dot_dimension_numbers<[1], [0], [0], [1], [0, 0, 1, 1], [], []>} : vector<36x32xf32>, vector<32x8xf32>, vector<36x8xf32> -> vector<36x8xf32>
    %78 = arith.addf %71, %77 : vector<36x8xf32>
    %c2_76 = arith.constant 2 : index
    %c0_77 = arith.constant 0 : index
    %79 = vector.load %arg16[%c2_76, %c0_77] : memref<50x32xf32, #tpu.memory_space<vmem>>, vector<36x32xf32>
    %cst_78 = arith.constant 0.000000e+00 : f32
    %80 = vector.broadcast %cst_78 : f32 to vector<36x32xf32>
    %81 = arith.maximumf %79, %80 : vector<36x32xf32>
    %c2_79 = arith.constant 2 : index
    %c0_80 = arith.constant 0 : index
    %c0_81 = arith.constant 0 : index
    %82 = vector.load %arg7[%c2_79, %c0_80, %c0_81] : memref<9x32x8xf32, #tpu.memory_space<vmem>>, vector<1x32x8xf32>
    %83 = vector.shape_cast %82 : vector<1x32x8xf32> to vector<32x8xf32>
    %cst_82 = arith.constant dense<0.000000e+00> : vector<36x8xf32>
    %84 = tpu.matmul %81, %83, %cst_82 {dimension_numbers = #tpu.dot_dimension_numbers<[1], [0], [0], [1], [0, 0, 1, 1], [], []>} : vector<36x32xf32>, vector<32x8xf32>, vector<36x8xf32> -> vector<36x8xf32>
    %85 = arith.addf %78, %84 : vector<36x8xf32>
    %c6_83 = arith.constant 6 : index
    %c0_84 = arith.constant 0 : index
    %86 = vector.load %arg16[%c6_83, %c0_84] : memref<50x32xf32, #tpu.memory_space<vmem>>, vector<36x32xf32>
    %cst_85 = arith.constant 0.000000e+00 : f32
    %87 = vector.broadcast %cst_85 : f32 to vector<36x32xf32>
    %88 = arith.maximumf %86, %87 : vector<36x32xf32>
    %c3_86 = arith.constant 3 : index
    %c0_87 = arith.constant 0 : index
    %c0_88 = arith.constant 0 : index
    %89 = vector.load %arg7[%c3_86, %c0_87, %c0_88] : memref<9x32x8xf32, #tpu.memory_space<vmem>>, vector<1x32x8xf32>
    %90 = vector.shape_cast %89 : vector<1x32x8xf32> to vector<32x8xf32>
    %cst_89 = arith.constant dense<0.000000e+00> : vector<36x8xf32>
    %91 = tpu.matmul %88, %90, %cst_89 {dimension_numbers = #tpu.dot_dimension_numbers<[1], [0], [0], [1], [0, 0, 1, 1], [], []>} : vector<36x32xf32>, vector<32x8xf32>, vector<36x8xf32> -> vector<36x8xf32>
    %92 = arith.addf %85, %91 : vector<36x8xf32>
    %c7_90 = arith.constant 7 : index
    %c0_91 = arith.constant 0 : index
    %93 = vector.load %arg16[%c7_90, %c0_91] : memref<50x32xf32, #tpu.memory_space<vmem>>, vector<36x32xf32>
    %cst_92 = arith.constant 0.000000e+00 : f32
    %94 = vector.broadcast %cst_92 : f32 to vector<36x32xf32>
    %95 = arith.maximumf %93, %94 : vector<36x32xf32>
    %c4_93 = arith.constant 4 : index
    %c0_94 = arith.constant 0 : index
    %c0_95 = arith.constant 0 : index
    %96 = vector.load %arg7[%c4_93, %c0_94, %c0_95] : memref<9x32x8xf32, #tpu.memory_space<vmem>>, vector<1x32x8xf32>
    %97 = vector.shape_cast %96 : vector<1x32x8xf32> to vector<32x8xf32>
    %cst_96 = arith.constant dense<0.000000e+00> : vector<36x8xf32>
    %98 = tpu.matmul %95, %97, %cst_96 {dimension_numbers = #tpu.dot_dimension_numbers<[1], [0], [0], [1], [0, 0, 1, 1], [], []>} : vector<36x32xf32>, vector<32x8xf32>, vector<36x8xf32> -> vector<36x8xf32>
    %99 = arith.addf %92, %98 : vector<36x8xf32>
    %c8_97 = arith.constant 8 : index
    %c0_98 = arith.constant 0 : index
    %100 = vector.load %arg16[%c8_97, %c0_98] : memref<50x32xf32, #tpu.memory_space<vmem>>, vector<36x32xf32>
    %cst_99 = arith.constant 0.000000e+00 : f32
    %101 = vector.broadcast %cst_99 : f32 to vector<36x32xf32>
    %102 = arith.maximumf %100, %101 : vector<36x32xf32>
    %c5_100 = arith.constant 5 : index
    %c0_101 = arith.constant 0 : index
    %c0_102 = arith.constant 0 : index
    %103 = vector.load %arg7[%c5_100, %c0_101, %c0_102] : memref<9x32x8xf32, #tpu.memory_space<vmem>>, vector<1x32x8xf32>
    %104 = vector.shape_cast %103 : vector<1x32x8xf32> to vector<32x8xf32>
    %cst_103 = arith.constant dense<0.000000e+00> : vector<36x8xf32>
    %105 = tpu.matmul %102, %104, %cst_103 {dimension_numbers = #tpu.dot_dimension_numbers<[1], [0], [0], [1], [0, 0, 1, 1], [], []>} : vector<36x32xf32>, vector<32x8xf32>, vector<36x8xf32> -> vector<36x8xf32>
    %106 = arith.addf %99, %105 : vector<36x8xf32>
    %c12_104 = arith.constant 12 : index
    %c0_105 = arith.constant 0 : index
    %107 = vector.load %arg16[%c12_104, %c0_105] : memref<50x32xf32, #tpu.memory_space<vmem>>, vector<36x32xf32>
    %cst_106 = arith.constant 0.000000e+00 : f32
    %108 = vector.broadcast %cst_106 : f32 to vector<36x32xf32>
    %109 = arith.maximumf %107, %108 : vector<36x32xf32>
    %c6_107 = arith.constant 6 : index
    %c0_108 = arith.constant 0 : index
    %c0_109 = arith.constant 0 : index
    %110 = vector.load %arg7[%c6_107, %c0_108, %c0_109] : memref<9x32x8xf32, #tpu.memory_space<vmem>>, vector<1x32x8xf32>
    %111 = vector.shape_cast %110 : vector<1x32x8xf32> to vector<32x8xf32>
    %cst_110 = arith.constant dense<0.000000e+00> : vector<36x8xf32>
    %112 = tpu.matmul %109, %111, %cst_110 {dimension_numbers = #tpu.dot_dimension_numbers<[1], [0], [0], [1], [0, 0, 1, 1], [], []>} : vector<36x32xf32>, vector<32x8xf32>, vector<36x8xf32> -> vector<36x8xf32>
    %113 = arith.addf %106, %112 : vector<36x8xf32>
    %c13_111 = arith.constant 13 : index
    %c0_112 = arith.constant 0 : index
    %114 = vector.load %arg16[%c13_111, %c0_112] : memref<50x32xf32, #tpu.memory_space<vmem>>, vector<36x32xf32>
    %cst_113 = arith.constant 0.000000e+00 : f32
    %115 = vector.broadcast %cst_113 : f32 to vector<36x32xf32>
    %116 = arith.maximumf %114, %115 : vector<36x32xf32>
    %c7_114 = arith.constant 7 : index
    %c0_115 = arith.constant 0 : index
    %c0_116 = arith.constant 0 : index
    %117 = vector.load %arg7[%c7_114, %c0_115, %c0_116] : memref<9x32x8xf32, #tpu.memory_space<vmem>>, vector<1x32x8xf32>
    %118 = vector.shape_cast %117 : vector<1x32x8xf32> to vector<32x8xf32>
    %cst_117 = arith.constant dense<0.000000e+00> : vector<36x8xf32>
    %119 = tpu.matmul %116, %118, %cst_117 {dimension_numbers = #tpu.dot_dimension_numbers<[1], [0], [0], [1], [0, 0, 1, 1], [], []>} : vector<36x32xf32>, vector<32x8xf32>, vector<36x8xf32> -> vector<36x8xf32>
    %120 = arith.addf %113, %119 : vector<36x8xf32>
    %c14_118 = arith.constant 14 : index
    %c0_119 = arith.constant 0 : index
    %121 = vector.load %arg16[%c14_118, %c0_119] : memref<50x32xf32, #tpu.memory_space<vmem>>, vector<36x32xf32>
    %cst_120 = arith.constant 0.000000e+00 : f32
    %122 = vector.broadcast %cst_120 : f32 to vector<36x32xf32>
    %123 = arith.maximumf %121, %122 : vector<36x32xf32>
    %c8_121 = arith.constant 8 : index
    %c0_122 = arith.constant 0 : index
    %c0_123 = arith.constant 0 : index
    %124 = vector.load %arg7[%c8_121, %c0_122, %c0_123] : memref<9x32x8xf32, #tpu.memory_space<vmem>>, vector<1x32x8xf32>
    %125 = vector.shape_cast %124 : vector<1x32x8xf32> to vector<32x8xf32>
    %cst_124 = arith.constant dense<0.000000e+00> : vector<36x8xf32>
    %126 = tpu.matmul %123, %125, %cst_124 {dimension_numbers = #tpu.dot_dimension_numbers<[1], [0], [0], [1], [0, 0, 1, 1], [], []>} : vector<36x32xf32>, vector<32x8xf32>, vector<36x8xf32> -> vector<36x8xf32>
    %127 = arith.addf %120, %126 : vector<36x8xf32>
    %c0_125 = arith.constant 0 : index
    %c0_126 = arith.constant 0 : index
    %128 = vector.load %arg8[%c0_125, %c0_126] : memref<1x8xf32, #tpu.memory_space<vmem>>, vector<1x8xf32>
    %129 = vector.broadcast %128 : vector<1x8xf32> to vector<36x8xf32>
    %130 = arith.addf %127, %129 : vector<36x8xf32>
    %cst_127 = arith.constant 0.000000e+00 : f32
    %131 = vector.broadcast %cst_127 : f32 to vector<36x8xf32>
    %132 = arith.maximumf %130, %131 : vector<36x8xf32>
    %c0_128 = arith.constant 0 : index
    %c0_129 = arith.constant 0 : index
    %133 = vector.load %arg9[%c0_128, %c0_129] : memref<8x32xf32, #tpu.memory_space<vmem>>, vector<8x32xf32>
    %cst_130 = arith.constant dense<0.000000e+00> : vector<36x32xf32>
    %134 = tpu.matmul %132, %133, %cst_130 {dimension_numbers = #tpu.dot_dimension_numbers<[1], [0], [0], [1], [0, 0, 1, 1], [], []>} : vector<36x8xf32>, vector<8x32xf32>, vector<36x32xf32> -> vector<36x32xf32>
    %135 = arith.addf %64, %134 : vector<36x32xf32>
    %c0_131 = arith.constant 0 : index
    %c0_132 = arith.constant 0 : index
    %136 = vector.load %arg10[%c0_131, %c0_132] : memref<1x32xf32, #tpu.memory_space<vmem>>, vector<1x32xf32>
    %137 = vector.broadcast %136 : vector<1x32xf32> to vector<36x32xf32>
    %138 = arith.addf %135, %137 : vector<36x32xf32>
    %139 = vector.broadcast %1 : vector<36x1xf32> to vector<36x32xf32>
    %140 = arith.mulf %138, %139 : vector<36x32xf32>
    %c7_133 = arith.constant 7 : index
    %c0_134 = arith.constant 0 : index
    %141 = vector.load %arg16[%c7_133, %c0_134] : memref<50x32xf32, #tpu.memory_space<vmem>>, vector<36x32xf32>
    tpu.vector_store %arg16[%c7_133, %c0_134], %140 {strides = array<i32>} : memref<50x32xf32, #tpu.memory_space<vmem>>, vector<36x32xf32>,
    %c0_135 = arith.constant 0 : index
    %c0_136 = arith.constant 0 : index
    %142 = vector.load %arg16[%c0_135, %c0_136] : memref<50x32xf32, #tpu.memory_space<vmem>>, vector<36x32xf32>
    %cst_137 = arith.constant 0.000000e+00 : f32
    %143 = vector.broadcast %cst_137 : f32 to vector<36x32xf32>
    %144 = arith.maximumf %142, %143 : vector<36x32xf32>
    %c0_138 = arith.constant 0 : index
    %c0_139 = arith.constant 0 : index
    %c0_140 = arith.constant 0 : index
    %145 = vector.load %arg11[%c0_138, %c0_139, %c0_140] : memref<9x32x8xf32, #tpu.memory_space<vmem>>, vector<1x32x8xf32>
    %146 = vector.shape_cast %145 : vector<1x32x8xf32> to vector<32x8xf32>
    %cst_141 = arith.constant dense<0.000000e+00> : vector<36x8xf32>
    %147 = tpu.matmul %144, %146, %cst_141 {dimension_numbers = #tpu.dot_dimension_numbers<[1], [0], [0], [1], [0, 0, 1, 1], [], []>} : vector<36x32xf32>, vector<32x8xf32>, vector<36x8xf32> -> vector<36x8xf32>
    %c1_142 = arith.constant 1 : index
    %c0_143 = arith.constant 0 : index
    %148 = vector.load %arg16[%c1_142, %c0_143] : memref<50x32xf32, #tpu.memory_space<vmem>>, vector<36x32xf32>
    %cst_144 = arith.constant 0.000000e+00 : f32
    %149 = vector.broadcast %cst_144 : f32 to vector<36x32xf32>
    %150 = arith.maximumf %148, %149 : vector<36x32xf32>
    %c1_145 = arith.constant 1 : index
    %c0_146 = arith.constant 0 : index
    %c0_147 = arith.constant 0 : index
    %151 = vector.load %arg11[%c1_145, %c0_146, %c0_147] : memref<9x32x8xf32, #tpu.memory_space<vmem>>, vector<1x32x8xf32>
    %152 = vector.shape_cast %151 : vector<1x32x8xf32> to vector<32x8xf32>
    %cst_148 = arith.constant dense<0.000000e+00> : vector<36x8xf32>
    %153 = tpu.matmul %150, %152, %cst_148 {dimension_numbers = #tpu.dot_dimension_numbers<[1], [0], [0], [1], [0, 0, 1, 1], [], []>} : vector<36x32xf32>, vector<32x8xf32>, vector<36x8xf32> -> vector<36x8xf32>
    %154 = arith.addf %147, %153 : vector<36x8xf32>
    %c2_149 = arith.constant 2 : index
    %c0_150 = arith.constant 0 : index
    %155 = vector.load %arg16[%c2_149, %c0_150] : memref<50x32xf32, #tpu.memory_space<vmem>>, vector<36x32xf32>
    %cst_151 = arith.constant 0.000000e+00 : f32
    %156 = vector.broadcast %cst_151 : f32 to vector<36x32xf32>
    %157 = arith.maximumf %155, %156 : vector<36x32xf32>
    %c2_152 = arith.constant 2 : index
    %c0_153 = arith.constant 0 : index
    %c0_154 = arith.constant 0 : index
    %158 = vector.load %arg11[%c2_152, %c0_153, %c0_154] : memref<9x32x8xf32, #tpu.memory_space<vmem>>, vector<1x32x8xf32>
    %159 = vector.shape_cast %158 : vector<1x32x8xf32> to vector<32x8xf32>
    %cst_155 = arith.constant dense<0.000000e+00> : vector<36x8xf32>
    %160 = tpu.matmul %157, %159, %cst_155 {dimension_numbers = #tpu.dot_dimension_numbers<[1], [0], [0], [1], [0, 0, 1, 1], [], []>} : vector<36x32xf32>, vector<32x8xf32>, vector<36x8xf32> -> vector<36x8xf32>
    %161 = arith.addf %154, %160 : vector<36x8xf32>
    %c6_156 = arith.constant 6 : index
    %c0_157 = arith.constant 0 : index
    %162 = vector.load %arg16[%c6_156, %c0_157] : memref<50x32xf32, #tpu.memory_space<vmem>>, vector<36x32xf32>
    %cst_158 = arith.constant 0.000000e+00 : f32
    %163 = vector.broadcast %cst_158 : f32 to vector<36x32xf32>
    %164 = arith.maximumf %162, %163 : vector<36x32xf32>
    %c3_159 = arith.constant 3 : index
    %c0_160 = arith.constant 0 : index
    %c0_161 = arith.constant 0 : index
    %165 = vector.load %arg11[%c3_159, %c0_160, %c0_161] : memref<9x32x8xf32, #tpu.memory_space<vmem>>, vector<1x32x8xf32>
    %166 = vector.shape_cast %165 : vector<1x32x8xf32> to vector<32x8xf32>
    %cst_162 = arith.constant dense<0.000000e+00> : vector<36x8xf32>
    %167 = tpu.matmul %164, %166, %cst_162 {dimension_numbers = #tpu.dot_dimension_numbers<[1], [0], [0], [1], [0, 0, 1, 1], [], []>} : vector<36x32xf32>, vector<32x8xf32>, vector<36x8xf32> -> vector<36x8xf32>
    %168 = arith.addf %161, %167 : vector<36x8xf32>
    %c7_163 = arith.constant 7 : index
    %c0_164 = arith.constant 0 : index
    %169 = vector.load %arg16[%c7_163, %c0_164] : memref<50x32xf32, #tpu.memory_space<vmem>>, vector<36x32xf32>
    %cst_165 = arith.constant 0.000000e+00 : f32
    %170 = vector.broadcast %cst_165 : f32 to vector<36x32xf32>
    %171 = arith.maximumf %169, %170 : vector<36x32xf32>
    %c4_166 = arith.constant 4 : index
    %c0_167 = arith.constant 0 : index
    %c0_168 = arith.constant 0 : index
    %172 = vector.load %arg11[%c4_166, %c0_167, %c0_168] : memref<9x32x8xf32, #tpu.memory_space<vmem>>, vector<1x32x8xf32>
    %173 = vector.shape_cast %172 : vector<1x32x8xf32> to vector<32x8xf32>
    %cst_169 = arith.constant dense<0.000000e+00> : vector<36x8xf32>
    %174 = tpu.matmul %171, %173, %cst_169 {dimension_numbers = #tpu.dot_dimension_numbers<[1], [0], [0], [1], [0, 0, 1, 1], [], []>} : vector<36x32xf32>, vector<32x8xf32>, vector<36x8xf32> -> vector<36x8xf32>
    %175 = arith.addf %168, %174 : vector<36x8xf32>
    %c8_170 = arith.constant 8 : index
    %c0_171 = arith.constant 0 : index
    %176 = vector.load %arg16[%c8_170, %c0_171] : memref<50x32xf32, #tpu.memory_space<vmem>>, vector<36x32xf32>
    %cst_172 = arith.constant 0.000000e+00 : f32
    %177 = vector.broadcast %cst_172 : f32 to vector<36x32xf32>
    %178 = arith.maximumf %176, %177 : vector<36x32xf32>
    %c5_173 = arith.constant 5 : index
    %c0_174 = arith.constant 0 : index
    %c0_175 = arith.constant 0 : index
    %179 = vector.load %arg11[%c5_173, %c0_174, %c0_175] : memref<9x32x8xf32, #tpu.memory_space<vmem>>, vector<1x32x8xf32>
    %180 = vector.shape_cast %179 : vector<1x32x8xf32> to vector<32x8xf32>
    %cst_176 = arith.constant dense<0.000000e+00> : vector<36x8xf32>
    %181 = tpu.matmul %178, %180, %cst_176 {dimension_numbers = #tpu.dot_dimension_numbers<[1], [0], [0], [1], [0, 0, 1, 1], [], []>} : vector<36x32xf32>, vector<32x8xf32>, vector<36x8xf32> -> vector<36x8xf32>
    %182 = arith.addf %175, %181 : vector<36x8xf32>
    %c12_177 = arith.constant 12 : index
    %c0_178 = arith.constant 0 : index
    %183 = vector.load %arg16[%c12_177, %c0_178] : memref<50x32xf32, #tpu.memory_space<vmem>>, vector<36x32xf32>
    %cst_179 = arith.constant 0.000000e+00 : f32
    %184 = vector.broadcast %cst_179 : f32 to vector<36x32xf32>
    %185 = arith.maximumf %183, %184 : vector<36x32xf32>
    %c6_180 = arith.constant 6 : index
    %c0_181 = arith.constant 0 : index
    %c0_182 = arith.constant 0 : index
    %186 = vector.load %arg11[%c6_180, %c0_181, %c0_182] : memref<9x32x8xf32, #tpu.memory_space<vmem>>, vector<1x32x8xf32>
    %187 = vector.shape_cast %186 : vector<1x32x8xf32> to vector<32x8xf32>
    %cst_183 = arith.constant dense<0.000000e+00> : vector<36x8xf32>
    %188 = tpu.matmul %185, %187, %cst_183 {dimension_numbers = #tpu.dot_dimension_numbers<[1], [0], [0], [1], [0, 0, 1, 1], [], []>} : vector<36x32xf32>, vector<32x8xf32>, vector<36x8xf32> -> vector<36x8xf32>
    %189 = arith.addf %182, %188 : vector<36x8xf32>
    %c13_184 = arith.constant 13 : index
    %c0_185 = arith.constant 0 : index
    %190 = vector.load %arg16[%c13_184, %c0_185] : memref<50x32xf32, #tpu.memory_space<vmem>>, vector<36x32xf32>
    %cst_186 = arith.constant 0.000000e+00 : f32
    %191 = vector.broadcast %cst_186 : f32 to vector<36x32xf32>
    %192 = arith.maximumf %190, %191 : vector<36x32xf32>
    %c7_187 = arith.constant 7 : index
    %c0_188 = arith.constant 0 : index
    %c0_189 = arith.constant 0 : index
    %193 = vector.load %arg11[%c7_187, %c0_188, %c0_189] : memref<9x32x8xf32, #tpu.memory_space<vmem>>, vector<1x32x8xf32>
    %194 = vector.shape_cast %193 : vector<1x32x8xf32> to vector<32x8xf32>
    %cst_190 = arith.constant dense<0.000000e+00> : vector<36x8xf32>
    %195 = tpu.matmul %192, %194, %cst_190 {dimension_numbers = #tpu.dot_dimension_numbers<[1], [0], [0], [1], [0, 0, 1, 1], [], []>} : vector<36x32xf32>, vector<32x8xf32>, vector<36x8xf32> -> vector<36x8xf32>
    %196 = arith.addf %189, %195 : vector<36x8xf32>
    %c14_191 = arith.constant 14 : index
    %c0_192 = arith.constant 0 : index
    %197 = vector.load %arg16[%c14_191, %c0_192] : memref<50x32xf32, #tpu.memory_space<vmem>>, vector<36x32xf32>
    %cst_193 = arith.constant 0.000000e+00 : f32
    %198 = vector.broadcast %cst_193 : f32 to vector<36x32xf32>
    %199 = arith.maximumf %197, %198 : vector<36x32xf32>
    %c8_194 = arith.constant 8 : index
    %c0_195 = arith.constant 0 : index
    %c0_196 = arith.constant 0 : index
    %200 = vector.load %arg11[%c8_194, %c0_195, %c0_196] : memref<9x32x8xf32, #tpu.memory_space<vmem>>, vector<1x32x8xf32>
    %201 = vector.shape_cast %200 : vector<1x32x8xf32> to vector<32x8xf32>
    %cst_197 = arith.constant dense<0.000000e+00> : vector<36x8xf32>
    %202 = tpu.matmul %199, %201, %cst_197 {dimension_numbers = #tpu.dot_dimension_numbers<[1], [0], [0], [1], [0, 0, 1, 1], [], []>} : vector<36x32xf32>, vector<32x8xf32>, vector<36x8xf32> -> vector<36x8xf32>
    %203 = arith.addf %196, %202 : vector<36x8xf32>
    %c0_198 = arith.constant 0 : index
    %c0_199 = arith.constant 0 : index
    %204 = vector.load %arg12[%c0_198, %c0_199] : memref<1x8xf32, #tpu.memory_space<vmem>>, vector<1x8xf32>
    %205 = vector.broadcast %204 : vector<1x8xf32> to vector<36x8xf32>
    %206 = arith.addf %203, %205 : vector<36x8xf32>
    %cst_200 = arith.constant 0.000000e+00 : f32
    %207 = vector.broadcast %cst_200 : f32 to vector<36x8xf32>
    %208 = arith.maximumf %206, %207 : vector<36x8xf32>
    %c0_201 = arith.constant 0 : index
    %c0_202 = arith.constant 0 : index
    %209 = vector.load %arg13[%c0_201, %c0_202] : memref<8x32xf32, #tpu.memory_space<vmem>>, vector<8x32xf32>
    %cst_203 = arith.constant dense<0.000000e+00> : vector<36x32xf32>
    %210 = tpu.matmul %208, %209, %cst_203 {dimension_numbers = #tpu.dot_dimension_numbers<[1], [0], [0], [1], [0, 0, 1, 1], [], []>} : vector<36x8xf32>, vector<8x32xf32>, vector<36x32xf32> -> vector<36x32xf32>
    %211 = arith.addf %140, %210 : vector<36x32xf32>
    %c0_204 = arith.constant 0 : index
    %c0_205 = arith.constant 0 : index
    %212 = vector.load %arg14[%c0_204, %c0_205] : memref<1x32xf32, #tpu.memory_space<vmem>>, vector<1x32xf32>
    %213 = vector.broadcast %212 : vector<1x32xf32> to vector<36x32xf32>
    %214 = arith.addf %211, %213 : vector<36x32xf32>
    %215 = vector.broadcast %1 : vector<36x1xf32> to vector<36x32xf32>
    %216 = arith.mulf %214, %215 : vector<36x32xf32>
    %cst_206 = arith.constant 0.000000e+00 : f32
    %217 = vector.broadcast %cst_206 : f32 to vector<36x32xf32>
    %218 = arith.maximumf %216, %217 : vector<36x32xf32>
    %c0_207 = arith.constant 0 : index
    %c0_208 = arith.constant 0 : index
    %c0_209 = arith.constant 0 : index
    %219 = vector.load %arg15[%c0_207, %c0_208, %c0_209] : memref<1x36x32xf32, #tpu.memory_space<vmem>>, vector<1x36x32xf32>
    %220 = vector.shape_cast %219 : vector<1x36x32xf32> to vector<36x32xf32>
    %221 = vector.shape_cast %218 : vector<36x32xf32> to vector<1x36x32xf32>
    tpu.vector_store %arg15[%c0_207, %c0_208, %c0_209], %221 {strides = array<i32>} : memref<1x36x32xf32, #tpu.memory_space<vmem>>, vector<1x36x32xf32>,
    return
  }
  func.func @transform_0(%arg0: i32) -> (i32, i32, i32) {
    %c0_i32 = arith.constant 0 : i32
    %c0_i32_0 = arith.constant 0 : i32
    %c0_i32_1 = arith.constant 0 : i32
    return %arg0, %c0_i32, %c0_i32_0 : i32, i32, i32
  }
  func.func @transform_1(%arg0: i32) -> (i32, i32, i32) {
    %c0_i32 = arith.constant 0 : i32
    %c0_i32_0 = arith.constant 0 : i32
    %c0_i32_1 = arith.constant 0 : i32
    %c0_i32_2 = arith.constant 0 : i32
    return %c0_i32, %c0_i32_0, %c0_i32_1 : i32, i32, i32
  }
  func.func @transform_2(%arg0: i32) -> (i32, i32) {
    %c0_i32 = arith.constant 0 : i32
    %c0_i32_0 = arith.constant 0 : i32
    %c0_i32_1 = arith.constant 0 : i32
    return %c0_i32, %c0_i32_0 : i32, i32
  }
  func.func @transform_3(%arg0: i32) -> (i32, i32) {
    %c0_i32 = arith.constant 0 : i32
    %c0_i32_0 = arith.constant 0 : i32
    %c0_i32_1 = arith.constant 0 : i32
    return %c0_i32, %c0_i32_0 : i32, i32
  }
  func.func @transform_4(%arg0: i32) -> (i32, i32, i32) {
    %c0_i32 = arith.constant 0 : i32
    %c0_i32_0 = arith.constant 0 : i32
    %c0_i32_1 = arith.constant 0 : i32
    %c0_i32_2 = arith.constant 0 : i32
    return %c0_i32, %c0_i32_0, %c0_i32_1 : i32, i32, i32
  }
  func.func @transform_5(%arg0: i32) -> (i32, i32) {
    %c0_i32 = arith.constant 0 : i32
    %c0_i32_0 = arith.constant 0 : i32
    %c0_i32_1 = arith.constant 0 : i32
    return %c0_i32, %c0_i32_0 : i32, i32
  }
  func.func @transform_6(%arg0: i32) -> (i32, i32, i32) {
    %c0_i32 = arith.constant 0 : i32
    %c0_i32_0 = arith.constant 0 : i32
    %c0_i32_1 = arith.constant 0 : i32
    %c0_i32_2 = arith.constant 0 : i32
    return %c0_i32, %c0_i32_0, %c0_i32_1 : i32, i32, i32
  }
  func.func @transform_7(%arg0: i32) -> (i32, i32) {
    %c0_i32 = arith.constant 0 : i32
    %c0_i32_0 = arith.constant 0 : i32
    %c0_i32_1 = arith.constant 0 : i32
    return %c0_i32, %c0_i32_0 : i32, i32
  }
  func.func @transform_8(%arg0: i32) -> (i32, i32) {
    %c0_i32 = arith.constant 0 : i32
    %c0_i32_0 = arith.constant 0 : i32
    %c0_i32_1 = arith.constant 0 : i32
    return %c0_i32, %c0_i32_0 : i32, i32
  }
  func.func @transform_9(%arg0: i32) -> (i32, i32) {
    %c0_i32 = arith.constant 0 : i32
    %c0_i32_0 = arith.constant 0 : i32
    %c0_i32_1 = arith.constant 0 : i32
    return %c0_i32, %c0_i32_0 : i32, i32
  }
  func.func @transform_10(%arg0: i32) -> (i32, i32, i32) {
    %c0_i32 = arith.constant 0 : i32
    %c0_i32_0 = arith.constant 0 : i32
    %c0_i32_1 = arith.constant 0 : i32
    %c0_i32_2 = arith.constant 0 : i32
    return %c0_i32, %c0_i32_0, %c0_i32_1 : i32, i32, i32
  }
  func.func @transform_11(%arg0: i32) -> (i32, i32) {
    %c0_i32 = arith.constant 0 : i32
    %c0_i32_0 = arith.constant 0 : i32
    %c0_i32_1 = arith.constant 0 : i32
    return %c0_i32, %c0_i32_0 : i32, i32
  }
  func.func @transform_12(%arg0: i32) -> (i32, i32) {
    %c0_i32 = arith.constant 0 : i32
    %c0_i32_0 = arith.constant 0 : i32
    %c0_i32_1 = arith.constant 0 : i32
    return %c0_i32, %c0_i32_0 : i32, i32
  }
  func.func @transform_13(%arg0: i32) -> (i32, i32) {
    %c0_i32 = arith.constant 0 : i32
    %c0_i32_0 = arith.constant 0 : i32
    %c0_i32_1 = arith.constant 0 : i32
    return %c0_i32, %c0_i32_0 : i32, i32
  }
  func.func @transform_14(%arg0: i32) -> (i32, i32, i32) {
    %c0_i32 = arith.constant 0 : i32
    %c0_i32_0 = arith.constant 0 : i32
    %c0_i32_1 = arith.constant 0 : i32
    return %arg0, %c0_i32, %c0_i32_0 : i32, i32, i32
  }
}

</mosaic_0001>

<bundles_post_ra>
// kernel: encoder_pallas.2
= control target key start
LH: loop header
LB: loop body
LE: loop exit
PB: predicated region body
PF: predicated region fallthrough
CT: control target
= control target key end

     0   :  { %s510_s12 = smov 0   ;;  %s571_s0 = inlined_call_operand.vmem [shape: f32[128,48], index: 0, kind: input, shape index: {}]   ;;  %s572_s1 = inlined_call_operand.vmem [shape: f32[48,16], index: 1, kind: input, shape index: {}]   ;;  %s573_s2 = inlined_call_operand.vmem [shape: f32[1,16], index: 2, kind: input, shape index: {}]   ;;  %s574_s3 = inlined_call_operand.vmem [shape: f32[128,16], index: 3, kind: output, shape index: {}]  }
   0x1 LB: > { %s398_s13 = sadd.s32 4294967295, %s488_s12   ;;  %p402_p0 = scmp.ge.s32.totalorder %s488_s12, 1  ;;  %s488_s12 = sphi %s510_s12, %s13_s12  }
   0x2   : > { %p138_p1 = scmp.lt.s32.totalorder %s488_s12, 3 }
   0x4   : > { %p139_p2 = pnand %p402_p0, %p138_p1 }
   0x5   : > { %v182_v0 = vld [vmem:[%s572_s1] sm:$0xff] (!%p139_p2)  ;;  %v183_v1 = vld [vmem:[%s572_s1 + $0x8] sm:$0xff] (!%p139_p2)  ;;  %v184_v2 = vld [vmem:[%s572_s1 + $0x10] sm:$0xff] (!%p139_p2)  ;;  %s403_s20 = sshll.u32 (!%p139_p2), %s398_s13, 3  ;;  %vm195_vm0 = vcmask (!%p139_p2), 392192   ;;  %vm333_vm1 = vcmask (!%p139_p2), 130048  }
   0x6   : > { %142 = sbr.rel (%p139_p2) target bundleno = 243 (0xf3), region = 32  ;;  %v456_v3 = vpack.c.bf16 (!%p139_p2), %v183_v1, %v182_v0  ;;  %v185_v4 = vld [vmem:[%s572_s1 + $0x18] sm:$0xff] (!%p139_p2)  ;;  %p163_p3 = scmp.lt.s32.totalorder (!%p139_p2), %s403_s20, 15  ;;  %v186_v6 = vld [vmem:[%s572_s1 + $0x20] sm:$0xff] (!%p139_p2)  ;;  %v187_v7 = vld [vmem:[%s572_s1 + $0x28] sm:$0xff] (!%p139_p2) }
   0x7   : > { %v460_v5 = vpack.c.bf16 (!%p139_p2), %v185_v4, %v184_v2  ;;  %v464_v8 = vpack.c.bf16 (!%p139_p2), %v187_v7, %v186_v6  ;;  %v407_v17 = vld [vmem:[%s573_s2] ss:$0 sm:$0xff] (!%p139_p2) }
   0x8   : > { %457 = vmatprep.subr.bf16.mxu0 (!%p139_p2), %v456_v3  ;;  %468 = vmatprep.subr.bf16.mxu1 (!%p139_p2), %v456_v3 }
   0x9   : > { %459 = vmatpush3.bf16.msra.mxu0 (!%p139_p2), %v456_v3  ;;  %471 = vmatpush3.bf16.msra.mxu1 (!%p139_p2), %v456_v3 }
   0xa   : > { %461 = vmatprep.subr.bf16.mxu0 (!%p139_p2), %v460_v5  ;;  %469 = vmatprep.subr.bf16.mxu1 (!%p139_p2), %v460_v5 }
   0xd   : > { %s576_s20 = smov (!%p163_p3, %s403_s20), 15  ;;  %463 = vmatpush3.bf16.msra.mxu0 %v460_v5  ;;  %472 = vmatpush3.bf16.msra.mxu1 %v460_v5 }
   0xe   : > { %s404_s27 = sshll.u32 %s576_s20, 3  ;;  %465 = vmatprep.subr.bf16.mxu0 %v464_v8  ;;  %470 = vmatprep.subr.bf16.mxu1 %v464_v8 }
   0xf   : > { %s166_s30 = scalar_lea.vmem %s571_s0, %s404_s27  ;;  %s172_s8 = scalar_lea.vmem %s574_s3, %s404_s27 }
  0x10   : > { %v174_v9 = vld [vmem:[%s166_s30] sm:$0xff]  ;;  %v175_v11 = vld [vmem:[%s166_s30 + $0x8] sm:$0xff]  ;;  %v176_v13 = vld [vmem:[%s166_s30 + $0x10] sm:$0xff] }
  0x11   : > { %v178_v10 = vld [vmem:[%s166_s30 + $0x20] sm:$0xff]  ;;  %444 = vmatprep.mubr.msk.f32.mxu0 %vm195_vm0, %v174_v9  ;;  %467 = vmatpush3.bf16.msra.mxu0 %v464_v8  ;;  %v179_v12 = vld [vmem:[%s166_s30 + $0x28] sm:$0xff]  ;;  %v180_v14 = vld [vmem:[%s166_s30 + $0x30] sm:$0xff] }
  0x12   : > { %450 = vmatprep.mubr.msk.f32.mxu1 %vm195_vm0, %v178_v10  ;;  %473 = vmatpush3.bf16.msra.mxu1 %v464_v8  ;;  %v177_v15 = vld [vmem:[%s166_s30 + $0x18] sm:$0xff] }
  0x13   : > { %v181_v16 = vld [vmem:[%s166_s30 + $0x38] sm:$0xff] }
  0x14   : > { %445 = vmatmul.mubr.msk.f32.vlgmr.msra.gmra.mrb[0].mxu0 %vm195_vm0, %v175_v11 }
  0x15   : > { %451 = vmatmul.mubr.msk.f32.vlgmr.msra.gmra.mrb[0].mxu1 %vm195_vm0, %v179_v12  ;;  %447 = vmatprep.mubr.msk.f32.mxu0 %vm195_vm0, %v176_v13 }
  0x16   : > { %453 = vmatprep.mubr.msk.f32.mxu1 %vm195_vm0, %v180_v14 }
  0x18   : > { %448 = vmatmul.mubr.msk.f32.gmra.mrb[2].mxu0 %vm195_vm0, %v177_v15 }
  0x19   : > { %454 = vmatmul.mubr.msk.f32.gmra.mrb[2].mxu1 %vm195_vm0, %v181_v16 }
  0xe7   : > { %v446_v18 = vpop.f32.mrb[0].mxu0 }
  0xe8   : > { %v452_v19 = vpop.f32.mrb[0].mxu1  ;;  %v292_v20 = vadd.f32 %v446_v18, %v407_v17  ;;  %v286_v22 = vpop.f32.mrb[1].mxu0 }
  0xe9   : > { %v312_v21 = vadd.f32 %v452_v19, %v407_v17  ;;  %v306_v23 = vpop.f32.mrb[1].mxu1  ;;  %v287_v24 = vadd.f32 %v407_v17, %v286_v22 }
  0xea   : > { %v307_v25 = vadd.f32 %v407_v17, %v306_v23  ;;  %v326_v26 = vmax.f32 %v292_v20, 0.0 }
  0xeb   : > { %v330_v27 = vmax.f32 %v312_v21, 0.0  ;;  %v325_v28 = vmax.f32 %v287_v24, 0.0  ;;  %v449_v30 = vpop.f32.mrb[2].mxu0 }
  0xec   : > { %v329_v29 = vmax.f32 %v307_v25, 0.0  ;;  %v455_v31 = vpop.f32.mrb[2].mxu1  ;;  %335 = vst.msk [vmem:[%s172_s8 + $0x8] sm:$0xff] %vm333_vm1, %v326_v26  ;;  %v302_v32 = vadd.f32 %v449_v30, %v407_v17  ;;  %v296_v34 = vpop.f32.mrb[3].mxu0 }
  0xed   : > { %339 = vst.msk [vmem:[%s172_s8 + $0x28] sm:$0xff] %vm333_vm1, %v330_v27  ;;  %v322_v33 = vadd.f32 %v455_v31, %v407_v17  ;;  %v316_v35 = vpop.f32.mrb[3].mxu1  ;;  %334 = vst.msk [vmem:[%s172_s8] sm:$0xff] %vm333_vm1, %v325_v28  ;;  %v297_v36 = vadd.f32 %v407_v17, %v296_v34 }
  0xee   : > { %338 = vst.msk [vmem:[%s172_s8 + $0x20] sm:$0xff] %vm333_vm1, %v329_v29  ;;  %v317_v37 = vadd.f32 %v407_v17, %v316_v35  ;;  %v328_v38 = vmax.f32 %v302_v32, 0.0 }
  0xef   : > { %v332_v39 = vmax.f32 %v322_v33, 0.0  ;;  %v327_v40 = vmax.f32 %v297_v36, 0.0 }
  0xf0   : > { %v331_v41 = vmax.f32 %v317_v37, 0.0  ;;  %337 = vst.msk [vmem:[%s172_s8 + $0x18] sm:$0xff] %vm333_vm1, %v328_v38 }
  0xf1   : > { %341 = vst.msk [vmem:[%s172_s8 + $0x38] sm:$0xff] %vm333_vm1, %v332_v39  ;;  %336 = vst.msk [vmem:[%s172_s8 + $0x10] sm:$0xff] %vm333_vm1, %v327_v40 }
  0xf2   : > { %340 = vst.msk [vmem:[%s172_s8 + $0x30] sm:$0xff] %vm333_vm1, %v331_v41 }
  0xf3 PF: > { %s13_s12 = sadd.s32 1, %s488_s12  }
  0xf4   : > { %p10_p4 = scmp.ge.s32.totalorder %s13_s12, 4  }
  0xf6   :  { %12 = sbr.rel (!%p10_p4) target bundleno = 1 (0x1), region = 62 }

// kernel: encoder_pallas.3
= control target key start
LH: loop header
LB: loop body
LE: loop exit
PB: predicated region body
PF: predicated region fallthrough
CT: control target
= control target key end

     0   :  { %s5856_s29 = smov 0   ;;  %s7040_s0 = inlined_call_operand.vmem [shape: f32[2,36,256], index: 0, kind: input, shape index: {}]   ;;  %s7041_s1 = inlined_call_operand.vmem [shape: f32[1,36,1], index: 1, kind: input, shape index: {}]   ;;  %s7042_s2 = inlined_call_operand.vmem [shape: f32[256,32], index: 2, kind: input, shape index: {}]   ;;  %s7043_s3 = inlined_call_operand.vmem [shape: f32[1,32], index: 3, kind: input, shape index: {}]   ;;  %s7044_s4 = inlined_call_operand.vmem [shape: f32[9,32,32], index: 4, kind: input, shape index: {}]   ;;  %s7045_s5 = inlined_call_operand.vmem [shape: f32[1,32], index: 5, kind: input, shape index: {}]   ;;  %s7046_s6 = inlined_call_operand.vmem [shape: f32[9,32,8], index: 6, kind: input, shape index: {}]   ;;  %s7047_s7 = inlined_call_operand.vmem [shape: f32[1,8], index: 7, kind: input, shape index: {}]   ;;  %s7048_s8 = inlined_call_operand.vmem [shape: f32[8,32], index: 8, kind: input, shape index: {}]   ;;  %s7049_s9 = inlined_call_operand.vmem [shape: f32[1,32], index: 9, kind: input, shape index: {}]   ;;  %s7050_s10 = inlined_call_operand.vmem [shape: f32[9,32,8], index: 10, kind: input, shape index: {}]   ;;  %s7051_s11 = inlined_call_operand.vmem [shape: f32[1,8], index: 11, kind: input, shape index: {}]   ;;  %s7052_s12 = inlined_call_operand.vmem [shape: f32[8,32], index: 12, kind: input, shape index: {}]   ;;  %s7053_s13 = inlined_call_operand.vmem [shape: f32[1,32], index: 13, kind: input, shape index: {}]   ;;  %s7054_s14 = inlined_call_operand.vmem [shape: f32[2,36,32], index: 14, kind: output, shape index: {}]  }
   0x1 LB: > { %s4342_s30 = sadd.s32 4294967295, %s5775_s29   ;;  %p4346_p0 = scmp.ge.s32.totalorder %s5775_s29, 1  ;;  %s5775_s29 = sphi %s5856_s29, %s24_s29  }
   0x2   : > { %p412_p1 = scmp.lt.s32.totalorder %s5775_s29, 3 }
   0x4   : > { %p413_p2 = pnand %p4346_p0, %p412_p1 }
   0x5   : > { %v508_v0 = vld [vmem:[%s7042_s2 + $0x80] sm:$0xff] (!%p413_p2)  ;;  %v509_v1 = vld [vmem:[%s7042_s2 + $0x88] sm:$0xff] (!%p413_p2)  ;;  %p458_p3 = scmp.lt.s32.totalorder (!%p413_p2), %s4342_s30, 1  ;;  %v510_v5 = vld [vmem:[%s7042_s2 + $0x90] sm:$0xff] (!%p413_p2)  ;;  %v5777_v7 = vmov (!%p413_p2), 0   ;;  %vm473_vm0 = vcmask (!%p413_p2), 261120  }
   0x6   : > { %416 = sbr.rel (%p413_p2) target bundleno = 1658 (0x67a), region = 76  ;;  %v492_v2 = vld [vmem:[%s7042_s2] sm:$0xff] (!%p413_p2)  ;;  %v5555_v3 = vpack.c.bf16 (!%p413_p2), %v509_v1, %v508_v0  ;;  %v493_v4 = vld [vmem:[%s7042_s2 + $0x8] sm:$0xff] (!%p413_p2)  ;;  %v511_v6 = vld [vmem:[%s7042_s2 + $0x98] sm:$0xff] (!%p413_p2)  ;;  %5768 = vset.pattern.permute.xlu1 (!%p413_p2), %v5777_v7  ;;  %5767 = vset.pattern.permute.xlu0 (!%p413_p2), %v5777_v7  ;;  %v5778_v0 = vmov (!%p413_p2), 0.0   ;;  %vm5780_vm1 = vmmov (!%p413_p2), 0  }
   0x7   : > { %v5557_v8 = vpack.c.bf16 (!%p413_p2), %v493_v4, %v492_v2  ;;  %v5559_v9 = vpack.c.bf16 (!%p413_p2), %v511_v6, %v510_v5  ;;  %v494_v10 = vld [vmem:[%s7042_s2 + $0x10] sm:$0xff] (!%p413_p2)  ;;  %v495_v11 = vld [vmem:[%s7042_s2 + $0x18] sm:$0xff] (!%p413_p2)  ;;  %v512_v12 = vld [vmem:[%s7042_s2 + $0xa0] sm:$0xff] (!%p413_p2)  ;;  %475 = vst.msk [vmem:[#allocation2 + $0x8] sm:$0xff] (!%p413_p2), %vm473_vm0, %v5778_v0  ;;  %v5779_v4 = vmov (!%p413_p2), 0.0|0.0   ;;  %4914 = vmatprep.mubr.msk.f32.mxu1 (!%p413_p2), %vm5780_vm1, %v5778_v0  ;;  %vm480_vm2 = vcmask (!%p413_p2), 254976  }
   0x8   : > { %5556 = vmatprep.subr.bf16.mxu0 (!%p413_p2), %v5555_v3  ;;  %v513_v13 = vld [vmem:[%s7042_s2 + $0xa8] sm:$0xff] (!%p413_p2)  ;;  %v5561_v14 = vpack.c.bf16 (!%p413_p2), %v495_v11, %v494_v10  ;;  %v496_v16 = vld [vmem:[%s7042_s2 + $0x20] sm:$0xff] (!%p413_p2)  ;;  %v514_v18 = vld [vmem:[%s7042_s2 + $0xb0] sm:$0xff] (!%p413_p2)  ;;  %476 = vst.msk [vmem:[#allocation2 + $0x10] sm:$0xff] (!%p413_p2), %vm473_vm0, %v5778_v0  ;;  %5749 = vmatprep.subr.bf16.mxu1 (!%p413_p2), %v5779_v4  ;;  %vm660_vm3 = vcmask (!%p413_p2), 257024   ;;  %vm2885_vm4 = vcmask (!%p413_p2), 64512  }
   0x9   : > { %5558 = vmatpush3.bf16.msra.mxu0 (!%p413_p2), %v5557_v8  ;;  %v5563_v15 = vpack.c.bf16 (!%p413_p2), %v513_v13, %v512_v12  ;;  %v497_v17 = vld [vmem:[%s7042_s2 + $0x28] sm:$0xff] (!%p413_p2)  ;;  %v515_v19 = vld [vmem:[%s7042_s2 + $0xb8] sm:$0xff] (!%p413_p2)  ;;  %v498_v22 = vld [vmem:[%s7042_s2 + $0x30] sm:$0xff] (!%p413_p2)  ;;  %474 = vst.msk [vmem:[#allocation2] sm:$0xff] (!%p413_p2), %vm473_vm0, %v5778_v0 }
   0xa   : > { %5560 = vmatprep.subr.bf16.mxu0 (!%p413_p2), %v5559_v9  ;;  %v5565_v20 = vpack.c.bf16 (!%p413_p2), %v497_v17, %v496_v16  ;;  %v5567_v21 = vpack.c.bf16 (!%p413_p2), %v515_v19, %v514_v18  ;;  %v499_v23 = vld [vmem:[%s7042_s2 + $0x38] sm:$0xff] (!%p413_p2)  ;;  %v516_v24 = vld [vmem:[%s7042_s2 + $0xc0] sm:$0xff] (!%p413_p2)  ;;  %v517_v25 = vld [vmem:[%s7042_s2 + $0xc8] sm:$0xff] (!%p413_p2)  ;;  %477 = vst.msk [vmem:[#allocation2 + $0x18] sm:$0xff] (!%p413_p2), %vm473_vm0, %v5778_v0 }
   0xb   : > { %v5569_v27 = vpack.c.bf16 (!%p413_p2), %v499_v23, %v498_v22  ;;  %v5571_v28 = vpack.c.bf16 (!%p413_p2), %v517_v25, %v516_v24  ;;  %v500_v29 = vld [vmem:[%s7042_s2 + $0x40] sm:$0xff] (!%p413_p2)  ;;  %v501_v30 = vld [vmem:[%s7042_s2 + $0x48] sm:$0xff] (!%p413_p2)  ;;  %v518_v31 = vld [vmem:[%s7042_s2 + $0xd0] sm:$0xff] (!%p413_p2)  ;;  %478 = vst.msk [vmem:[#allocation2 + $0x20] sm:$0xff] (!%p413_p2), %vm473_vm0, %v5778_v0 }
   0xc   : > { %v519_v32 = vld [vmem:[%s7042_s2 + $0xd8] sm:$0xff] (!%p413_p2)  ;;  %v469_v34 = vld [vmem:[%s7041_s1 + $0x8] sm:$0xff] (!%p413_p2)  ;;  %v5573_v35 = vpack.c.bf16 (!%p413_p2), %v501_v30, %v500_v29  ;;  %v470_v36 = vld [vmem:[%s7041_s1 + $0x10] sm:$0xff] (!%p413_p2)  ;;  %479 = vst.msk [vmem:[#allocation2 + $0x28] sm:$0xff] (!%p413_p2), %vm473_vm0, %v5778_v0 }
   0xd   : > { %s7056_s30 = smov (!%p458_p3, %s4342_s30), 1  ;;  %5562 = vmatpush3.bf16.msra.mxu0 %v5561_v14  ;;  %v471_v33 = vld [vmem:[%s7041_s1 + $0x18] sm:$0xff]  ;;  %633 = vperm.xlu0 %5767, %v469_v34   ;;  %v468_v37 = vld [vmem:[%s7041_s1] sm:$0xff]  ;;  %v5575_v38 = vpack.c.bf16 %v519_v32, %v518_v31  ;;  %v502_v39 = vld [vmem:[%s7042_s2 + $0x50] sm:$0xff]  ;;  %481 = vst.msk [vmem:[#allocation2 + $0x30] sm:$0x3] %vm480_vm2, %v5778_v0 }
   0xe   : > { %s5753_s21 = smul.u32 80, %s7056_s30  ;;  %5564 = vmatprep.subr.bf16.mxu0 %v5563_v15  ;;  %643 = vperm.xlu1 %5768, %v471_v33   ;;  %v503_v40 = vld [vmem:[%s7042_s2 + $0x58] sm:$0xff]  ;;  %v520_v41 = vld [vmem:[%s7042_s2 + $0xe0] sm:$0xff]  ;;  %v521_v42 = vld [vmem:[%s7042_s2 + $0xe8] sm:$0xff] }
   0xf   : > { %v5577_v43 = vpack.c.bf16 %v503_v40, %v502_v39  ;;  %v472_v44 = vld [vmem:[%s7041_s1 + $0x20] sm:$0xf]  ;;  %v5579_v45 = vpack.c.bf16 %v521_v42, %v520_v41  ;;  %v505_v47 = vld [vmem:[%s7042_s2 + $0x68] sm:$0xff]  ;;  %v522_v48 = vld [vmem:[%s7042_s2 + $0xf0] sm:$0xff]  ;;  %s5754_s20 = smul.u32 40, %s7056_s30 }
  0x10   : > { %s5912_s18 = scalar_lea.vmem %s7040_s0, %s5753_s21  ;;  %v504_v46 = vld [vmem:[%s7042_s2 + $0x60] sm:$0xff]  ;;  %v523_v49 = vld [vmem:[%s7042_s2 + $0xf8] sm:$0xff]  ;;  %v506_v52 = vld [vmem:[%s7042_s2 + $0x70] sm:$0xff] }
  0x11   : > { %v483_v26 = vld [vmem:[%s5912_s18 + $0x8] sm:$0xff]  ;;  %5566 = vmatpush3.bf16.msra.mxu0 %v5565_v20  ;;  %638 = vperm.xlu0 %5767, %v470_v36   ;;  %v5581_v50 = vpack.c.bf16 %v505_v47, %v504_v46  ;;  %v5583_v51 = vpack.c.bf16 %v523_v49, %v522_v48  ;;  %v507_v53 = vld [vmem:[%s7042_s2 + $0x78] sm:$0xff]  ;;  %v482_v55 = vld [vmem:[%s5912_s18] sm:$0xff]  ;;  %s467_s24 = scalar_lea.vmem %s7054_s14, %s5754_s20 }
  0x12   : > { %595 = vmatprep.mubr.f32.mxu0 %v483_v26  ;;  %5568 = vmatprep.subr.bf16.mxu0 %v5567_v21  ;;  %v5585_v54 = vpack.c.bf16 %v507_v53, %v506_v52  ;;  %v485_v56 = vld [vmem:[%s5912_s18 + $0x18] sm:$0xff]  ;;  %v484_v57 = vld [vmem:[%s5912_s18 + $0x10] sm:$0xff]  ;;  %v487_v58 = vld [vmem:[%s5912_s18 + $0x28] sm:$0xff] }
  0x13   : > { %628 = vperm.xlu1 %5768, %v468_v37   ;;  %v486_v59 = vld [vmem:[%s5912_s18 + $0x20] sm:$0xff]  ;;  %v489_v60 = vld [vmem:[%s5912_s18 + $0x38] sm:$0xff]  ;;  %v488_v61 = vld [vmem:[%s5912_s18 + $0x30] sm:$0xff] }
  0x14   : > { %v491_v62 = vld [vmem:[%s5912_s18 + $0x48] sm:$0xf]  ;;  %v490_v63 = vld [vmem:[%s5912_s18 + $0x40] sm:$0xf]  ;;  %v4352_v5 = vld [vmem:[%s7044_s4 + $0x30] sm:$0xff] }
  0x15   : > { %5570 = vmatpush3.bf16.msra.mxu0 %v5569_v27  ;;  %648 = vperm.xlu0 %5767, %v472_v44   ;;  %v4350_v1 = vld [vmem:[%s7044_s4 + $0x20] sm:$0xff]  ;;  %v4351_v2 = vld [vmem:[%s7044_s4 + $0x28] sm:$0xff]  ;;  %v4353_v6 = vld [vmem:[%s7044_s4 + $0x38] sm:$0xff] }
  0x16   : > { %5572 = vmatprep.subr.bf16.mxu0 %v5571_v28  ;;  %v5588_v3 = vpack.c.bf16 %v4351_v2, %v4350_v1  ;;  %v5591_v7 = vpack.c.bf16 %v4353_v6, %v4352_v5  ;;  %v4349_v10 = vld [vmem:[%s7043_s3] ss:$0 sm:$0xff]  ;;  %v4374_v30 = vld [vmem:[%s7044_s4 + $0x68] sm:$0xff]  ;;  %v4375_v39 = vld [vmem:[%s7044_s4 + $0x70] sm:$0xff] }
  0x17   : > { %v4373_v29 = vld [vmem:[%s7044_s4 + $0x60] sm:$0xff]  ;;  %v4376_v40 = vld [vmem:[%s7044_s4 + $0x78] sm:$0xff]  ;;  %v668_v49 = vld [vmem:[%s7044_s4 + $0x8] sm:$0xff] }
  0x18   : > { %5751 = vmatpush3.bf16.msra.mxu1 %v5588_v3  ;;  %v667_v48 = vld [vmem:[%s7044_s4] sm:$0xff]  ;;  %v4392_v53 = vld [vmem:[%s7044_s4 + $0xa8] sm:$0xff] }
  0x19   : > { %5574 = vmatpush3.bf16.msra.mxu0 %v5573_v35  ;;  %5750 = vmatprep.subr.bf16.mxu1 %v5779_v4  ;;  %v5606_v35 = vpack.c.bf16 %v4374_v30, %v4373_v29  ;;  %v4391_v52 = vld [vmem:[%s7044_s4 + $0xa0] sm:$0xff]  ;;  %v4365_v6 = vld [vmem:[%s7044_s4 + $0x48] sm:$0xff] }
  0x1a   : > { %5576 = vmatprep.subr.bf16.mxu0 %v5575_v38  ;;  %v4364_v5 = vld [vmem:[%s7044_s4 + $0x40] sm:$0xff]  ;;  %v4383_v30 = vld [vmem:[%s7044_s4 + $0x88] sm:$0xff] }
  0x1b   : > { %v4382_v29 = vld [vmem:[%s7044_s4 + $0x80] sm:$0xff] }
  0x1c   : > { %5752 = vmatpush3.bf16.msra.mxu1 %v5591_v7 }
  0x1d   : > { %5578 = vmatpush3.bf16.msra.mxu0 %v5577_v43  ;;  %5593 = vmatprep.subr.bf16.mxu1 %v5779_v4 }
  0x1e   : > { %5580 = vmatprep.subr.bf16.mxu0 %v5579_v45  ;;  %v5609_v45 = vpack.c.bf16 %v4376_v40, %v4375_v39 }
  0x21   : > { %5582 = vmatpush3.bf16.msra.mxu0 %v5581_v50 }
  0x22   : > { %5584 = vmatprep.subr.bf16.mxu0 %v5583_v51 }
  0x25   : > { %5586 = vmatpush3.bf16.msra.mxu0 %v5585_v54 }
  0x26   : > { %5587 = vmatprep.subr.bf16.mxu0 %v5779_v4 }
  0x28   : > { %596 = vmatmul.mubr.f32.vlgmr.msra.gmra.mrb[0].mxu0 %v482_v55  ;;  %v5594_v55 = vpack.c.bf16 %v668_v49, %v667_v48 }
  0x29   : > { %600 = vmatprep.mubr.f32.mxu0 %v485_v56  ;;  %5589 = vmatpush3.bf16.msra.mxu0 %v5588_v3  ;;  %v4394_v3 = vld [vmem:[%s7044_s4 + $0xb8] sm:$0xff] }
  0x2a   : > { %5590 = vmatprep.subr.bf16.mxu0 %v5779_v4 }
  0x2c   : > { %601 = vmatmul.mubr.f32.gmra.mrb[2].mxu0 %v484_v57  ;;  %v669_v57 = vld [vmem:[%s7044_s4 + $0x10] sm:$0xff] }
  0x2d   : > { %605 = vmatprep.mubr.f32.mxu0 %v487_v58  ;;  %5592 = vmatpush3.bf16.msra.mxu0 %v5591_v7  ;;  %v670_v58 = vld [vmem:[%s7044_s4 + $0x18] sm:$0xff] }
  0x2e   : > { %5605 = vmatprep.subr.bf16.mxu0 %v5779_v4 }
  0x30   : > { %606 = vmatmul.mubr.f32.gmra.mrb[4].mxu0 %v486_v59 }
  0x31   : > { %610 = vmatprep.mubr.f32.mxu0 %v489_v60 }
  0x34   : > { %611 = vmatmul.mubr.f32.gmra.mrb[6].mxu0 %v488_v61  ;;  %v5618_v61 = vpack.c.bf16 %v4392_v53, %v4391_v52 }
  0x35   : > { %615 = vmatprep.mubr.f32.mxu0 %v491_v62  ;;  %v5597_v62 = vpack.c.bf16 %v670_v58, %v669_v57 }
  0x38   : > { %616 = vmatmul.mubr.f32.gmra.mrb[8].mxu0 %v490_v63  ;;  %v4393_v63 = vld [vmem:[%s7044_s4 + $0xb0] sm:$0xff] }
  0x39   : > { %4908 = vmatprep.mubr.msk.f32.mxu0 %vm5780_vm1, %v5778_v0  ;;  %v5621_v7 = vpack.c.bf16 %v4394_v3, %v4393_v63  ;;  %v4421_v3 = vld [vmem:[%s7044_s4 + $0x118] sm:$0xff] }
  0x8c   : > { %v6036_v22 = vpop.permute.xlu0 %633 }
  0x8d   : > { %v6028_v8 = vpop.permute.xlu1 %643 }
  0x90   : > { %v6047_v34 = vpop.permute.xlu0 %638 }
  0x92   : > { %v6033_v16 = vpop.permute.xlu1 %628 }
  0x94   : > { %v6076_v54 = vpop.permute.xlu0 %648 }
  0xfb   : > { %v4630_v9 = vpop.f32.mrb[0].mxu0 }
  0xfc   : > { %v4631_v11 = vpop.f32.mrb[1].mxu0 }
  0xfd   : > { %v4632_v12 = vadd.f32 %v4631_v11, %v4630_v9  ;;  %v5600_v11 = vpack.c.bf16 %v4365_v6, %v4364_v5 }
  0xff   : > { %v598_v13 = vadd.f32 %v4632_v12, %v4349_v10  ;;  %v4633_v14 = vpop.f32.mrb[2].mxu0  ;;  %v4366_v12 = vld [vmem:[%s7044_s4 + $0x50] sm:$0xff] }
 0x100   : > { %v4634_v15 = vpop.f32.mrb[3].mxu0 }
 0x101   : > { %v621_v17 = vmax.f32 %v598_v13, 0.0  ;;  %v4635_v18 = vadd.f32 %v4634_v15, %v4633_v14  ;;  %v4367_v15 = vld [vmem:[%s7044_s4 + $0x58] sm:$0xff] }
 0x103   : > { %v603_v19 = vadd.f32 %v4635_v18, %v4349_v10  ;;  %v651_v20 = vmul.f32 %v6033_v16, %v621_v17  ;;  %v4636_v21 = vpop.f32.mrb[4].mxu0  ;;  %v5603_v17 = vpack.c.bf16 %v4367_v15, %v4366_v12  ;;  %v4409_v18 = vld [vmem:[%s7044_s4 + $0xe0] sm:$0xff]  ;;  %v1375_v12 = vld [vmem:[#allocation2 + $0x2c] sm:$0xf] }
 0x104   : > { %v4637_v23 = vpop.f32.mrb[5].mxu0 }
 0x105   : > { %v622_v24 = vmax.f32 %v603_v19, 0.0  ;;  %656 = vst.msk [vmem:[#allocation2 + $0x7] sm:$0xff] %vm473_vm0, %v651_v20  ;;  %v4638_v25 = vadd.f32 %v4637_v23, %v4636_v21  ;;  %v4410_v21 = vld [vmem:[%s7044_s4 + $0xe8] sm:$0xff] }
 0x106   : > { %v5630_v23 = vpack.c.bf16 %v4410_v21, %v4409_v18  ;;  %v1764_v18 = vld [vmem:[%s7046_s6 + $0x8] sm:$0xff] }
 0x107   : > { %v652_v26 = vmul.f32 %v6036_v22, %v622_v24  ;;  %v608_v27 = vadd.f32 %v4638_v25, %v4349_v10  ;;  %v4639_v28 = vpop.f32.mrb[6].mxu0  ;;  %v4411_v25 = vld [vmem:[%s7044_s4 + $0xf0] sm:$0xff] }
 0x108   : > { %v4640_v31 = vpop.f32.mrb[7].mxu0 }
 0x109   : > { %657 = vst.msk [vmem:[#allocation2 + $0xf] sm:$0xff] %vm473_vm0, %v652_v26  ;;  %v623_v32 = vmax.f32 %v608_v27, 0.0  ;;  %v4641_v33 = vadd.f32 %v4640_v31, %v4639_v28  ;;  %v4412_v26 = vld [vmem:[%s7044_s4 + $0xf8] sm:$0xff] }
 0x10a   : > { %v5633_v27 = vpack.c.bf16 %v4412_v26, %v4411_v25  ;;  %v1766_v25 = vld [vmem:[%s7046_s6 + $0x18] sm:$0xff] }
 0x10b   : > { %v653_v36 = vmul.f32 %v6047_v34, %v623_v32  ;;  %v613_v37 = vadd.f32 %v4641_v33, %v4349_v10  ;;  %v4642_v38 = vpop.f32.mrb[8].mxu0  ;;  %v5612_v32 = vpack.c.bf16 %v4383_v30, %v4382_v29  ;;  %v4384_v33 = vld [vmem:[%s7044_s4 + $0x90] sm:$0xff] }
 0x10c   : > { %v4643_v41 = vpop.f32.mrb[9].mxu0  ;;  %v671_v42 = vld [vmem:[#allocation2 + $0x1] sm:$0xff] }
 0x10d   : > { %658 = vst.msk [vmem:[#allocation2 + $0x17] sm:$0xff] %vm473_vm0, %v653_v36  ;;  %v624_v43 = vmax.f32 %v613_v37, 0.0  ;;  %v4644_v44 = vadd.f32 %v4643_v41, %v4642_v38  ;;  %4909 = vmatmul.mubr.msk.f32.vlgmr.msra.gmra.mrb[10].mxu0 %vm473_vm0, %v671_v42  ;;  %v1011_v60 = vld [vmem:[#allocation2 + $0x6] sm:$0xff]  ;;  %v4385_v37 = vld [vmem:[%s7044_s4 + $0x98] sm:$0xff] }
 0x10e   : > { %5607 = vmatpush3.bf16.msra.mxu0 %v5606_v35  ;;  %4911 = vmatprep.mubr.msk.f32.mxu0 %vm5780_vm1, %v5778_v0  ;;  %v662_v13 = vld [vmem:[#allocation2] sm:$0xff]  ;;  %v5615_v38 = vpack.c.bf16 %v4385_v37, %v4384_v33 }
 0x10f   : > { %v654_v46 = vmul.f32 %v6028_v8, %v624_v43  ;;  %v618_v47 = vadd.f32 %v4644_v44, %v4349_v10  ;;  %5608 = vmatprep.subr.bf16.mxu0 %v5779_v4  ;;  %v891_v35 = vld [vmem:[#allocation2 + $0x2] sm:$0xff] }
 0x110   : > { %v672_v50 = vld [vmem:[#allocation2 + $0x9] sm:$0xff] }
 0x111   : > { %659 = vst.msk [vmem:[#allocation2 + $0x1f] sm:$0xff] %vm473_vm0, %v654_v46  ;;  %v625_v51 = vmax.f32 %v618_v47, 0.0  ;;  %4912 = vmatmul.mubr.msk.f32.gmra.mrb[12].mxu0 %vm473_vm0, %v672_v50  ;;  %v6099_v2 = vld [vmem:[#allocation2 + $0xe] sm:$0xff] }
 0x112   : > { %5610 = vmatpush3.bf16.msra.mxu0 %v5609_v45  ;;  %4977 = vmatprep.mubr.msk.f32.mxu0 %vm5780_vm1, %v5778_v0  ;;  %v663_v19 = vld [vmem:[#allocation2 + $0x8] sm:$0xff]  ;;  %v4400_v45 = vld [vmem:[%s7044_s4 + $0xc0] sm:$0xff]  ;;  %v4402_v50 = vld [vmem:[%s7044_s4 + $0xd0] sm:$0xff] }
 0x113   : > { %v655_v56 = vmul.f32 %v6076_v54, %v625_v51  ;;  %5617 = vmatprep.subr.bf16.mxu0 %v5779_v4  ;;  %v892_v39 = vld [vmem:[#allocation2 + $0xa] sm:$0xff]  ;;  %v4403_v51 = vld [vmem:[%s7044_s4 + $0xd8] sm:$0xff] }
 0x114   : > { %v673_v59 = vld [vmem:[#allocation2 + $0x11] sm:$0xff]  ;;  %v4401_v46 = vld [vmem:[%s7044_s4 + $0xc8] sm:$0xff] }
 0x115   : > { %661 = vst.msk [vmem:[#allocation2 + $0x27] sm:$0xf] %vm660_vm3, %v655_v56  ;;  %4915 = vmatmul.mubr.msk.f32.vlgmr.msra.gmra.mrb[0].mxu1 %vm473_vm0, %v673_v59  ;;  %4978 = vmatmul.mubr.msk.f32.vlgmr.msra.gmra.mrb[14].mxu0 %vm473_vm0, %v1011_v60  ;;  %v6118_v10 = vld [vmem:[#allocation2 + $0x16] sm:$0xff]  ;;  %v1491_v42 = vld [vmem:[#allocation2 + $0xd] sm:$0xff]  ;;  %v5624_v49 = vpack.c.bf16 %v4401_v46, %v4400_v45  ;;  %v4418_v60 = vld [vmem:[%s7044_s4 + $0x100] sm:$0xff] }
 0x116   : > { %5595 = vmatpush3.bf16.msra.mxu1 %v5594_v55  ;;  %4917 = vmatprep.mubr.msk.f32.mxu1 %vm5780_vm1, %v5778_v0  ;;  %v664_v24 = vld [vmem:[#allocation2 + $0x10] sm:$0xff]  ;;  %v1131_v52 = vld [vmem:[#allocation2 + $0x7] sm:$0xff]  ;;  %v5627_v55 = vpack.c.bf16 %v4403_v51, %v4402_v50 }
 0x117   : > { %4980 = vmatprep.mubr.msk.f32.mxu0 %vm5780_vm1, %v5778_v0  ;;  %5596 = vmatprep.subr.bf16.mxu1 %v5779_v4  ;;  %v893_v41 = vld [vmem:[#allocation2 + $0x12] sm:$0xff]  ;;  %v1495_v56 = vld [vmem:[#allocation2 + $0x2d] sm:$0xf] }
 0x118   : > { %v674_v1 = vld [vmem:[#allocation2 + $0x19] sm:$0xff]  ;;  %5619 = vmatpush3.bf16.msra.mxu0 %v5618_v61  ;;  %v675_v9 = vld [vmem:[#allocation2 + $0x21] sm:$0xf]  ;;  %v1132_v57 = vld [vmem:[#allocation2 + $0xf] sm:$0xff] }
 0x119   : > { %4918 = vmatmul.mubr.msk.f32.gmra.mrb[2].mxu1 %vm473_vm0, %v674_v1  ;;  %4981 = vmatmul.mubr.msk.f32.gmra.mrb[16].mxu0 %vm473_vm0, %v6099_v2  ;;  %v6131_v14 = vld [vmem:[#allocation2 + $0x1e] sm:$0xff]  ;;  %v1492_v44 = vld [vmem:[#allocation2 + $0x15] sm:$0xff]  ;;  %v4419_v61 = vld [vmem:[%s7044_s4 + $0x108] sm:$0xff] }
 0x11a   : > { %5598 = vmatpush3.bf16.msra.mxu1 %v5597_v62  ;;  %4920 = vmatprep.mubr.msk.f32.mxu1 %vm5780_vm1, %v5778_v0  ;;  %v665_v28 = vld [vmem:[#allocation2 + $0x18] sm:$0xff]  ;;  %v666_v31 = vld [vmem:[#allocation2 + $0x20] sm:$0xf]  ;;  %v5636_v63 = vpack.c.bf16 %v4419_v61, %v4418_v60  ;;  %v4420_v1 = vld [vmem:[%s7044_s4 + $0x110] sm:$0xff] }
 0x11b   : > { %4983 = vmatprep.mubr.msk.f32.mxu0 %vm5780_vm1, %v5778_v0  ;;  %5599 = vmatprep.subr.bf16.mxu1 %v5779_v4  ;;  %v894_v43 = vld [vmem:[#allocation2 + $0x1a] sm:$0xff]  ;;  %v895_v47 = vld [vmem:[#allocation2 + $0x22] sm:$0xf]  ;;  %v1371_v5 = vld [vmem:[#allocation2 + $0xc] sm:$0xff]  ;;  %v5639_v6 = vpack.c.bf16 %v4421_v3, %v4420_v1 }
 0x11c   : > { %5620 = vmatprep.subr.bf16.mxu0 %v5779_v4  ;;  %v1015_v20 = vld [vmem:[#allocation2 + $0x26] sm:$0xf]  ;;  %v1493_v48 = vld [vmem:[#allocation2 + $0x1d] sm:$0xff] }
 0x11d   : > { %4921 = vmatmul.mubr.msk.f32.gmra.mrb[4].mxu1 %vm473_vm0, %v675_v9  ;;  %4984 = vmatmul.mubr.msk.f32.gmra.mrb[18].mxu0 %vm473_vm0, %v6118_v10  ;;  %v1254_v36 = vld [vmem:[#allocation2 + $0x20] sm:$0xff]  ;;  %v1255_v40 = vld [vmem:[#allocation2 + $0x28] sm:$0xf]  ;;  %v1133_v58 = vld [vmem:[#allocation2 + $0x17] sm:$0xff] }
 0x11e   : > { %4931 = vmatprep.mubr.msk.f32.mxu1 %vm5780_vm1, %v5778_v0  ;;  %4986 = vmatprep.mubr.msk.f32.mxu0 %vm5780_vm1, %v5778_v0  ;;  %v1494_v53 = vld [vmem:[#allocation2 + $0x25] sm:$0xff]  ;;  %v1373_v9 = vld [vmem:[#allocation2 + $0x1c] sm:$0xff] }
 0x11f   : > { %5622 = vmatpush3.bf16.msra.mxu0 %v5621_v7  ;;  %v1134_v59 = vld [vmem:[#allocation2 + $0x1f] sm:$0xff]  ;;  %v1135_v62 = vld [vmem:[#allocation2 + $0x27] sm:$0xf]  ;;  %v1372_v7 = vld [vmem:[#allocation2 + $0x14] sm:$0xff] }
 0x120   : > { %5629 = vmatprep.subr.bf16.mxu0 %v5779_v4 }
 0x121   : > { %4932 = vmatmul.mubr.msk.f32.vlgmr.msra.gmra.mrb[6].mxu1 %vm473_vm0, %v662_v13  ;;  %4987 = vmatmul.mubr.msk.f32.gmra.mrb[20].mxu0 %vm473_vm0, %v6131_v14  ;;  %v1614_v13 = vld [vmem:[#allocation2 + $0x26] sm:$0xff] }
 0x122   : > { %5601 = vmatpush3.bf16.msra.mxu1 %v5600_v11  ;;  %4934 = vmatprep.mubr.msk.f32.mxu1 %vm5780_vm1, %v5778_v0  ;;  %v1374_v11 = vld [vmem:[#allocation2 + $0x24] sm:$0xff] }
 0x123   : > { %4989 = vmatprep.mubr.msk.f32.mxu0 %vm5780_vm1, %v5778_v0  ;;  %5602 = vmatprep.subr.bf16.mxu1 %v5779_v4 }
 0x125   : > { %4935 = vmatmul.mubr.msk.f32.gmra.mrb[8].mxu1 %vm473_vm0, %v663_v19  ;;  %4990 = vmatmul.mubr.msk.f32.gmra.mrb[22].mxu0 %vm473_vm0, %v1015_v20  ;;  %v4431_v20 = vld [vmem:[%s7046_s6 + $0x38] sm:$0xff] }
 0x126   : > { %4937 = vmatprep.mubr.msk.f32.mxu1 %vm5780_vm1, %v5778_v0  ;;  %5023 = vmatprep.mubr.msk.f32.mxu0 %vm5780_vm1, %v5778_v0 }
 0x127   : > { %5604 = vmatpush3.bf16.msra.mxu1 %v5603_v17  ;;  %v1763_v17 = vld [vmem:[%s7046_s6] sm:$0xff] }
 0x128   : > { %5611 = vmatprep.subr.bf16.mxu1 %v5779_v4  ;;  %v5648_v21 = vpack.c.bf16 %v1764_v18, %v1763_v17 }
 0x129   : > { %4938 = vmatmul.mubr.msk.f32.gmra.mrb[10].mxu1 %vm473_vm0, %v664_v24  ;;  %5024 = vmatmul.mubr.msk.f32.vlgmr.msra.gmra.mrb[24].mxu0 %vm473_vm0, %v663_v19  ;;  %v4430_v19 = vld [vmem:[%s7046_s6 + $0x30] sm:$0xff] }
 0x12a   : > { %4940 = vmatprep.mubr.msk.f32.mxu1 %vm5780_vm1, %v5778_v0  ;;  %5026 = vmatprep.mubr.msk.f32.mxu0 %vm5780_vm1, %v5778_v0 }
 0x12b   : > { %5631 = vmatpush3.bf16.msra.mxu0 %v5630_v23  ;;  %v5645_v23 = vpack.c.bf16 %v4431_v20, %v4430_v19 }
 0x12c   : > { %5632 = vmatprep.subr.bf16.mxu0 %v5779_v4 }
 0x12d   : > { %4941 = vmatmul.mubr.msk.f32.gmra.mrb[12].mxu1 %vm473_vm0, %v665_v28  ;;  %5027 = vmatmul.mubr.msk.f32.gmra.mrb[26].mxu0 %vm473_vm0, %v664_v24  ;;  %v1765_v24 = vld [vmem:[%s7046_s6 + $0x10] sm:$0xff] }
 0x12e   : > { %4943 = vmatprep.mubr.msk.f32.mxu1 %vm5780_vm1, %v5778_v0  ;;  %5029 = vmatprep.mubr.msk.f32.mxu0 %vm5780_vm1, %v5778_v0  ;;  %v5651_v26 = vpack.c.bf16 %v1766_v25, %v1765_v24 }
 0x12f   : > { %5634 = vmatpush3.bf16.msra.mxu0 %v5633_v27 }
 0x130   : > { %5641 = vmatprep.subr.bf16.mxu0 %v5779_v4 }
 0x131   : > { %4944 = vmatmul.mubr.msk.f32.gmra.mrb[14].mxu1 %vm473_vm0, %v666_v31  ;;  %5030 = vmatmul.mubr.msk.f32.gmra.mrb[28].mxu0 %vm473_vm0, %v665_v28 }
 0x132   : > { %4954 = vmatprep.mubr.msk.f32.mxu1 %vm5780_vm1, %v5778_v0  ;;  %5032 = vmatprep.mubr.msk.f32.mxu0 %vm5780_vm1, %v5778_v0 }
 0x135   : > { %4955 = vmatmul.mubr.msk.f32.vlgmr.msra.gmra.mrb[16].mxu1 %vm473_vm0, %v891_v35  ;;  %5033 = vmatmul.mubr.msk.f32.gmra.mrb[30].mxu0 %vm473_vm0, %v1254_v36 }
 0x136   : > { %5613 = vmatpush3.bf16.msra.mxu1 %v5612_v32  ;;  %4957 = vmatprep.mubr.msk.f32.mxu1 %vm5780_vm1, %v5778_v0 }
 0x137   : > { %5035 = vmatprep.mubr.msk.f32.mxu0 %vm5780_vm1, %v5778_v0  ;;  %5614 = vmatprep.subr.bf16.mxu1 %v5779_v4 }
 0x139   : > { %4958 = vmatmul.mubr.msk.f32.gmra.mrb[18].mxu1 %vm473_vm0, %v892_v39  ;;  %5036 = vmatmul.mubr.msk.f32.gmra.mrb[32].mxu0 %vm473_vm0, %v1255_v40 }
 0x13a   : > { %4960 = vmatprep.mubr.msk.f32.mxu1 %vm5780_vm1, %v5778_v0  ;;  %5069 = vmatprep.mubr.msk.f32.mxu0 %vm5780_vm1, %v5778_v0 }
 0x13b   : > { %5616 = vmatpush3.bf16.msra.mxu1 %v5615_v38 }
 0x13c   : > { %5623 = vmatprep.subr.bf16.mxu1 %v5779_v4 }
 0x13d   : > { %4961 = vmatmul.mubr.msk.f32.gmra.mrb[20].mxu1 %vm473_vm0, %v893_v41  ;;  %5070 = vmatmul.mubr.msk.f32.vlgmr.msra.gmra.mrb[34].mxu0 %vm473_vm0, %v1491_v42 }
 0x13e   : > { %4963 = vmatprep.mubr.msk.f32.mxu1 %vm5780_vm1, %v5778_v0  ;;  %5072 = vmatprep.mubr.msk.f32.mxu0 %vm5780_vm1, %v5778_v0 }
 0x141   : > { %4964 = vmatmul.mubr.msk.f32.gmra.mrb[22].mxu1 %vm473_vm0, %v894_v43  ;;  %5073 = vmatmul.mubr.msk.f32.gmra.mrb[36].mxu0 %vm473_vm0, %v1492_v44 }
 0x142   : > { %4966 = vmatprep.mubr.msk.f32.mxu1 %vm5780_vm1, %v5778_v0  ;;  %5075 = vmatprep.mubr.msk.f32.mxu0 %vm5780_vm1, %v5778_v0 }
 0x145   : > { %4967 = vmatmul.mubr.msk.f32.gmra.mrb[24].mxu1 %vm473_vm0, %v895_v47  ;;  %5076 = vmatmul.mubr.msk.f32.gmra.mrb[38].mxu0 %vm473_vm0, %v1493_v48 }
 0x146   : > { %5000 = vmatprep.mubr.msk.f32.mxu1 %vm5780_vm1, %v5778_v0  ;;  %5078 = vmatprep.mubr.msk.f32.mxu0 %vm5780_vm1, %v5778_v0 }
 0x149   : > { %5001 = vmatmul.mubr.msk.f32.vlgmr.msra.gmra.mrb[26].mxu1 %vm473_vm0, %v1131_v52  ;;  %5079 = vmatmul.mubr.msk.f32.gmra.mrb[40].mxu0 %vm473_vm0, %v1494_v53 }
 0x14a   : > { %5625 = vmatpush3.bf16.msra.mxu1 %v5624_v49  ;;  %5003 = vmatprep.mubr.msk.f32.mxu1 %vm5780_vm1, %v5778_v0 }
 0x14b   : > { %5626 = vmatprep.subr.bf16.mxu1 %v5779_v4  ;;  %5081 = vmatprep.mubr.msk.f32.mxu0 %vm5780_vm1, %v5778_v0 }
 0x14d   : > { %5004 = vmatmul.mubr.msk.f32.gmra.mrb[28].mxu1 %vm473_vm0, %v1132_v57  ;;  %5082 = vmatmul.mubr.msk.f32.gmra.mrb[42].mxu0 %vm473_vm0, %v1495_v56 }
 0x14e   : > { %5006 = vmatprep.mubr.msk.f32.mxu1 %vm5780_vm1, %v5778_v0  ;;  %5628 = vmatpush3.bf16.msra.mxu1 %v5627_v55 }
 0x14f   : > { %5635 = vmatprep.subr.bf16.mxu1 %v5779_v4  ;;  %5115 = vmatprep.mubr.msk.f32.mxu0 %vm5780_vm1, %v5778_v0 }
 0x151   : > { %5007 = vmatmul.mubr.msk.f32.gmra.mrb[30].mxu1 %vm473_vm0, %v1133_v58 }
 0x152   : > { %5009 = vmatprep.mubr.msk.f32.mxu1 %vm5780_vm1, %v5778_v0 }
 0x155   : > { %5010 = vmatmul.mubr.msk.f32.gmra.mrb[32].mxu1 %vm473_vm0, %v1134_v59 }
 0x156   : > { %5012 = vmatprep.mubr.msk.f32.mxu1 %vm5780_vm1, %v5778_v0 }
 0x159   : > { %5013 = vmatmul.mubr.msk.f32.gmra.mrb[34].mxu1 %vm473_vm0, %v1135_v62 }
 0x15a   : > { %5046 = vmatprep.mubr.msk.f32.mxu1 %vm5780_vm1, %v5778_v0 }
 0x15d   : > { %5047 = vmatmul.mubr.msk.f32.vlgmr.msra.gmra.mrb[36].mxu1 %vm473_vm0, %v1371_v5 }
 0x15e   : > { %5637 = vmatpush3.bf16.msra.mxu1 %v5636_v63  ;;  %5049 = vmatprep.mubr.msk.f32.mxu1 %vm5780_vm1, %v5778_v0 }
 0x15f   : > { %5638 = vmatprep.subr.bf16.mxu1 %v5779_v4 }
 0x161   : > { %5050 = vmatmul.mubr.msk.f32.gmra.mrb[38].mxu1 %vm473_vm0, %v1372_v7 }
 0x162   : > { %5052 = vmatprep.mubr.msk.f32.mxu1 %vm5780_vm1, %v5778_v0  ;;  %5640 = vmatpush3.bf16.msra.mxu1 %v5639_v6 }
 0x163   : > { %5647 = vmatprep.subr.bf16.mxu1 %v5779_v4 }
 0x165   : > { %5053 = vmatmul.mubr.msk.f32.gmra.mrb[40].mxu1 %vm473_vm0, %v1373_v9 }
 0x166   : > { %5055 = vmatprep.mubr.msk.f32.mxu1 %vm5780_vm1, %v5778_v0 }
 0x169   : > { %5056 = vmatmul.mubr.msk.f32.gmra.mrb[42].mxu1 %vm473_vm0, %v1374_v11 }
 0x16a   : > { %5058 = vmatprep.mubr.msk.f32.mxu1 %vm5780_vm1, %v5778_v0 }
 0x16d   : > { %5059 = vmatmul.mubr.msk.f32.gmra.mrb[44].mxu1 %vm473_vm0, %v1375_v12 }
 0x16e   : > { %5092 = vmatprep.mubr.msk.f32.mxu1 %vm5780_vm1, %v5778_v0 }
 0x171   : > { %5093 = vmatmul.mubr.msk.f32.vlgmr.msra.gmra.mrb[46].mxu1 %vm473_vm0, %v6099_v2  ;;  %v1615_v2 = vld [vmem:[#allocation2 + $0x2e] sm:$0xf] }
 0x172   : > { %5095 = vmatprep.mubr.msk.f32.mxu1 %vm5780_vm1, %v5778_v0  ;;  %5649 = vmatpush3.bf16.msra.mxu1 %v5648_v21 }
 0x173   : > { %5650 = vmatprep.subr.bf16.mxu1 %v5779_v4 }
 0x175   : > { %5096 = vmatmul.mubr.msk.f32.gmra.mrb[48].mxu1 %vm473_vm0, %v6118_v10  ;;  %v4428_v10 = vld [vmem:[%s7046_s6 + $0x20] sm:$0xff] }
 0x176   : > { %5098 = vmatprep.mubr.msk.f32.mxu1 %vm5780_vm1, %v5778_v0  ;;  %5652 = vmatpush3.bf16.msra.mxu1 %v5651_v26 }
 0x177   : > { %5659 = vmatprep.subr.bf16.mxu1 %v5779_v4 }
 0x179   : > { %5099 = vmatmul.mubr.msk.f32.gmra.mrb[50].mxu1 %vm473_vm0, %v6131_v14  ;;  %v4429_v14 = vld [vmem:[%s7046_s6 + $0x28] sm:$0xff] }
 0x17a   : > { %5101 = vmatprep.mubr.msk.f32.mxu1 %vm5780_vm1, %v5778_v0  ;;  %v5642_v15 = vpack.c.bf16 %v4429_v14, %v4428_v10 }
 0x17c   : > { %5643 = vmatpush3.bf16.msra.mxu0 %v5642_v15 }
 0x17d   : > { %5102 = vmatmul.mubr.msk.f32.gmra.mrb[52].mxu1 %vm473_vm0, %v1614_v13  ;;  %5644 = vmatprep.subr.bf16.mxu0 %v5779_v4 }
 0x17e   : > { %5104 = vmatprep.mubr.msk.f32.mxu1 %vm5780_vm1, %v5778_v0 }
 0x180   : > { %5646 = vmatpush3.bf16.msra.mxu0 %v5645_v23 }
 0x181   : > { %5105 = vmatmul.mubr.msk.f32.gmra.mrb[54].mxu1 %vm473_vm0, %v1615_v2  ;;  %5653 = vmatprep.subr.bf16.mxu0 %v5779_v4 }
 0x182   : > { %5138 = vmatprep.mubr.msk.f32.mxu1 %vm5780_vm1, %v5778_v0 }
 0x1e0   : > { %v762_v27 = vpop.f32.mrb[10].mxu0 }
 0x1e1   : > { %v4910_v28 = vpop.f32.mrb[11].mxu0 }
 0x1e4   : > { %v767_v29 = vpop.f32.mrb[12].mxu0 }
 0x1e5   : > { %v4913_v30 = vpop.f32.mrb[13].mxu0 }
 0x1e8   : > { %v772_v31 = vpop.f32.mrb[0].mxu1  ;;  %v1102_v32 = vpop.f32.mrb[14].mxu0 }
 0x1e9   : > { %v4916_v33 = vpop.f32.mrb[1].mxu1  ;;  %v4979_v35 = vpop.f32.mrb[15].mxu0 }
 0x1ec   : > { %v777_v36 = vpop.f32.mrb[2].mxu1  ;;  %v1107_v37 = vpop.f32.mrb[16].mxu0 }
 0x1ed   : > { %v4919_v38 = vpop.f32.mrb[3].mxu1  ;;  %v4982_v39 = vpop.f32.mrb[17].mxu0 }
 0x1f0   : > { %v782_v40 = vpop.f32.mrb[4].mxu1  ;;  %v1112_v41 = vpop.f32.mrb[18].mxu0 }
 0x1f1   : > { %v4922_v42 = vpop.f32.mrb[5].mxu1  ;;  %v4985_v43 = vpop.f32.mrb[19].mxu0 }
 0x1f4   : > { %v867_v44 = vpop.f32.mrb[6].mxu1  ;;  %v1117_v45 = vpop.f32.mrb[20].mxu0 }
 0x1f5   : > { %v868_v46 = vadd.f32 %v867_v44, %v762_v27  ;;  %v4933_v47 = vpop.f32.mrb[7].mxu1  ;;  %v4988_v48 = vpop.f32.mrb[21].mxu0 }
 0x1f8   : > { %v872_v49 = vpop.f32.mrb[8].mxu1  ;;  %v1122_v50 = vpop.f32.mrb[22].mxu0 }
 0x1f9   : > { %v873_v51 = vadd.f32 %v872_v49, %v767_v29  ;;  %v4936_v52 = vpop.f32.mrb[9].mxu1  ;;  %v4991_v53 = vpop.f32.mrb[23].mxu0 }
 0x1fc   : > { %v877_v55 = vpop.f32.mrb[10].mxu1  ;;  %v1342_v56 = vpop.f32.mrb[24].mxu0 }
 0x1fd   : > { %v878_v57 = vadd.f32 %v877_v55, %v772_v31  ;;  %v4939_v58 = vpop.f32.mrb[11].mxu1  ;;  %v5025_v59 = vpop.f32.mrb[25].mxu0 }
 0x200   : > { %v882_v60 = vpop.f32.mrb[12].mxu1  ;;  %v1347_v61 = vpop.f32.mrb[26].mxu0 }
 0x201   : > { %v883_v62 = vadd.f32 %v882_v60, %v777_v36  ;;  %v4942_v63 = vpop.f32.mrb[13].mxu1  ;;  %v5028_v1 = vpop.f32.mrb[27].mxu0 }
 0x204   : > { %v887_v3 = vpop.f32.mrb[14].mxu1  ;;  %v1352_v5 = vpop.f32.mrb[28].mxu0 }
 0x205   : > { %v888_v6 = vadd.f32 %v887_v3, %v782_v40  ;;  %v4945_v7 = vpop.f32.mrb[15].mxu1  ;;  %v5031_v9 = vpop.f32.mrb[29].mxu0 }
 0x208   : > { %v982_v11 = vpop.f32.mrb[16].mxu1  ;;  %v1357_v12 = vpop.f32.mrb[30].mxu0 }
 0x209   : > { %v1006_v13 = vadd.f32 %v982_v11, %v868_v46  ;;  %v4956_v2 = vpop.f32.mrb[17].mxu1  ;;  %v5034_v10 = vpop.f32.mrb[31].mxu0 }
 0x20b   : > { %v1126_v14 = vadd.f32 %v1102_v32, %v1006_v13 }
 0x20c   : > { %v987_v15 = vpop.f32.mrb[18].mxu1  ;;  %v1362_v17 = vpop.f32.mrb[32].mxu0 }
 0x20d   : > { %v1007_v18 = vadd.f32 %v987_v15, %v873_v51  ;;  %v4959_v19 = vpop.f32.mrb[19].mxu1  ;;  %v5037_v20 = vpop.f32.mrb[33].mxu0 }
 0x20f   : > { %v1127_v21 = vadd.f32 %v1107_v37, %v1007_v18 }
 0x210   : > { %v992_v23 = vpop.f32.mrb[20].mxu1  ;;  %v1582_v24 = vpop.f32.mrb[34].mxu0 }
 0x211   : > { %v1008_v25 = vadd.f32 %v992_v23, %v878_v57  ;;  %v4962_v26 = vpop.f32.mrb[21].mxu1  ;;  %v5071_v27 = vpop.f32.mrb[35].mxu0 }
 0x213   : > { %v1128_v28 = vadd.f32 %v1112_v41, %v1008_v25 }
 0x214   : > { %v997_v29 = vpop.f32.mrb[22].mxu1  ;;  %v1587_v30 = vpop.f32.mrb[36].mxu0 }
 0x215   : > { %v1009_v31 = vadd.f32 %v997_v29, %v883_v62  ;;  %v4965_v33 = vpop.f32.mrb[23].mxu1  ;;  %v5074_v35 = vpop.f32.mrb[37].mxu0 }
 0x217   : > { %v1129_v36 = vadd.f32 %v1117_v45, %v1009_v31 }
 0x218   : > { %v1002_v38 = vpop.f32.mrb[24].mxu1  ;;  %v1592_v32 = vpop.f32.mrb[38].mxu0 }
 0x219   : > { %v1010_v39 = vadd.f32 %v1002_v38, %v888_v6  ;;  %v4968_v40 = vpop.f32.mrb[25].mxu1  ;;  %v5077_v42 = vpop.f32.mrb[39].mxu0 }
 0x21b   : > { %v1130_v43 = vadd.f32 %v1122_v50, %v1010_v39 }
 0x21c   : > { %v1222_v44 = vpop.f32.mrb[26].mxu1  ;;  %v1597_v37 = vpop.f32.mrb[40].mxu0 }
 0x21d   : > { %v1246_v46 = vadd.f32 %v1222_v44, %v1126_v14  ;;  %v5002_v47 = vpop.f32.mrb[27].mxu1  ;;  %v5080_v48 = vpop.f32.mrb[41].mxu0 }
 0x21e   : > { %v4443_v47 = vld [vmem:[%s7046_s6 + $0x48] sm:$0xff] }
 0x21f   : > { %v1366_v49 = vadd.f32 %v1342_v56, %v1246_v46  ;;  %v4442_v46 = vld [vmem:[%s7046_s6 + $0x40] sm:$0xff] }
 0x220   : > { %v1227_v51 = vpop.f32.mrb[28].mxu1  ;;  %v1602_v41 = vpop.f32.mrb[42].mxu0 }
 0x221   : > { %v1247_v52 = vadd.f32 %v1227_v51, %v1127_v21  ;;  %v5005_v53 = vpop.f32.mrb[29].mxu1  ;;  %v5083_v55 = vpop.f32.mrb[43].mxu0 }
 0x222   : > { %v4452_v53 = vld [vmem:[%s7046_s6 + $0x68] sm:$0xff] }
 0x223   : > { %v1367_v57 = vadd.f32 %v1347_v61, %v1247_v52  ;;  %v4451_v52 = vld [vmem:[%s7046_s6 + $0x60] sm:$0xff] }
 0x224   : > { %v1232_v58 = vpop.f32.mrb[30].mxu1 }
 0x225   : > { %v1248_v45 = vadd.f32 %v1232_v58, %v1128_v28  ;;  %v5008_v59 = vpop.f32.mrb[31].mxu1  ;;  %v5654_v58 = vpack.c.bf16 %v4443_v47, %v4442_v46  ;;  %v4463_v46 = vld [vmem:[%s7046_s6 + $0x98] sm:$0xff] }
 0x227   : > { %v1368_v60 = vadd.f32 %v1352_v5, %v1248_v45 }
 0x228   : > { %v1237_v62 = vpop.f32.mrb[32].mxu1 }
 0x229   : > { %v1249_v63 = vadd.f32 %v1237_v62, %v1129_v36  ;;  %v5011_v1 = vpop.f32.mrb[33].mxu1 }
 0x22a   : > { %v4445_v1 = vld [vmem:[%s7046_s6 + $0x58] sm:$0xff] }
 0x22b   : > { %v1369_v50 = vadd.f32 %v1357_v12, %v1249_v63  ;;  %v4444_v63 = vld [vmem:[%s7046_s6 + $0x50] sm:$0xff] }
 0x22c   : > { %v1242_v3 = vpop.f32.mrb[34].mxu1 }
 0x22d   : > { %v1250_v6 = vadd.f32 %v1242_v3, %v1130_v43  ;;  %v5014_v7 = vpop.f32.mrb[35].mxu1 }
 0x22e   : > { %v4453_v7 = vld [vmem:[%s7046_s6 + $0x70] sm:$0xff] }
 0x22f   : > { %v1370_v9 = vadd.f32 %v1362_v17, %v1250_v6 }
 0x230   : > { %v1462_v11 = vpop.f32.mrb[36].mxu1 }
 0x231   : > { %v1486_v56 = vadd.f32 %v1462_v11, %v1366_v49  ;;  %v5048_v13 = vpop.f32.mrb[37].mxu1 }
 0x233   : > { %v1606_v2 = vadd.f32 %v1582_v24, %v1486_v56  ;;  %v4427_v24 = vld [vmem:[%s7045_s5] ss:$0 sm:$0xff] }
 0x234   : > { %v1467_v10 = vpop.f32.mrb[38].mxu1 }
 0x235   : > { %v1487_v14 = vadd.f32 %v1467_v10, %v1367_v57  ;;  %v5051_v15 = vpop.f32.mrb[39].mxu1 }
 0x236   : > { %v5657_v15 = vpack.c.bf16 %v4445_v1, %v4444_v63 }
 0x237   : > { %v1607_v61 = vadd.f32 %v1587_v30, %v1487_v14 }
 0x238   : > { %v1472_v18 = vpop.f32.mrb[40].mxu1 }
 0x239   : > { %v1488_v19 = vadd.f32 %v1472_v18, %v1368_v60  ;;  %v5054_v20 = vpop.f32.mrb[41].mxu1 }
 0x23b   : > { %v1608_v5 = vadd.f32 %v1592_v32, %v1488_v19 }
 0x23c   : > { %v1477_v21 = vpop.f32.mrb[42].mxu1 }
 0x23d   : > { %v1489_v23 = vadd.f32 %v1477_v21, %v1369_v50  ;;  %v5057_v25 = vpop.f32.mrb[43].mxu1  ;;  %v5660_v50 = vpack.c.bf16 %v4452_v53, %v4451_v52 }
 0x23f   : > { %v1609_v12 = vadd.f32 %v1597_v37, %v1489_v23 }
 0x240   : > { %v1482_v26 = vpop.f32.mrb[44].mxu1 }
 0x241   : > { %v1490_v27 = vadd.f32 %v1482_v26, %v1370_v9  ;;  %v5060_v28 = vpop.f32.mrb[45].mxu1  ;;  %v4454_v9 = vld [vmem:[%s7046_s6 + $0x78] sm:$0xff] }
 0x243   : > { %v1610_v17 = vadd.f32 %v1602_v41, %v1490_v27 }
 0x244   : > { %v1702_v29 = vpop.f32.mrb[46].mxu1 }
 0x245   : > { %v1726_v31 = vadd.f32 %v1702_v29, %v1606_v2  ;;  %v5094_v33 = vpop.f32.mrb[47].mxu1 }
 0x247   : > { %v1738_v30 = vadd.f32 %v4427_v24, %v1726_v31  ;;  %v4461_v31 = vld [vmem:[%s7046_s6 + $0x88] sm:$0xff] }
 0x248   : > { %v1707_v35 = vpop.f32.mrb[48].mxu1 }
 0x249   : > { %v6342_v36 = vmul.f32 %v1738_v30, %v6033_v16  ;;  %v1727_v38 = vadd.f32 %v1707_v35, %v1607_v61  ;;  %v5097_v32 = vpop.f32.mrb[49].mxu1  ;;  %v5663_v61 = vpack.c.bf16 %v4454_v9, %v4453_v7  ;;  %v4469_v35 = vld [vmem:[%s7046_s6 + $0xa0] sm:$0xff] }
 0x24b   : > { %1748 = vst.msk [vmem:[#allocation2 + $0x7] sm:$0xff] %vm473_vm0, %v6342_v36  ;;  %v1739_v39 = vadd.f32 %v4427_v24, %v1727_v38  ;;  %v4470_v38 = vld [vmem:[%s7046_s6 + $0xa8] sm:$0xff] }
 0x24c   : > { %v1712_v40 = vpop.f32.mrb[50].mxu1  ;;  %v5672_v47 = vpack.c.bf16 %v4470_v38, %v4469_v35 }
 0x24d   : > { %v6347_v42 = vmul.f32 %v1739_v39, %v6036_v22  ;;  %v1728_v43 = vadd.f32 %v1712_v40, %v1608_v5  ;;  %v5100_v44 = vpop.f32.mrb[51].mxu1 }
 0x24f   : > { %1749 = vst.msk [vmem:[#allocation2 + $0xf] sm:$0xff] %vm473_vm0, %v6347_v42  ;;  %v1740_v37 = vadd.f32 %v4427_v24, %v1728_v43  ;;  %v4462_v43 = vld [vmem:[%s7046_s6 + $0x90] sm:$0xff] }
 0x250   : > { %v1717_v48 = vpop.f32.mrb[52].mxu1  ;;  %v5669_v53 = vpack.c.bf16 %v4463_v46, %v4462_v43 }
 0x251   : > { %v6358_v49 = vmul.f32 %v1740_v37, %v6047_v34  ;;  %v1729_v51 = vadd.f32 %v1717_v48, %v1609_v12  ;;  %v5103_v41 = vpop.f32.mrb[53].mxu1  ;;  %v4471_v48 = vld [vmem:[%s7046_s6 + $0xb0] sm:$0xff] }
 0x252   : > { %v1767_v55 = vld [vmem:[#allocation2 + $0x1] sm:$0xff] }
 0x253   : > { %v1753_v57 = vld [vmem:[#allocation2] sm:$0xff]  ;;  %1750 = vst.msk [vmem:[#allocation2 + $0x17] sm:$0xff] %vm473_vm0, %v6358_v49  ;;  %v1741_v45 = vadd.f32 %v4427_v24, %v1729_v51  ;;  %v1772_v59 = vmax.f32 %v1767_v55, 0.0  ;;  %v4472_v51 = vld [vmem:[%s7046_s6 + $0xb8] sm:$0xff] }
 0x254   : > { %v1758_v60 = vmax.f32 %v1753_v57, 0.0  ;;  %v1722_v62 = vpop.f32.mrb[54].mxu1  ;;  %v1992_v33 = vld [vmem:[#allocation2 + $0x2] sm:$0xff] }
 0x255   : > { %v6375_v3 = vmul.f32 %v1741_v45, %v6028_v8  ;;  %v1730_v6 = vadd.f32 %v1722_v62, %v1610_v17  ;;  %5116 = vmatmul.mubr.msk.f32.vlgmr.msra.gmra.mrb[44].mxu0 %vm473_vm0, %v1772_v59  ;;  %v5106_v11 = vpop.f32.mrb[55].mxu1  ;;  %v2117_v30 = vld [vmem:[#allocation2 + $0x6] sm:$0xff]  ;;  %v1997_v39 = vmax.f32 %v1992_v33, 0.0 }
 0x256   : > { %5139 = vmatmul.mubr.msk.f32.vlgmr.msra.gmra.mrb[56].mxu1 %vm473_vm0, %v1758_v60  ;;  %5655 = vmatpush3.bf16.msra.mxu0 %v5654_v58  ;;  %v1768_v56 = vld [vmem:[#allocation2 + $0x9] sm:$0xff]  ;;  %v2122_v40 = vmax.f32 %v2117_v30, 0.0  ;;  %v5675_v58 = vpack.c.bf16 %v4472_v51, %v4471_v48  ;;  %v4478_v11 = vld [vmem:[%s7046_s6 + $0xc0] sm:$0xff] }
 0x257   : > { %5118 = vmatprep.mubr.msk.f32.mxu0 %vm5780_vm1, %v5778_v0  ;;  %v6387_v13 = vld [vmem:[#allocation2 + $0x8] sm:$0xff]  ;;  %1751 = vst.msk [vmem:[#allocation2 + $0x1f] sm:$0xff] %vm473_vm0, %v6375_v3  ;;  %v1742_v2 = vadd.f32 %v4427_v24, %v1730_v6  ;;  %5141 = vmatprep.mubr.msk.f32.mxu1 %vm5780_vm1, %v5778_v0  ;;  %v1773_v10 = vmax.f32 %v1768_v56, 0.0  ;;  %v4460_v24 = vld [vmem:[%s7046_s6 + $0x80] sm:$0xff]  ;;  %v4498_v48 = vld [vmem:[%s7046_s6 + $0x110] sm:$0xff] }
 0x258   : > { %v1759_v14 = vmax.f32 %v6387_v13, 0.0  ;;  %5656 = vmatprep.subr.bf16.mxu0 %v5779_v4  ;;  %5661 = vmatpush3.bf16.msra.mxu1 %v5660_v50  ;;  %v5666_v32 = vpack.c.bf16 %v4461_v31, %v4460_v24  ;;  %v1993_v44 = vld [vmem:[#allocation2 + $0xa] sm:$0xff] }
 0x259   : > { %v6396_v18 = vmul.f32 %v1742_v2, %v6076_v54  ;;  %5119 = vmatmul.mubr.msk.f32.gmra.mrb[46].mxu0 %vm473_vm0, %v1773_v10  ;;  %5662 = vmatprep.subr.bf16.mxu1 %v5779_v4  ;;  %v6454_v37 = vld [vmem:[#allocation2 + $0xe] sm:$0xff]  ;;  %v1998_v41 = vmax.f32 %v1993_v44, 0.0  ;;  %v4487_v10 = vld [vmem:[%s7046_s6 + $0xe0] sm:$0xff] }
 0x25a   : > { %5142 = vmatmul.mubr.msk.f32.gmra.mrb[58].mxu1 %vm473_vm0, %v1759_v14  ;;  %5121 = vmatprep.mubr.msk.f32.mxu0 %vm5780_vm1, %v5778_v0  ;;  %v1769_v19 = vld [vmem:[#allocation2 + $0x11] sm:$0xff]  ;;  %v2123_v52 = vmax.f32 %v6454_v37, 0.0  ;;  %v4479_v56 = vld [vmem:[%s7046_s6 + $0xc8] sm:$0xff] }
 0x25b   : > { %5144 = vmatprep.mubr.msk.f32.mxu1 %vm5780_vm1, %v5778_v0  ;;  %v6406_v20 = vld [vmem:[#allocation2 + $0x10] sm:$0xff]  ;;  %1752 = vst.msk [vmem:[#allocation2 + $0x27] sm:$0xf] %vm660_vm3, %v6396_v18  ;;  %v1774_v5 = vmax.f32 %v1769_v19, 0.0  ;;  %5658 = vmatpush3.bf16.msra.mxu0 %v5657_v15  ;;  %v2242_v2 = vld [vmem:[#allocation2 + $0x7] sm:$0xff] }
 0x25c   : > { %v1760_v21 = vmax.f32 %v6406_v20, 0.0  ;;  %5664 = vmatpush3.bf16.msra.mxu1 %v5663_v61  ;;  %5665 = vmatprep.subr.bf16.mxu0 %v5779_v4  ;;  %v1994_v55 = vld [vmem:[#allocation2 + $0x12] sm:$0xff]  ;;  %v4488_v15 = vld [vmem:[%s7046_s6 + $0xe8] sm:$0xff]  ;;  %v5678_v61 = vpack.c.bf16 %v4479_v56, %v4478_v11  ;;  %v2247_v19 = vmax.f32 %v2242_v2, 0.0 }
 0x25d   : > { %5122 = vmatmul.mubr.msk.f32.gmra.mrb[48].mxu0 %vm473_vm0, %v1774_v5  ;;  %5671 = vmatprep.subr.bf16.mxu1 %v5779_v4  ;;  %v6473_v57 = vld [vmem:[#allocation2 + $0x16] sm:$0xff]  ;;  %v1999_v45 = vmax.f32 %v1994_v55, 0.0  ;;  %v2617_v43 = vld [vmem:[#allocation2 + $0xd] sm:$0xff] }
 0x25e   : > { %5145 = vmatmul.mubr.msk.f32.gmra.mrb[60].mxu1 %vm473_vm0, %v1760_v21  ;;  %5124 = vmatprep.mubr.msk.f32.mxu0 %vm5780_vm1, %v5778_v0  ;;  %v1770_v23 = vld [vmem:[#allocation2 + $0x19] sm:$0xff]  ;;  %v1771_v27 = vld [vmem:[#allocation2 + $0x21] sm:$0xf]  ;;  %v2124_v59 = vmax.f32 %v6473_v57, 0.0  ;;  %v2243_v5 = vld [vmem:[#allocation2 + $0xf] sm:$0xff] }
 0x25f   : > { %5147 = vmatprep.mubr.msk.f32.mxu1 %vm5780_vm1, %v5778_v0  ;;  %v6421_v25 = vld [vmem:[#allocation2 + $0x18] sm:$0xff]  ;;  %v1775_v12 = vmax.f32 %v1770_v23, 0.0  ;;  %v1757_v28 = vld [vmem:[#allocation2 + $0x20] sm:$0xf]  ;;  %v1776_v17 = vmax.f32 %v1771_v27, 0.0  ;;  %v4480_v23 = vld [vmem:[%s7046_s6 + $0xd0] sm:$0xff]  ;;  %v5684_v27 = vpack.c.bf16 %v4488_v15, %v4487_v10 }
 0x260   : > { %v1761_v26 = vmax.f32 %v6421_v25, 0.0  ;;  %v1762_v29 = vmax.f32 %v1757_v28, 0.0  ;;  %v1995_v60 = vld [vmem:[#allocation2 + $0x1a] sm:$0xff]  ;;  %v1996_v50 = vld [vmem:[#allocation2 + $0x22] sm:$0xf]  ;;  %v4489_v28 = vld [vmem:[%s7046_s6 + $0xf0] sm:$0xff] }
 0x261   : > { %5125 = vmatmul.mubr.msk.f32.gmra.mrb[50].mxu0 %vm473_vm0, %v1775_v12  ;;  %v6485_v62 = vld [vmem:[#allocation2 + $0x1e] sm:$0xff]  ;;  %v2000_v63 = vmax.f32 %v1995_v60, 0.0  ;;  %v2001_v7 = vmax.f32 %v1996_v50, 0.0  ;;  %v2493_v51 = vld [vmem:[#allocation2 + $0x14] sm:$0xff]  ;;  %v2496_v11 = vld [vmem:[#allocation2 + $0x2c] sm:$0xf] }
 0x262   : > { %5148 = vmatmul.mubr.msk.f32.gmra.mrb[62].mxu1 %vm473_vm0, %v1761_v26  ;;  %5127 = vmatprep.mubr.msk.f32.mxu0 %vm5780_vm1, %v5778_v0  ;;  %v2125_v1 = vmax.f32 %v6485_v62, 0.0  ;;  %v2121_v6 = vld [vmem:[#allocation2 + $0x26] sm:$0xf]  ;;  %v4481_v12 = vld [vmem:[%s7046_s6 + $0xd8] sm:$0xff]  ;;  %v2498_v55 = vmax.f32 %v2493_v51, 0.0  ;;  %v2501_v15 = vmax.f32 %v2496_v11, 0.0 }
 0x263   : > { %5150 = vmatprep.mubr.msk.f32.mxu1 %vm5780_vm1, %v5778_v0  ;;  %v2126_v9 = vmax.f32 %v2121_v6, 0.0  ;;  %v5681_v13 = vpack.c.bf16 %v4481_v12, %v4480_v23  ;;  %v2245_v33 = vld [vmem:[#allocation2 + $0x1f] sm:$0xff]  ;;  %v2246_v35 = vld [vmem:[#allocation2 + $0x27] sm:$0xf]  ;;  %v2621_v56 = vld [vmem:[#allocation2 + $0x2d] sm:$0xf] }
 0x264   : > { %v2370_v30 = vld [vmem:[#allocation2 + $0x20] sm:$0xff]  ;;  %v2250_v20 = vmax.f32 %v2245_v33, 0.0  ;;  %v2371_v38 = vld [vmem:[#allocation2 + $0x28] sm:$0xf]  ;;  %v2251_v25 = vmax.f32 %v2246_v35, 0.0 }
 0x265   : > { %5128 = vmatmul.mubr.msk.f32.gmra.mrb[52].mxu0 %vm473_vm0, %v1776_v17  ;;  %v4490_v17 = vld [vmem:[%s7046_s6 + $0xf8] sm:$0xff]  ;;  %v2746_v37 = vld [vmem:[#allocation2 + $0x2e] sm:$0xf]  ;;  %v2884_v57 = vld [vmem:[%s7048_s8] sm:$0xff] }
 0x266   : > { %5151 = vmatmul.mubr.msk.f32.gmra.mrb[64].mxu1 %vm473_vm0, %v1762_v29  ;;  %5161 = vmatprep.mubr.msk.f32.mxu0 %vm5780_vm1, %v5778_v0  ;;  %v2248_v29 = vmax.f32 %v2243_v5, 0.0  ;;  %v5687_v24 = vpack.c.bf16 %v4490_v17, %v4489_v28  ;;  %v2494_v60 = vld [vmem:[#allocation2 + $0x1c] sm:$0xff]  ;;  %v2751_v5 = vmax.f32 %v2746_v37, 0.0  ;;  %v4513_v62 = vld [vmem:[%s7050_s10 + $0x28] sm:$0xff] }
 0x267   : > { %5184 = vmatprep.mubr.msk.f32.mxu1 %vm5780_vm1, %v5778_v0  ;;  %v2499_v50 = vmax.f32 %v2494_v60, 0.0 }
 0x269   : > { %5162 = vmatmul.mubr.msk.f32.vlgmr.msra.gmra.mrb[54].mxu0 %vm473_vm0, %v1997_v39  ;;  %v4497_v39 = vld [vmem:[%s7046_s6 + $0x108] sm:$0xff] }
 0x26a   : > { %5185 = vmatmul.mubr.msk.f32.vlgmr.msra.gmra.mrb[66].mxu1 %vm473_vm0, %v2122_v40  ;;  %5667 = vmatpush3.bf16.msra.mxu0 %v5666_v32  ;;  %v4496_v32 = vld [vmem:[%s7046_s6 + $0x100] sm:$0xff]  ;;  %v2492_v40 = vld [vmem:[#allocation2 + $0xc] sm:$0xff] }
 0x26b   : > { %5164 = vmatprep.mubr.msk.f32.mxu0 %vm5780_vm1, %v5778_v0  ;;  %5187 = vmatprep.mubr.msk.f32.mxu1 %vm5780_vm1, %v5778_v0  ;;  %v5690_v44 = vpack.c.bf16 %v4497_v39, %v4496_v32  ;;  %v2497_v46 = vmax.f32 %v2492_v40, 0.0 }
 0x26c   : > { %5668 = vmatprep.subr.bf16.mxu0 %v5779_v4  ;;  %5673 = vmatpush3.bf16.msra.mxu1 %v5672_v47  ;;  %v2622_v47 = vmax.f32 %v2617_v43, 0.0 }
 0x26d   : > { %5165 = vmatmul.mubr.msk.f32.gmra.mrb[56].mxu0 %vm473_vm0, %v1998_v41  ;;  %5674 = vmatprep.subr.bf16.mxu1 %v5779_v4  ;;  %v2618_v41 = vld [vmem:[#allocation2 + $0x15] sm:$0xff] }
 0x26e   : > { %5188 = vmatmul.mubr.msk.f32.gmra.mrb[68].mxu1 %vm473_vm0, %v2123_v52  ;;  %5167 = vmatprep.mubr.msk.f32.mxu0 %vm5780_vm1, %v5778_v0 }
 0x26f   : > { %5190 = vmatprep.mubr.msk.f32.mxu1 %vm5780_vm1, %v5778_v0  ;;  %5670 = vmatpush3.bf16.msra.mxu0 %v5669_v53  ;;  %v4499_v53 = vld [vmem:[%s7046_s6 + $0x118] sm:$0xff] }
 0x270   : > { %5676 = vmatpush3.bf16.msra.mxu1 %v5675_v58  ;;  %5677 = vmatprep.subr.bf16.mxu0 %v5779_v4  ;;  %v2623_v58 = vmax.f32 %v2618_v41, 0.0 }
 0x271   : > { %5168 = vmatmul.mubr.msk.f32.gmra.mrb[58].mxu0 %vm473_vm0, %v1999_v45  ;;  %5683 = vmatprep.subr.bf16.mxu1 %v5779_v4  ;;  %v5693_v45 = vpack.c.bf16 %v4499_v53, %v4498_v48 }
 0x272   : > { %5191 = vmatmul.mubr.msk.f32.gmra.mrb[70].mxu1 %vm473_vm0, %v2124_v59  ;;  %5170 = vmatprep.mubr.msk.f32.mxu0 %vm5780_vm1, %v5778_v0 }
 0x273   : > { %5193 = vmatprep.mubr.msk.f32.mxu1 %vm5780_vm1, %v5778_v0 }
 0x275   : > { %5171 = vmatmul.mubr.msk.f32.gmra.mrb[60].mxu0 %vm473_vm0, %v2000_v63  ;;  %v2619_v63 = vld [vmem:[#allocation2 + $0x1d] sm:$0xff] }
 0x276   : > { %5194 = vmatmul.mubr.msk.f32.gmra.mrb[72].mxu1 %vm473_vm0, %v2125_v1  ;;  %5173 = vmatprep.mubr.msk.f32.mxu0 %vm5780_vm1, %v5778_v0  ;;  %v2624_v6 = vmax.f32 %v2619_v63, 0.0 }
 0x277   : > { %5196 = vmatprep.mubr.msk.f32.mxu1 %vm5780_vm1, %v5778_v0 }
 0x279   : > { %5174 = vmatmul.mubr.msk.f32.gmra.mrb[62].mxu0 %vm473_vm0, %v2001_v7  ;;  %v2495_v7 = vld [vmem:[#allocation2 + $0x24] sm:$0xff] }
 0x27a   : > { %5197 = vmatmul.mubr.msk.f32.gmra.mrb[74].mxu1 %vm473_vm0, %v2126_v9  ;;  %5207 = vmatprep.mubr.msk.f32.mxu0 %vm5780_vm1, %v5778_v0  ;;  %v2620_v9 = vld [vmem:[#allocation2 + $0x25] sm:$0xff]  ;;  %v2500_v2 = vmax.f32 %v2495_v7, 0.0 }
 0x27b   : > { %5230 = vmatprep.mubr.msk.f32.mxu1 %vm5780_vm1, %v5778_v0  ;;  %v2625_v10 = vmax.f32 %v2620_v9, 0.0 }
 0x27d   : > { %5208 = vmatmul.mubr.msk.f32.vlgmr.msra.gmra.mrb[64].mxu0 %vm473_vm0, %v2247_v19  ;;  %v2745_v19 = vld [vmem:[#allocation2 + $0x26] sm:$0xff] }
 0x27e   : > { %5231 = vmatmul.mubr.msk.f32.vlgmr.msra.gmra.mrb[76].mxu1 %vm473_vm0, %v1759_v14  ;;  %5679 = vmatpush3.bf16.msra.mxu0 %v5678_v61  ;;  %v2244_v14 = vld [vmem:[#allocation2 + $0x17] sm:$0xff]  ;;  %v2626_v61 = vmax.f32 %v2621_v56, 0.0 }
 0x27f   : > { %5210 = vmatprep.mubr.msk.f32.mxu0 %vm5780_vm1, %v5778_v0  ;;  %5233 = vmatprep.mubr.msk.f32.mxu1 %vm5780_vm1, %v5778_v0  ;;  %v2249_v31 = vmax.f32 %v2244_v14, 0.0 }
 0x280   : > { %5680 = vmatprep.subr.bf16.mxu0 %v5779_v4  ;;  %5685 = vmatpush3.bf16.msra.mxu1 %v5684_v27 }
 0x281   : > { %5211 = vmatmul.mubr.msk.f32.gmra.mrb[66].mxu0 %vm473_vm0, %v2248_v29  ;;  %5686 = vmatprep.subr.bf16.mxu1 %v5779_v4 }
 0x282   : > { %5234 = vmatmul.mubr.msk.f32.gmra.mrb[78].mxu1 %vm473_vm0, %v1760_v21  ;;  %5213 = vmatprep.mubr.msk.f32.mxu0 %vm5780_vm1, %v5778_v0  ;;  %v2375_v21 = vmax.f32 %v2370_v30, 0.0 }
 0x283   : > { %5236 = vmatprep.mubr.msk.f32.mxu1 %vm5780_vm1, %v5778_v0  ;;  %5682 = vmatpush3.bf16.msra.mxu0 %v5681_v13 }
 0x284   : > { %5688 = vmatpush3.bf16.msra.mxu1 %v5687_v24  ;;  %5689 = vmatprep.subr.bf16.mxu0 %v5779_v4 }
 0x285   : > { %5214 = vmatmul.mubr.msk.f32.gmra.mrb[68].mxu0 %vm473_vm0, %v2249_v31  ;;  %5314 = vmatprep.subr.mxu1 %v5778_v0 }
 0x286   : > { %5237 = vmatmul.mubr.msk.f32.gmra.mrb[80].mxu1 %vm473_vm0, %v1761_v26  ;;  %5216 = vmatprep.mubr.msk.f32.mxu0 %vm5780_vm1, %v5778_v0  ;;  %v2376_v26 = vmax.f32 %v2371_v38, 0.0 }
 0x287   : > { %5239 = vmatprep.mubr.msk.f32.mxu1 %vm5780_vm1, %v5778_v0 }
 0x289   : > { %5217 = vmatmul.mubr.msk.f32.gmra.mrb[70].mxu0 %vm473_vm0, %v2250_v20 }
 0x28a   : > { %5240 = vmatmul.mubr.msk.f32.gmra.mrb[82].mxu1 %vm473_vm0, %v2375_v21  ;;  %5219 = vmatprep.mubr.msk.f32.mxu0 %vm5780_vm1, %v5778_v0 }
 0x28b   : > { %5242 = vmatprep.mubr.msk.f32.mxu1 %vm5780_vm1, %v5778_v0 }
 0x28d   : > { %5220 = vmatmul.mubr.msk.f32.gmra.mrb[72].mxu0 %vm473_vm0, %v2251_v25 }
 0x28e   : > { %5243 = vmatmul.mubr.msk.f32.gmra.mrb[84].mxu1 %vm473_vm0, %v2376_v26  ;;  %5253 = vmatprep.mubr.msk.f32.mxu0 %vm5780_vm1, %v5778_v0 }
 0x28f   : > { %5276 = vmatprep.mubr.msk.f32.mxu1 %vm5780_vm1, %v5778_v0 }
 0x291   : > { %5254 = vmatmul.mubr.msk.f32.vlgmr.msra.gmra.mrb[74].mxu0 %vm473_vm0, %v2497_v46 }
 0x292   : > { %5277 = vmatmul.mubr.msk.f32.vlgmr.msra.gmra.mrb[86].mxu1 %vm473_vm0, %v2622_v47  ;;  %5691 = vmatpush3.bf16.msra.mxu0 %v5690_v44 }
 0x293   : > { %5256 = vmatprep.mubr.msk.f32.mxu0 %vm5780_vm1, %v5778_v0  ;;  %5279 = vmatprep.mubr.msk.f32.mxu1 %vm5780_vm1, %v5778_v0 }
 0x294   : > { %5692 = vmatprep.subr.bf16.mxu0 %v5779_v4  ;;  %5315 = vmatpush3.msra.mxu1 %v2884_v57 }
 0x295   : > { %5257 = vmatmul.mubr.msk.f32.gmra.mrb[76].mxu0 %vm473_vm0, %v2498_v55  ;;  %5701 = vmatprep.subr.bf16.mxu1 %v5779_v4 }
 0x296   : > { %5280 = vmatmul.mubr.msk.f32.gmra.mrb[88].mxu1 %vm473_vm0, %v2623_v58  ;;  %5259 = vmatprep.mubr.msk.f32.mxu0 %vm5780_vm1, %v5778_v0 }
 0x297   : > { %5282 = vmatprep.mubr.msk.f32.mxu1 %vm5780_vm1, %v5778_v0  ;;  %5694 = vmatpush3.bf16.msra.mxu0 %v5693_v45 }
 0x298   : > { %5695 = vmatprep.subr.bf16.mxu0 %v5779_v4 }
 0x299   : > { %5260 = vmatmul.mubr.msk.f32.gmra.mrb[78].mxu0 %vm473_vm0, %v2499_v50 }
 0x29a   : > { %5283 = vmatmul.mubr.msk.f32.gmra.mrb[90].mxu1 %vm473_vm0, %v2624_v6  ;;  %5262 = vmatprep.mubr.msk.f32.mxu0 %vm5780_vm1, %v5778_v0 }
 0x29b   : > { %5285 = vmatprep.mubr.msk.f32.mxu1 %vm5780_vm1, %v5778_v0 }
 0x29d   : > { %5263 = vmatmul.mubr.msk.f32.gmra.mrb[80].mxu0 %vm473_vm0, %v2500_v2 }
 0x29e   : > { %5286 = vmatmul.mubr.msk.f32.gmra.mrb[92].mxu1 %vm473_vm0, %v2625_v10  ;;  %5265 = vmatprep.mubr.msk.f32.mxu0 %vm5780_vm1, %v5778_v0 }
 0x29f   : > { %5288 = vmatprep.mubr.msk.f32.mxu1 %vm5780_vm1, %v5778_v0 }
 0x2a1   : > { %5266 = vmatmul.mubr.msk.f32.gmra.mrb[82].mxu0 %vm473_vm0, %v2501_v15 }
 0x2a2   : > { %5289 = vmatmul.mubr.msk.f32.gmra.mrb[94].mxu1 %vm473_vm0, %v2626_v61  ;;  %5299 = vmatprep.mubr.msk.f32.mxu0 %vm5780_vm1, %v5778_v0 }
 0x2a3   : > { %5316 = vmatprep.mubr.msk.f32.mxu1 %vm5780_vm1, %v5778_v0 }
 0x2a5   : > { %5300 = vmatmul.mubr.msk.f32.vlgmr.msra.gmra.mrb[84].mxu0 %vm473_vm0, %v2123_v52  ;;  %v2750_v52 = vmax.f32 %v2745_v19, 0.0 }
 0x2a6   : > { %5302 = vmatprep.mubr.msk.f32.mxu0 %vm5780_vm1, %v5778_v0 }
 0x2a9   : > { %5303 = vmatmul.mubr.msk.f32.gmra.mrb[86].mxu0 %vm473_vm0, %v2124_v59  ;;  %v4512_v59 = vld [vmem:[%s7050_s10 + $0x20] sm:$0xff] }
 0x2aa   : > { %5305 = vmatprep.mubr.msk.f32.mxu0 %vm5780_vm1, %v5778_v0 }
 0x2ad   : > { %5306 = vmatmul.mubr.msk.f32.gmra.mrb[88].mxu0 %vm473_vm0, %v2125_v1  ;;  %v5696_v1 = vpack.c.bf16 %v4513_v62, %v4512_v59 }
 0x2ae   : > { %5308 = vmatprep.mubr.msk.f32.mxu0 %vm5780_vm1, %v5778_v0 }
 0x2af   : > { %5697 = vmatpush3.bf16.msra.mxu0 %v5696_v1 }
 0x2b0   : > { %5698 = vmatprep.subr.bf16.mxu0 %v5779_v4 }
 0x2b1   : > { %5309 = vmatmul.mubr.msk.f32.gmra.mrb[90].mxu0 %vm473_vm0, %v2750_v52 }
 0x2b2   : > { %5311 = vmatprep.mubr.msk.f32.mxu0 %vm5780_vm1, %v5778_v0 }
 0x2b5   : > { %5312 = vmatmul.mubr.msk.f32.gmra.mrb[92].mxu0 %vm473_vm0, %v2751_v5 }
 0x2b6   : > { %5339 = vmatprep.mubr.msk.f32.mxu0 %vm5780_vm1, %v5778_v0 }
 0x328   : > { %v1863_v23 = vpop.f32.mrb[44].mxu0 }
 0x329   : > { %v1968_v12 = vpop.f32.mrb[56].mxu1  ;;  %v5117_v28 = vpop.f32.mrb[45].mxu0 }
 0x32a   : > { %v1969_v27 = vadd.f32 %v1968_v12, %v1863_v23  ;;  %v5140_v17 = vpop.f32.mrb[57].mxu1 }
 0x32c   : > { %v1868_v29 = vpop.f32.mrb[46].mxu0 }
 0x32d   : > { %v1973_v13 = vpop.f32.mrb[58].mxu1  ;;  %v5120_v24 = vpop.f32.mrb[47].mxu0 }
 0x32e   : > { %v1974_v14 = vadd.f32 %v1973_v13, %v1868_v29  ;;  %v5143_v31 = vpop.f32.mrb[59].mxu1 }
 0x330   : > { %v1873_v33 = vpop.f32.mrb[48].mxu0 }
 0x331   : > { %v1978_v30 = vpop.f32.mrb[60].mxu1  ;;  %v5123_v21 = vpop.f32.mrb[49].mxu0 }
 0x332   : > { %v1979_v20 = vadd.f32 %v1978_v30, %v1873_v33  ;;  %v5146_v35 = vpop.f32.mrb[61].mxu1 }
 0x334   : > { %v1878_v38 = vpop.f32.mrb[50].mxu0 }
 0x335   : > { %v1983_v25 = vpop.f32.mrb[62].mxu1  ;;  %v5126_v32 = vpop.f32.mrb[51].mxu0 }
 0x336   : > { %v1984_v26 = vadd.f32 %v1983_v25, %v1878_v38  ;;  %v5149_v39 = vpop.f32.mrb[63].mxu1 }
 0x338   : > { %v1883_v40 = vpop.f32.mrb[52].mxu0 }
 0x339   : > { %v1988_v43 = vpop.f32.mrb[64].mxu1  ;;  %v5129_v46 = vpop.f32.mrb[53].mxu0 }
 0x33a   : > { %v1989_v44 = vadd.f32 %v1988_v43, %v1883_v40  ;;  %v5152_v47 = vpop.f32.mrb[65].mxu1 }
 0x33c   : > { %v2088_v48 = vpop.f32.mrb[54].mxu0 }
 0x33d   : > { %v2213_v51 = vpop.f32.mrb[66].mxu1  ;;  %v2112_v41 = vadd.f32 %v2088_v48, %v1969_v27  ;;  %v5163_v53 = vpop.f32.mrb[55].mxu0 }
 0x33e   : > { %v5186_v55 = vpop.f32.mrb[67].mxu1 }
 0x33f   : > { %v2237_v58 = vadd.f32 %v2213_v51, %v2112_v41 }
 0x340   : > { %v2093_v45 = vpop.f32.mrb[56].mxu0 }
 0x341   : > { %v2218_v60 = vpop.f32.mrb[68].mxu1  ;;  %v2113_v63 = vadd.f32 %v2093_v45, %v1974_v14  ;;  %v5166_v50 = vpop.f32.mrb[57].mxu0 }
 0x342   : > { %v5189_v6 = vpop.f32.mrb[69].mxu1 }
 0x343   : > { %v2238_v7 = vadd.f32 %v2218_v60, %v2113_v63 }
 0x344   : > { %v2098_v9 = vpop.f32.mrb[58].mxu0 }
 0x345   : > { %v2223_v11 = vpop.f32.mrb[70].mxu1  ;;  %v2114_v56 = vadd.f32 %v2098_v9, %v1979_v20  ;;  %v5169_v2 = vpop.f32.mrb[59].mxu0 }
 0x346   : > { %v5192_v10 = vpop.f32.mrb[71].mxu1 }
 0x347   : > { %v2239_v15 = vadd.f32 %v2223_v11, %v2114_v56 }
 0x348   : > { %v2103_v61 = vpop.f32.mrb[60].mxu0 }
 0x349   : > { %v2228_v19 = vpop.f32.mrb[72].mxu1  ;;  %v2115_v37 = vadd.f32 %v2103_v61, %v1984_v26  ;;  %v5172_v52 = vpop.f32.mrb[61].mxu0 }
 0x34a   : > { %v5195_v5 = vpop.f32.mrb[73].mxu1 }
 0x34b   : > { %v2240_v57 = vadd.f32 %v2228_v19, %v2115_v37 }
 0x34c   : > { %v2108_v59 = vpop.f32.mrb[62].mxu0 }
 0x34d   : > { %v2233_v62 = vpop.f32.mrb[74].mxu1  ;;  %v2116_v1 = vadd.f32 %v2108_v59, %v1989_v44  ;;  %v5175_v23 = vpop.f32.mrb[63].mxu0 }
 0x34e   : > { %v5198_v12 = vpop.f32.mrb[75].mxu1 }
 0x34f   : > { %v2241_v27 = vadd.f32 %v2233_v62, %v2116_v1 }
 0x350   : > { %v2338_v28 = vpop.f32.mrb[64].mxu0 }
 0x351   : > { %v2463_v17 = vpop.f32.mrb[76].mxu1  ;;  %v2362_v29 = vadd.f32 %v2338_v28, %v2237_v58  ;;  %v5209_v13 = vpop.f32.mrb[65].mxu0 }
 0x352   : > { %v5232_v14 = vpop.f32.mrb[77].mxu1 }
 0x353   : > { %v2487_v24 = vadd.f32 %v2463_v17, %v2362_v29 }
 0x354   : > { %v2343_v31 = vpop.f32.mrb[66].mxu0 }
 0x355   : > { %v2468_v33 = vpop.f32.mrb[78].mxu1  ;;  %v2363_v30 = vadd.f32 %v2343_v31, %v2238_v7  ;;  %v5212_v20 = vpop.f32.mrb[67].mxu0 }
 0x356   : > { %v5235_v21 = vpop.f32.mrb[79].mxu1  ;;  %v4505_v20 = vld [vmem:[%s7047_s7] ss:$0 sm:$0xff] }
 0x357   : > { %v2488_v35 = vadd.f32 %v2468_v33, %v2363_v30 }
 0x358   : > { %v2348_v38 = vpop.f32.mrb[68].mxu0 }
 0x359   : > { %v2473_v25 = vpop.f32.mrb[80].mxu1  ;;  %v2364_v26 = vadd.f32 %v2348_v38, %v2239_v15  ;;  %v5215_v32 = vpop.f32.mrb[69].mxu0 }
 0x35a   : > { %v5238_v39 = vpop.f32.mrb[81].mxu1 }
 0x35b   : > { %v2489_v40 = vadd.f32 %v2473_v25, %v2364_v26 }
 0x35c   : > { %v2353_v43 = vpop.f32.mrb[70].mxu0 }
 0x35d   : > { %v2478_v44 = vpop.f32.mrb[82].mxu1  ;;  %v2365_v46 = vadd.f32 %v2353_v43, %v2240_v57  ;;  %v5218_v47 = vpop.f32.mrb[71].mxu0 }
 0x35e   : > { %v5241_v48 = vpop.f32.mrb[83].mxu1 }
 0x35f   : > { %v2490_v51 = vadd.f32 %v2478_v44, %v2365_v46 }
 0x360   : > { %v2358_v41 = vpop.f32.mrb[72].mxu0 }
 0x361   : > { %v2483_v53 = vpop.f32.mrb[84].mxu1  ;;  %v2366_v55 = vadd.f32 %v2358_v41, %v2241_v27  ;;  %v5221_v58 = vpop.f32.mrb[73].mxu0 }
 0x362   : > { %v5244_v45 = vpop.f32.mrb[85].mxu1 }
 0x363   : > { %v2491_v60 = vadd.f32 %v2483_v53, %v2366_v55 }
 0x364   : > { %v2588_v63 = vpop.f32.mrb[74].mxu0 }
 0x365   : > { %v2713_v50 = vpop.f32.mrb[86].mxu1  ;;  %v2612_v6 = vadd.f32 %v2588_v63, %v2487_v24  ;;  %v5255_v7 = vpop.f32.mrb[75].mxu0 }
 0x366   : > { %v5278_v9 = vpop.f32.mrb[87].mxu1 }
 0x367   : > { %v2737_v11 = vadd.f32 %v2713_v50, %v2612_v6  ;;  %v4514_v9 = vld [vmem:[%s7050_s10 + $0x30] sm:$0xff] }
 0x368   : > { %v2593_v56 = vpop.f32.mrb[76].mxu0 }
 0x369   : > { %v2718_v2 = vpop.f32.mrb[88].mxu1  ;;  %v2613_v10 = vadd.f32 %v2593_v56, %v2488_v35  ;;  %v5258_v15 = vpop.f32.mrb[77].mxu0  ;;  %v3028_v56 = vld [vmem:[%s7050_s10] sm:$0xff] }
 0x36a   : > { %v5281_v61 = vpop.f32.mrb[89].mxu1 }
 0x36b   : > { %v2738_v19 = vadd.f32 %v2718_v2, %v2613_v10  ;;  %v3029_v10 = vld [vmem:[%s7050_s10 + $0x8] sm:$0xff]  ;;  %v3030_v61 = vld [vmem:[%s7050_s10 + $0x10] sm:$0xff] }
 0x36c   : > { %v2598_v37 = vpop.f32.mrb[78].mxu0  ;;  %v5702_v15 = vpack.c.bf16 %v3029_v10, %v3028_v56 }
 0x36d   : > { %v2723_v52 = vpop.f32.mrb[90].mxu1  ;;  %v2614_v5 = vadd.f32 %v2598_v37, %v2489_v40  ;;  %v5261_v57 = vpop.f32.mrb[79].mxu0 }
 0x36e   : > { %v5284_v59 = vpop.f32.mrb[91].mxu1 }
 0x36f   : > { %v2739_v62 = vadd.f32 %v2723_v52, %v2614_v5  ;;  %v4511_v5 = vld [vmem:[%s7049_s9] ss:$0 sm:$0xff] }
 0x370   : > { %v2603_v1 = vpop.f32.mrb[80].mxu0 }
 0x371   : > { %v2728_v23 = vpop.f32.mrb[92].mxu1  ;;  %v2615_v12 = vadd.f32 %v2603_v1, %v2490_v51  ;;  %v5264_v27 = vpop.f32.mrb[81].mxu0 }
 0x372   : > { %v5287_v28 = vpop.f32.mrb[93].mxu1 }
 0x373   : > { %v2740_v17 = vadd.f32 %v2728_v23, %v2615_v12 }
 0x374   : > { %v2608_v29 = vpop.f32.mrb[82].mxu0 }
 0x375   : > { %v2733_v13 = vpop.f32.mrb[94].mxu1  ;;  %v2616_v14 = vadd.f32 %v2608_v29, %v2491_v60  ;;  %v5267_v24 = vpop.f32.mrb[83].mxu0 }
 0x376   : > { %v5290_v31 = vpop.f32.mrb[95].mxu1  ;;  %v4527_v24 = vld [vmem:[%s7050_s10 + $0x48] sm:$0xff] }
 0x377   : > { %v2741_v33 = vadd.f32 %v2733_v13, %v2616_v14 }
 0x378   : > { %v2838_v30 = vpop.f32.mrb[84].mxu0 }
 0x379   : > { %v2862_v21 = vadd.f32 %v2838_v30, %v2737_v11  ;;  %v5301_v35 = vpop.f32.mrb[85].mxu0  ;;  %v4515_v11 = vld [vmem:[%s7050_s10 + $0x38] sm:$0xff] }
 0x37a   : > { %v5699_v2 = vpack.c.bf16 %v4515_v11, %v4514_v9 }
 0x37b   : > { %v2874_v38 = vadd.f32 %v4505_v20, %v2862_v21  ;;  %v4536_v21 = vld [vmem:[%s7050_s10 + $0x68] sm:$0xff] }
 0x37c   : > { %v2843_v25 = vpop.f32.mrb[86].mxu0  ;;  %5700 = vmatpush3.bf16.msra.mxu0 %v5699_v2 }
 0x37d   : > { %v2879_v26 = vmax.f32 %v2874_v38, 0.0  ;;  %v2863_v32 = vadd.f32 %v2843_v25, %v2738_v19  ;;  %v5304_v39 = vpop.f32.mrb[87].mxu0  ;;  %v3031_v19 = vld [vmem:[%s7050_s10 + $0x18] sm:$0xff]  ;;  %5707 = vmatprep.subr.bf16.mxu0 %v5779_v4 }
 0x37e   : > { %v5705_v37 = vpack.c.bf16 %v3031_v19, %v3030_v61 }
 0x37f   : > { %v2875_v40 = vadd.f32 %v4505_v20, %v2863_v32  ;;  %5317 = vmatmul.mubr.msk.f32.vlgmr.msra.gmra.mrb[96].mxu1 %vm2885_vm4, %v2879_v26 }
 0x380   : > { %v2848_v43 = vpop.f32.mrb[88].mxu0  ;;  %5319 = vmatprep.mubr.msk.f32.mxu1 %vm5780_vm1, %v5778_v0  ;;  %5703 = vmatpush3.bf16.msra.mxu1 %v5702_v15 }
 0x381   : > { %v2880_v44 = vmax.f32 %v2875_v40, 0.0  ;;  %v2864_v46 = vadd.f32 %v2848_v43, %v2739_v62  ;;  %v5307_v47 = vpop.f32.mrb[89].mxu0  ;;  %5704 = vmatprep.subr.bf16.mxu1 %v5779_v4  ;;  %v4529_v43 = vld [vmem:[%s7050_s10 + $0x58] sm:$0xff] }
 0x383   : > { %v2876_v48 = vadd.f32 %v4505_v20, %v2864_v46  ;;  %5320 = vmatmul.mubr.msk.f32.gmra.mrb[98].mxu1 %vm2885_vm4, %v2880_v44 }
 0x384   : > { %v2853_v51 = vpop.f32.mrb[90].mxu0  ;;  %5322 = vmatprep.mubr.msk.f32.mxu1 %vm5780_vm1, %v5778_v0  ;;  %5706 = vmatpush3.bf16.msra.mxu1 %v5705_v37 }
 0x385   : > { %v2881_v41 = vmax.f32 %v2876_v48, 0.0  ;;  %v2865_v53 = vadd.f32 %v2853_v51, %v2740_v17  ;;  %v5310_v55 = vpop.f32.mrb[91].mxu0  ;;  %5713 = vmatprep.subr.bf16.mxu1 %v5779_v4  ;;  %v4537_v51 = vld [vmem:[%s7050_s10 + $0x70] sm:$0xff] }
 0x387   : > { %v2877_v58 = vadd.f32 %v4505_v20, %v2865_v53  ;;  %5323 = vmatmul.mubr.msk.f32.gmra.mrb[100].mxu1 %vm2885_vm4, %v2881_v41  ;;  %v4538_v41 = vld [vmem:[%s7050_s10 + $0x78] sm:$0xff] }
 0x388   : > { %v2858_v45 = vpop.f32.mrb[92].mxu0  ;;  %5325 = vmatprep.mubr.msk.f32.mxu1 %vm5780_vm1, %v5778_v0 }
 0x389   : > { %v2882_v60 = vmax.f32 %v2877_v58, 0.0  ;;  %v2866_v63 = vadd.f32 %v2858_v45, %v2741_v33  ;;  %v5313_v50 = vpop.f32.mrb[93].mxu0 }
 0x38b   : > { %v2878_v6 = vadd.f32 %v4505_v20, %v2866_v63  ;;  %5326 = vmatmul.mubr.msk.f32.gmra.mrb[102].mxu1 %vm2885_vm4, %v2882_v60  ;;  %v4535_v20 = vld [vmem:[%s7050_s10 + $0x60] sm:$0xff]  ;;  %v5717_v63 = vpack.c.bf16 %v4538_v41, %v4537_v51 }
 0x38c   : > { %5328 = vmatprep.mubr.msk.f32.mxu1 %vm5780_vm1, %v5778_v0  ;;  %v5714_v44 = vpack.c.bf16 %v4536_v21, %v4535_v20  ;;  %v4562_v41 = vld [vmem:[%s7050_s10 + $0xc0] sm:$0xff] }
 0x38d   : > { %v2883_v7 = vmax.f32 %v2878_v6, 0.0 }
 0x38f   : > { %5329 = vmatmul.mubr.msk.f32.gmra.mrb[104].mxu1 %vm2885_vm4, %v2883_v7 }
 0x390   : > { %5362 = vmatprep.mubr.msk.f32.mxu1 %vm5780_vm1, %v5778_v0 }
 0x452   : > { %v2967_v52 = vpop.f32.mrb[96].mxu1 }
 0x453   : > { %v2991_v57 = vadd.f32 %v2967_v52, %v6342_v36  ;;  %v5318_v59 = vpop.f32.mrb[97].mxu1 }
 0x455   : > { %v3003_v62 = vadd.f32 %v4511_v5, %v2991_v57  ;;  %v4545_v57 = vld [vmem:[%s7050_s10 + $0x88] sm:$0xff] }
 0x456   : > { %v2972_v1 = vpop.f32.mrb[98].mxu1 }
 0x457   : > { %v6696_v23 = vmul.f32 %v3003_v62, %v6033_v16  ;;  %v2992_v12 = vadd.f32 %v2972_v1, %v6347_v42  ;;  %v5321_v27 = vpop.f32.mrb[99].mxu1  ;;  %v4526_v42 = vld [vmem:[%s7050_s10 + $0x40] sm:$0xff] }
 0x458   : > { %v5708_v25 = vpack.c.bf16 %v4527_v24, %v4526_v42  ;;  %v4553_v1 = vld [vmem:[%s7050_s10 + $0xa0] sm:$0xff]  ;;  %v4547_v42 = vld [vmem:[%s7050_s10 + $0x98] sm:$0xff] }
 0x459   : > { %3013 = vst.msk [vmem:[#allocation2 + $0x7] sm:$0xff] %vm473_vm0, %v6696_v23  ;;  %v3004_v28 = vadd.f32 %v4511_v5, %v2992_v12  ;;  %v4554_v12 = vld [vmem:[%s7050_s10 + $0xa8] sm:$0xff] }
 0x45a   : > { %v2977_v17 = vpop.f32.mrb[100].mxu1  ;;  %v5726_v24 = vpack.c.bf16 %v4554_v12, %v4553_v1 }
 0x45b   : > { %v6702_v29 = vmul.f32 %v3004_v28, %v6036_v22  ;;  %v2993_v13 = vadd.f32 %v2977_v17, %v6358_v49  ;;  %v5324_v36 = vpop.f32.mrb[101].mxu1 }
 0x45d   : > { %3014 = vst.msk [vmem:[#allocation2 + $0xf] sm:$0xff] %vm473_vm0, %v6702_v29  ;;  %v3005_v14 = vadd.f32 %v4511_v5, %v2993_v13  ;;  %v4546_v13 = vld [vmem:[%s7050_s10 + $0x90] sm:$0xff] }
 0x45e   : > { %v2982_v31 = vpop.f32.mrb[102].mxu1  ;;  %v5723_v21 = vpack.c.bf16 %v4547_v42, %v4546_v13 }
 0x45f   : > { %v6714_v33 = vmul.f32 %v3005_v14, %v6047_v34  ;;  %v2994_v30 = vadd.f32 %v2982_v31, %v6375_v3  ;;  %v5327_v49 = vpop.f32.mrb[103].mxu1  ;;  %v4528_v3 = vld [vmem:[%s7050_s10 + $0x50] sm:$0xff] }
 0x460   : > { %v3032_v35 = vld [vmem:[#allocation2 + $0x1] sm:$0xff]  ;;  %v5711_v60 = vpack.c.bf16 %v4529_v43, %v4528_v3  ;;  %v4555_v31 = vld [vmem:[%s7050_s10 + $0xb0] sm:$0xff] }
 0x461   : > { %v3018_v38 = vld [vmem:[#allocation2] sm:$0xff]  ;;  %3015 = vst.msk [vmem:[#allocation2 + $0x17] sm:$0xff] %vm473_vm0, %v6714_v33  ;;  %v3006_v26 = vadd.f32 %v4511_v5, %v2994_v30  ;;  %v3037_v32 = vmax.f32 %v3032_v35, 0.0  ;;  %v4556_v30 = vld [vmem:[%s7050_s10 + $0xb8] sm:$0xff] }
 0x462   : > { %v3023_v39 = vmax.f32 %v3018_v38, 0.0  ;;  %v2987_v40 = vpop.f32.mrb[104].mxu1  ;;  %v3257_v59 = vld [vmem:[#allocation2 + $0x2] sm:$0xff] }
 0x463   : > { %v6732_v46 = vmul.f32 %v3006_v26, %v6028_v8  ;;  %v2995_v47 = vadd.f32 %v2987_v40, %v6396_v18  ;;  %v5330_v48 = vpop.f32.mrb[105].mxu1  ;;  %5340 = vmatmul.mubr.msk.f32.vlgmr.msra.gmra.mrb[94].mxu0 %vm473_vm0, %v3037_v32  ;;  %v3382_v62 = vld [vmem:[#allocation2 + $0x6] sm:$0xff]  ;;  %v3262_v28 = vmax.f32 %v3257_v59, 0.0 }
 0x464   : > { %5363 = vmatmul.mubr.msk.f32.vlgmr.msra.gmra.mrb[106].mxu1 %vm473_vm0, %v3023_v39  ;;  %5709 = vmatpush3.bf16.msra.mxu0 %v5708_v25  ;;  %v3033_v53 = vld [vmem:[#allocation2 + $0x9] sm:$0xff]  ;;  %v3387_v17 = vmax.f32 %v3382_v62, 0.0  ;;  %v5729_v25 = vpack.c.bf16 %v4556_v30, %v4555_v31 }
 0x465   : > { %5342 = vmatprep.mubr.msk.f32.mxu0 %vm5780_vm1, %v5778_v0  ;;  %v6745_v55 = vld [vmem:[#allocation2 + $0x8] sm:$0xff]  ;;  %3016 = vst.msk [vmem:[#allocation2 + $0x1f] sm:$0xff] %vm473_vm0, %v6732_v46  ;;  %v3007_v18 = vadd.f32 %v4511_v5, %v2995_v47  ;;  %5365 = vmatprep.mubr.msk.f32.mxu1 %vm5780_vm1, %v5778_v0  ;;  %v3038_v58 = vmax.f32 %v3033_v53, 0.0  ;;  %v4544_v5 = vld [vmem:[%s7050_s10 + $0x80] sm:$0xff]  ;;  %v4582_v31 = vld [vmem:[%s7050_s10 + $0x110] sm:$0xff] }
 0x466   : > { %v3024_v45 = vmax.f32 %v6745_v55, 0.0  ;;  %5710 = vmatprep.subr.bf16.mxu0 %v5779_v4  ;;  %5715 = vmatpush3.bf16.msra.mxu1 %v5714_v44  ;;  %v5720_v27 = vpack.c.bf16 %v4545_v57, %v4544_v5  ;;  %v3258_v36 = vld [vmem:[#allocation2 + $0xa] sm:$0xff] }
 0x467   : > { %v6754_v50 = vmul.f32 %v3007_v18, %v6076_v54  ;;  %5343 = vmatmul.mubr.msk.f32.gmra.mrb[96].mxu0 %vm473_vm0, %v3038_v58  ;;  %5716 = vmatprep.subr.bf16.mxu1 %v5779_v4  ;;  %v6812_v14 = vld [vmem:[#allocation2 + $0xe] sm:$0xff]  ;;  %v3263_v49 = vmax.f32 %v3258_v36, 0.0  ;;  %v4571_v58 = vld [vmem:[%s7050_s10 + $0xe0] sm:$0xff] }
 0x468   : > { %5366 = vmatmul.mubr.msk.f32.gmra.mrb[108].mxu1 %vm473_vm0, %v3024_v45  ;;  %5345 = vmatprep.mubr.msk.f32.mxu0 %vm5780_vm1, %v5778_v0  ;;  %v3034_v6 = vld [vmem:[#allocation2 + $0x11] sm:$0xff]  ;;  %v3388_v20 = vmax.f32 %v6812_v14, 0.0  ;;  %v4563_v53 = vld [vmem:[%s7050_s10 + $0xc8] sm:$0xff] }
 0x469   : > { %5368 = vmatprep.mubr.msk.f32.mxu1 %vm5780_vm1, %v5778_v0  ;;  %v6764_v7 = vld [vmem:[#allocation2 + $0x10] sm:$0xff]  ;;  %3017 = vst.msk [vmem:[#allocation2 + $0x27] sm:$0xf] %vm660_vm3, %v6754_v50  ;;  %v3039_v9 = vmax.f32 %v3034_v6, 0.0  ;;  %5712 = vmatpush3.bf16.msra.mxu0 %v5711_v60  ;;  %v3507_v18 = vld [vmem:[#allocation2 + $0x7] sm:$0xff] }
 0x46a   : > { %v3025_v11 = vmax.f32 %v6764_v7, 0.0  ;;  %5718 = vmatpush3.bf16.msra.mxu1 %v5717_v63  ;;  %5719 = vmatprep.subr.bf16.mxu0 %v5779_v4  ;;  %v3259_v35 = vld [vmem:[#allocation2 + $0x12] sm:$0xff]  ;;  %v4572_v60 = vld [vmem:[%s7050_s10 + $0xe8] sm:$0xff]  ;;  %v5732_v63 = vpack.c.bf16 %v4563_v53, %v4562_v41  ;;  %v3512_v6 = vmax.f32 %v3507_v18, 0.0 }
 0x46b   : > { %5346 = vmatmul.mubr.msk.f32.gmra.mrb[98].mxu0 %vm473_vm0, %v3039_v9  ;;  %5725 = vmatprep.subr.bf16.mxu1 %v5779_v4  ;;  %v6831_v38 = vld [vmem:[#allocation2 + $0x16] sm:$0xff]  ;;  %v3264_v26 = vmax.f32 %v3259_v35, 0.0  ;;  %v3882_v13 = vld [vmem:[#allocation2 + $0xd] sm:$0xff] }
 0x46c   : > { %5369 = vmatmul.mubr.msk.f32.gmra.mrb[110].mxu1 %vm473_vm0, %v3025_v11  ;;  %5348 = vmatprep.mubr.msk.f32.mxu0 %vm5780_vm1, %v5778_v0  ;;  %v3035_v56 = vld [vmem:[#allocation2 + $0x19] sm:$0xff]  ;;  %v3036_v61 = vld [vmem:[#allocation2 + $0x21] sm:$0xf]  ;;  %v3389_v32 = vmax.f32 %v6831_v38, 0.0  ;;  %v3508_v9 = vld [vmem:[#allocation2 + $0xf] sm:$0xff] }
 0x46d   : > { %5371 = vmatprep.mubr.msk.f32.mxu1 %vm5780_vm1, %v5778_v0  ;;  %v6779_v2 = vld [vmem:[#allocation2 + $0x18] sm:$0xff]  ;;  %v3040_v10 = vmax.f32 %v3035_v56, 0.0  ;;  %v3022_v19 = vld [vmem:[#allocation2 + $0x20] sm:$0xf]  ;;  %v3041_v37 = vmax.f32 %v3036_v61, 0.0  ;;  %v4564_v56 = vld [vmem:[%s7050_s10 + $0xd0] sm:$0xff]  ;;  %v5738_v61 = vpack.c.bf16 %v4572_v60, %v4571_v58 }
 0x46e   : > { %v3026_v15 = vmax.f32 %v6779_v2, 0.0  ;;  %v3027_v52 = vmax.f32 %v3022_v19, 0.0  ;;  %v3260_v39 = vld [vmem:[#allocation2 + $0x1a] sm:$0xff]  ;;  %v3261_v44 = vld [vmem:[#allocation2 + $0x22] sm:$0xf]  ;;  %v4573_v19 = vld [vmem:[%s7050_s10 + $0xf0] sm:$0xff] }
 0x46f   : > { %5349 = vmatmul.mubr.msk.f32.gmra.mrb[100].mxu0 %vm473_vm0, %v3040_v10  ;;  %v6843_v40 = vld [vmem:[#allocation2 + $0x1e] sm:$0xff]  ;;  %v3265_v3 = vmax.f32 %v3260_v39, 0.0  ;;  %v3266_v48 = vmax.f32 %v3261_v44, 0.0  ;;  %v3758_v30 = vld [vmem:[#allocation2 + $0x14] sm:$0xff]  ;;  %v3886_v41 = vld [vmem:[#allocation2 + $0x2d] sm:$0xf] }
 0x470   : > { %5372 = vmatmul.mubr.msk.f32.gmra.mrb[112].mxu1 %vm473_vm0, %v3026_v15  ;;  %5351 = vmatprep.mubr.msk.f32.mxu0 %vm5780_vm1, %v5778_v0  ;;  %v3390_v43 = vmax.f32 %v6843_v40, 0.0  ;;  %v3386_v47 = vld [vmem:[#allocation2 + $0x26] sm:$0xf]  ;;  %v4565_v10 = vld [vmem:[%s7050_s10 + $0xd8] sm:$0xff]  ;;  %v3763_v35 = vmax.f32 %v3758_v30, 0.0  ;;  %v3891_v60 = vmax.f32 %v3886_v41, 0.0 }
 0x471   : > { %5374 = vmatprep.mubr.msk.f32.mxu1 %vm5780_vm1, %v5778_v0  ;;  %v3391_v51 = vmax.f32 %v3386_v47, 0.0  ;;  %v5735_v55 = vpack.c.bf16 %v4565_v10, %v4564_v56  ;;  %v3510_v59 = vld [vmem:[#allocation2 + $0x1f] sm:$0xff]  ;;  %v3511_v1 = vld [vmem:[#allocation2 + $0x27] sm:$0xf]  ;;  %v4011_v14 = vld [vmem:[#allocation2 + $0x2e] sm:$0xf] }
 0x472   : > { %v3635_v62 = vld [vmem:[#allocation2 + $0x20] sm:$0xff]  ;;  %v3515_v7 = vmax.f32 %v3510_v59, 0.0  ;;  %v3636_v12 = vld [vmem:[#allocation2 + $0x28] sm:$0xf]  ;;  %v3516_v2 = vmax.f32 %v3511_v1, 0.0 }
 0x473   : > { %5352 = vmatmul.mubr.msk.f32.gmra.mrb[102].mxu0 %vm473_vm0, %v3041_v37  ;;  %v4574_v37 = vld [vmem:[%s7050_s10 + $0xf8] sm:$0xff]  ;;  %v4149_v38 = vld [vmem:[%s7052_s12] sm:$0xff] }
 0x474   : > { %5375 = vmatmul.mubr.msk.f32.gmra.mrb[114].mxu1 %vm473_vm0, %v3027_v52  ;;  %5385 = vmatprep.mubr.msk.f32.mxu0 %vm5780_vm1, %v5778_v0  ;;  %v3513_v52 = vmax.f32 %v3508_v9, 0.0  ;;  %v5741_v5 = vpack.c.bf16 %v4574_v37, %v4573_v19  ;;  %v3759_v39 = vld [vmem:[#allocation2 + $0x1c] sm:$0xff] }
 0x475   : > { %5408 = vmatprep.mubr.msk.f32.mxu1 %vm5780_vm1, %v5778_v0  ;;  %v3764_v44 = vmax.f32 %v3759_v39, 0.0 }
 0x477   : > { %5386 = vmatmul.mubr.msk.f32.vlgmr.msra.gmra.mrb[104].mxu0 %vm473_vm0, %v3262_v28  ;;  %v4581_v28 = vld [vmem:[%s7050_s10 + $0x108] sm:$0xff] }
 0x478   : > { %5409 = vmatmul.mubr.msk.f32.vlgmr.msra.gmra.mrb[116].mxu1 %vm473_vm0, %v3387_v17  ;;  %5721 = vmatpush3.bf16.msra.mxu0 %v5720_v27  ;;  %v4580_v27 = vld [vmem:[%s7050_s10 + $0x100] sm:$0xff]  ;;  %v3757_v17 = vld [vmem:[#allocation2 + $0xc] sm:$0xff] }
 0x479   : > { %5388 = vmatprep.mubr.msk.f32.mxu0 %vm5780_vm1, %v5778_v0  ;;  %5411 = vmatprep.mubr.msk.f32.mxu1 %vm5780_vm1, %v5778_v0  ;;  %v5744_v36 = vpack.c.bf16 %v4581_v28, %v4580_v27  ;;  %v3762_v42 = vmax.f32 %v3757_v17, 0.0 }
 0x47a   : > { %5722 = vmatprep.subr.bf16.mxu0 %v5779_v4  ;;  %5727 = vmatpush3.bf16.msra.mxu1 %v5726_v24  ;;  %v3887_v24 = vmax.f32 %v3882_v13, 0.0 }
 0x47b   : > { %5389 = vmatmul.mubr.msk.f32.gmra.mrb[106].mxu0 %vm473_vm0, %v3263_v49  ;;  %5728 = vmatprep.subr.bf16.mxu1 %v5779_v4  ;;  %v3883_v49 = vld [vmem:[#allocation2 + $0x15] sm:$0xff] }
 0x47c   : > { %5412 = vmatmul.mubr.msk.f32.gmra.mrb[118].mxu1 %vm473_vm0, %v3388_v20  ;;  %5391 = vmatprep.mubr.msk.f32.mxu0 %vm5780_vm1, %v5778_v0 }
 0x47d   : > { %5414 = vmatprep.mubr.msk.f32.mxu1 %vm5780_vm1, %v5778_v0  ;;  %5724 = vmatpush3.bf16.msra.mxu0 %v5723_v21  ;;  %v4583_v21 = vld [vmem:[%s7050_s10 + $0x118] sm:$0xff] }
 0x47e   : > { %5730 = vmatpush3.bf16.msra.mxu1 %v5729_v25  ;;  %5731 = vmatprep.subr.bf16.mxu0 %v5779_v4  ;;  %v3888_v25 = vmax.f32 %v3883_v49, 0.0 }
 0x47f   : > { %5392 = vmatmul.mubr.msk.f32.gmra.mrb[108].mxu0 %vm473_vm0, %v3264_v26  ;;  %5737 = vmatprep.subr.bf16.mxu1 %v5779_v4  ;;  %v5747_v26 = vpack.c.bf16 %v4583_v21, %v4582_v31 }
 0x480   : > { %5415 = vmatmul.mubr.msk.f32.gmra.mrb[120].mxu1 %vm473_vm0, %v3389_v32  ;;  %5394 = vmatprep.mubr.msk.f32.mxu0 %vm5780_vm1, %v5778_v0 }
 0x481   : > { %5417 = vmatprep.mubr.msk.f32.mxu1 %vm5780_vm1, %v5778_v0 }
 0x483   : > { %5395 = vmatmul.mubr.msk.f32.gmra.mrb[110].mxu0 %vm473_vm0, %v3265_v3  ;;  %v3884_v3 = vld [vmem:[#allocation2 + $0x1d] sm:$0xff] }
 0x484   : > { %5418 = vmatmul.mubr.msk.f32.gmra.mrb[122].mxu1 %vm473_vm0, %v3390_v43  ;;  %5397 = vmatprep.mubr.msk.f32.mxu0 %vm5780_vm1, %v5778_v0  ;;  %v3889_v47 = vmax.f32 %v3884_v3, 0.0 }
 0x485   : > { %5420 = vmatprep.mubr.msk.f32.mxu1 %vm5780_vm1, %v5778_v0 }
 0x487   : > { %5398 = vmatmul.mubr.msk.f32.gmra.mrb[112].mxu0 %vm473_vm0, %v3266_v48  ;;  %v3760_v48 = vld [vmem:[#allocation2 + $0x24] sm:$0xff] }
 0x488   : > { %5421 = vmatmul.mubr.msk.f32.gmra.mrb[124].mxu1 %vm473_vm0, %v3391_v51  ;;  %5431 = vmatprep.mubr.msk.f32.mxu0 %vm5780_vm1, %v5778_v0  ;;  %v3885_v51 = vld [vmem:[#allocation2 + $0x25] sm:$0xff]  ;;  %v3765_v53 = vmax.f32 %v3760_v48, 0.0 }
 0x489   : > { %5454 = vmatprep.mubr.msk.f32.mxu1 %vm5780_vm1, %v5778_v0  ;;  %v3890_v18 = vmax.f32 %v3885_v51, 0.0 }
 0x48b   : > { %5432 = vmatmul.mubr.msk.f32.vlgmr.msra.gmra.mrb[114].mxu0 %vm473_vm0, %v3512_v6  ;;  %v4016_v6 = vmax.f32 %v4011_v14, 0.0 }
 0x48c   : > { %5455 = vmatmul.mubr.msk.f32.vlgmr.msra.gmra.mrb[126].mxu1 %vm473_vm0, %v3024_v45  ;;  %5733 = vmatpush3.bf16.msra.mxu0 %v5732_v63  ;;  %v3509_v45 = vld [vmem:[#allocation2 + $0x17] sm:$0xff]  ;;  %v4010_v63 = vld [vmem:[#allocation2 + $0x26] sm:$0xff] }
 0x48d   : > { %5434 = vmatprep.mubr.msk.f32.mxu0 %vm5780_vm1, %v5778_v0  ;;  %5457 = vmatprep.mubr.msk.f32.mxu1 %vm5780_vm1, %v5778_v0  ;;  %v3514_v57 = vmax.f32 %v3509_v45, 0.0 }
 0x48e   : > { %5734 = vmatprep.subr.bf16.mxu0 %v5779_v4  ;;  %5739 = vmatpush3.bf16.msra.mxu1 %v5738_v61 }
 0x48f   : > { %5435 = vmatmul.mubr.msk.f32.gmra.mrb[116].mxu0 %vm473_vm0, %v3513_v52  ;;  %5740 = vmatprep.subr.bf16.mxu1 %v5779_v4 }
 0x490   : > { %5458 = vmatmul.mubr.msk.f32.gmra.mrb[128].mxu1 %vm473_vm0, %v3025_v11  ;;  %5437 = vmatprep.mubr.msk.f32.mxu0 %vm5780_vm1, %v5778_v0  ;;  %v3640_v11 = vmax.f32 %v3635_v62, 0.0 }
 0x491   : > { %5460 = vmatprep.mubr.msk.f32.mxu1 %vm5780_vm1, %v5778_v0  ;;  %5736 = vmatpush3.bf16.msra.mxu0 %v5735_v55 }
 0x492   : > { %5742 = vmatpush3.bf16.msra.mxu1 %v5741_v5  ;;  %5743 = vmatprep.subr.bf16.mxu0 %v5779_v4 }
 0x493   : > { %5438 = vmatmul.mubr.msk.f32.gmra.mrb[118].mxu0 %vm473_vm0, %v3514_v57  ;;  %5538 = vmatprep.subr.mxu1 %v5778_v0 }
 0x494   : > { %5461 = vmatmul.mubr.msk.f32.gmra.mrb[130].mxu1 %vm473_vm0, %v3026_v15  ;;  %5440 = vmatprep.mubr.msk.f32.mxu0 %vm5780_vm1, %v5778_v0  ;;  %v3641_v15 = vmax.f32 %v3636_v12, 0.0 }
 0x495   : > { %5463 = vmatprep.mubr.msk.f32.mxu1 %vm5780_vm1, %v5778_v0 }
 0x497   : > { %5441 = vmatmul.mubr.msk.f32.gmra.mrb[120].mxu0 %vm473_vm0, %v3515_v7 }
 0x498   : > { %5464 = vmatmul.mubr.msk.f32.gmra.mrb[132].mxu1 %vm473_vm0, %v3640_v11  ;;  %5443 = vmatprep.mubr.msk.f32.mxu0 %vm5780_vm1, %v5778_v0 }
 0x499   : > { %5466 = vmatprep.mubr.msk.f32.mxu1 %vm5780_vm1, %v5778_v0 }
 0x49b   : > { %5444 = vmatmul.mubr.msk.f32.gmra.mrb[122].mxu0 %vm473_vm0, %v3516_v2 }
 0x49c   : > { %5467 = vmatmul.mubr.msk.f32.gmra.mrb[134].mxu1 %vm473_vm0, %v3641_v15  ;;  %5477 = vmatprep.mubr.msk.f32.mxu0 %vm5780_vm1, %v5778_v0 }
 0x49d   : > { %5500 = vmatprep.mubr.msk.f32.mxu1 %vm5780_vm1, %v5778_v0 }
 0x49f   : > { %5478 = vmatmul.mubr.msk.f32.vlgmr.msra.gmra.mrb[124].mxu0 %vm473_vm0, %v3762_v42 }
 0x4a0   : > { %5501 = vmatmul.mubr.msk.f32.vlgmr.msra.gmra.mrb[136].mxu1 %vm473_vm0, %v3887_v24  ;;  %5745 = vmatpush3.bf16.msra.mxu0 %v5744_v36 }
 0x4a1   : > { %5480 = vmatprep.mubr.msk.f32.mxu0 %vm5780_vm1, %v5778_v0  ;;  %5503 = vmatprep.mubr.msk.f32.mxu1 %vm5780_vm1, %v5778_v0 }
 0x4a2   : > { %5746 = vmatprep.subr.bf16.mxu0 %v5779_v4  ;;  %v3761_v4 = vld [vmem:[#allocation2 + $0x2c] sm:$0xf]  ;;  %5539 = vmatpush3.msra.mxu1 %v4149_v38 }
 0x4a3   : > { %5481 = vmatmul.mubr.msk.f32.gmra.mrb[126].mxu0 %vm473_vm0, %v3763_v35  ;;  %v3766_v58 = vmax.f32 %v3761_v4, 0.0 }
 0x4a4   : > { %5504 = vmatmul.mubr.msk.f32.gmra.mrb[138].mxu1 %vm473_vm0, %v3888_v25  ;;  %5483 = vmatprep.mubr.msk.f32.mxu0 %vm5780_vm1, %v5778_v0 }
 0x4a5   : > { %5506 = vmatprep.mubr.msk.f32.mxu1 %vm5780_vm1, %v5778_v0  ;;  %5748 = vmatpush3.bf16.msra.mxu0 %v5747_v26 }
 0x4a7   : > { %5484 = vmatmul.mubr.msk.f32.gmra.mrb[128].mxu0 %vm473_vm0, %v3764_v44 }
 0x4a8   : > { %5507 = vmatmul.mubr.msk.f32.gmra.mrb[140].mxu1 %vm473_vm0, %v3889_v47  ;;  %5486 = vmatprep.mubr.msk.f32.mxu0 %vm5780_vm1, %v5778_v0 }
 0x4a9   : > { %5509 = vmatprep.mubr.msk.f32.mxu1 %vm5780_vm1, %v5778_v0 }
 0x4ab   : > { %5487 = vmatmul.mubr.msk.f32.gmra.mrb[130].mxu0 %vm473_vm0, %v3765_v53 }
 0x4ac   : > { %5510 = vmatmul.mubr.msk.f32.gmra.mrb[142].mxu1 %vm473_vm0, %v3890_v18  ;;  %5489 = vmatprep.mubr.msk.f32.mxu0 %vm5780_vm1, %v5778_v0 }
 0x4ad   : > { %5512 = vmatprep.mubr.msk.f32.mxu1 %vm5780_vm1, %v5778_v0 }
 0x4af   : > { %5490 = vmatmul.mubr.msk.f32.gmra.mrb[132].mxu0 %vm473_vm0, %v3766_v58 }
 0x4b0   : > { %5513 = vmatmul.mubr.msk.f32.gmra.mrb[144].mxu1 %vm473_vm0, %v3891_v60  ;;  %5523 = vmatprep.mubr.msk.f32.mxu0 %vm5780_vm1, %v5778_v0 }
 0x4b1   : > { %5540 = vmatprep.mubr.msk.f32.mxu1 %vm5780_vm1, %v5778_v0 }
 0x4b3   : > { %5524 = vmatmul.mubr.msk.f32.vlgmr.msra.gmra.mrb[134].mxu0 %vm473_vm0, %v3388_v20  ;;  %v4015_v20 = vmax.f32 %v4010_v63, 0.0 }
 0x4b4   : > { %5526 = vmatprep.mubr.msk.f32.mxu0 %vm5780_vm1, %v5778_v0 }
 0x4b7   : > { %5527 = vmatmul.mubr.msk.f32.gmra.mrb[136].mxu0 %vm473_vm0, %v3389_v32 }
 0x4b8   : > { %5529 = vmatprep.mubr.msk.f32.mxu0 %vm5780_vm1, %v5778_v0 }
 0x4bb   : > { %5530 = vmatmul.mubr.msk.f32.gmra.mrb[138].mxu0 %vm473_vm0, %v3390_v43 }
 0x4bc   : > { %5532 = vmatprep.mubr.msk.f32.mxu0 %vm5780_vm1, %v5778_v0 }
 0x4bf   : > { %5533 = vmatmul.mubr.msk.f32.gmra.mrb[140].mxu0 %vm473_vm0, %v4015_v20 }
 0x4c0   : > { %5535 = vmatprep.mubr.msk.f32.mxu0 %vm5780_vm1, %v5778_v0 }
 0x4c3   : > { %5536 = vmatmul.mubr.msk.f32.gmra.mrb[142].mxu0 %vm473_vm0, %v4016_v6 }
 0x536   : > { %v3128_v32 = vpop.f32.mrb[94].mxu0 }
 0x537   : > { %v3233_v40 = vpop.f32.mrb[106].mxu1  ;;  %v5341_v9 = vpop.f32.mrb[95].mxu0 }
 0x538   : > { %v3234_v43 = vadd.f32 %v3233_v40, %v3128_v32  ;;  %v5364_v56 = vpop.f32.mrb[107].mxu1 }
 0x53a   : > { %v3133_v10 = vpop.f32.mrb[96].mxu0 }
 0x53b   : > { %v3238_v61 = vpop.f32.mrb[108].mxu1  ;;  %v5344_v37 = vpop.f32.mrb[97].mxu0 }
 0x53c   : > { %v3239_v19 = vadd.f32 %v3238_v61, %v3133_v10  ;;  %v5367_v52 = vpop.f32.mrb[109].mxu1 }
 0x53e   : > { %v3138_v55 = vpop.f32.mrb[98].mxu0 }
 0x53f   : > { %v3243_v45 = vpop.f32.mrb[110].mxu1  ;;  %v5347_v57 = vpop.f32.mrb[99].mxu0 }
 0x540   : > { %v3244_v5 = vadd.f32 %v3243_v45, %v3138_v55  ;;  %v5370_v59 = vpop.f32.mrb[111].mxu1 }
 0x542   : > { %v3143_v62 = vpop.f32.mrb[100].mxu0 }
 0x543   : > { %v3248_v7 = vpop.f32.mrb[112].mxu1  ;;  %v5350_v1 = vpop.f32.mrb[101].mxu0 }
 0x544   : > { %v3249_v11 = vadd.f32 %v3248_v7, %v3143_v62  ;;  %v5373_v12 = vpop.f32.mrb[113].mxu1 }
 0x546   : > { %v3148_v2 = vpop.f32.mrb[102].mxu0 }
 0x547   : > { %v3253_v15 = vpop.f32.mrb[114].mxu1  ;;  %v5353_v28 = vpop.f32.mrb[103].mxu0 }
 0x548   : > { %v3254_v27 = vadd.f32 %v3253_v15, %v3148_v2  ;;  %v5376_v17 = vpop.f32.mrb[115].mxu1 }
 0x54a   : > { %v3353_v13 = vpop.f32.mrb[104].mxu0 }
 0x54b   : > { %v3478_v36 = vpop.f32.mrb[116].mxu1  ;;  %v3377_v42 = vadd.f32 %v3353_v13, %v3234_v43  ;;  %v5387_v24 = vpop.f32.mrb[105].mxu0 }
 0x54c   : > { %v5410_v31 = vpop.f32.mrb[117].mxu1 }
 0x54d   : > { %v3502_v30 = vadd.f32 %v3478_v36, %v3377_v42 }
 0x54e   : > { %v3358_v49 = vpop.f32.mrb[106].mxu0 }
 0x54f   : > { %v3483_v21 = vpop.f32.mrb[118].mxu1  ;;  %v3378_v35 = vadd.f32 %v3358_v49, %v3239_v19  ;;  %v5390_v25 = vpop.f32.mrb[107].mxu0 }
 0x550   : > { %v5413_v26 = vpop.f32.mrb[119].mxu1 }
 0x551   : > { %v3503_v39 = vadd.f32 %v3483_v21, %v3378_v35 }
 0x552   : > { %v3363_v3 = vpop.f32.mrb[108].mxu0 }
 0x553   : > { %v3488_v44 = vpop.f32.mrb[120].mxu1  ;;  %v3379_v47 = vadd.f32 %v3363_v3, %v3244_v5  ;;  %v5393_v48 = vpop.f32.mrb[109].mxu0 }
 0x554   : > { %v5416_v51 = vpop.f32.mrb[121].mxu1 }
 0x555   : > { %v3504_v4 = vadd.f32 %v3488_v44, %v3379_v47 }
 0x556   : > { %v3368_v41 = vpop.f32.mrb[110].mxu0 }
 0x557   : > { %v3493_v53 = vpop.f32.mrb[122].mxu1  ;;  %v3380_v18 = vadd.f32 %v3368_v41, %v3249_v11  ;;  %v5396_v58 = vpop.f32.mrb[111].mxu0 }
 0x558   : > { %v5419_v60 = vpop.f32.mrb[123].mxu1 }
 0x559   : > { %v3505_v63 = vadd.f32 %v3493_v53, %v3380_v18 }
 0x55a   : > { %v3373_v14 = vpop.f32.mrb[112].mxu0 }
 0x55b   : > { %v3498_v20 = vpop.f32.mrb[124].mxu1  ;;  %v3381_v6 = vadd.f32 %v3373_v14, %v3254_v27  ;;  %v5399_v38 = vpop.f32.mrb[113].mxu0 }
 0x55c   : > { %v5422_v32 = vpop.f32.mrb[125].mxu1 }
 0x55d   : > { %v3506_v40 = vadd.f32 %v3498_v20, %v3381_v6 }
 0x55e   : > { %v3603_v43 = vpop.f32.mrb[114].mxu0 }
 0x55f   : > { %v3728_v9 = vpop.f32.mrb[126].mxu1  ;;  %v3627_v56 = vadd.f32 %v3603_v43, %v3502_v30  ;;  %v5433_v10 = vpop.f32.mrb[115].mxu0 }
 0x560   : > { %v5456_v61 = vpop.f32.mrb[127].mxu1 }
 0x561   : > { %v3752_v19 = vadd.f32 %v3728_v9, %v3627_v56 }
 0x562   : > { %v3608_v37 = vpop.f32.mrb[116].mxu0 }
 0x563   : > { %v3733_v52 = vpop.f32.mrb[128].mxu1  ;;  %v3628_v55 = vadd.f32 %v3608_v37, %v3503_v39  ;;  %v5436_v45 = vpop.f32.mrb[117].mxu0 }
 0x564   : > { %v5459_v5 = vpop.f32.mrb[129].mxu1 }
 0x565   : > { %v3753_v57 = vadd.f32 %v3733_v52, %v3628_v55  ;;  %v4589_v55 = vld [vmem:[%s7051_s11] ss:$0 sm:$0xff] }
 0x566   : > { %v3613_v59 = vpop.f32.mrb[118].mxu0 }
 0x567   : > { %v3738_v62 = vpop.f32.mrb[130].mxu1  ;;  %v3629_v7 = vadd.f32 %v3613_v59, %v3504_v4  ;;  %v5439_v11 = vpop.f32.mrb[119].mxu0 }
 0x568   : > { %v5462_v1 = vpop.f32.mrb[131].mxu1 }
 0x569   : > { %v3754_v12 = vadd.f32 %v3738_v62, %v3629_v7 }
 0x56a   : > { %v3618_v2 = vpop.f32.mrb[120].mxu0 }
 0x56b   : > { %v3743_v15 = vpop.f32.mrb[132].mxu1  ;;  %v3630_v27 = vadd.f32 %v3618_v2, %v3505_v63  ;;  %v5442_v28 = vpop.f32.mrb[121].mxu0 }
 0x56c   : > { %v5465_v17 = vpop.f32.mrb[133].mxu1 }
 0x56d   : > { %v3755_v13 = vadd.f32 %v3743_v15, %v3630_v27 }
 0x56e   : > { %v3623_v36 = vpop.f32.mrb[122].mxu0 }
 0x56f   : > { %v3748_v42 = vpop.f32.mrb[134].mxu1  ;;  %v3631_v24 = vadd.f32 %v3623_v36, %v3506_v40  ;;  %v5445_v31 = vpop.f32.mrb[123].mxu0 }
 0x570   : > { %v5468_v30 = vpop.f32.mrb[135].mxu1 }
 0x571   : > { %v3756_v49 = vadd.f32 %v3748_v42, %v3631_v24 }
 0x572   : > { %v3853_v21 = vpop.f32.mrb[124].mxu0 }
 0x573   : > { %v3978_v35 = vpop.f32.mrb[136].mxu1  ;;  %v3877_v25 = vadd.f32 %v3853_v21, %v3752_v19  ;;  %v5479_v26 = vpop.f32.mrb[125].mxu0 }
 0x574   : > { %v5502_v39 = vpop.f32.mrb[137].mxu1 }
 0x575   : > { %v4002_v3 = vadd.f32 %v3978_v35, %v3877_v25  ;;  %v4595_v39 = vld [vmem:[%s7053_s13] ss:$0 sm:$0xff] }
 0x576   : > { %v3858_v44 = vpop.f32.mrb[126].mxu0 }
 0x577   : > { %v3983_v47 = vpop.f32.mrb[138].mxu1  ;;  %v3878_v48 = vadd.f32 %v3858_v44, %v3753_v57  ;;  %v5482_v51 = vpop.f32.mrb[127].mxu0 }
 0x578   : > { %v5505_v4 = vpop.f32.mrb[139].mxu1 }
 0x579   : > { %v4003_v41 = vadd.f32 %v3983_v47, %v3878_v48 }
 0x57a   : > { %v3863_v53 = vpop.f32.mrb[128].mxu0 }
 0x57b   : > { %v3988_v18 = vpop.f32.mrb[140].mxu1  ;;  %v3879_v58 = vadd.f32 %v3863_v53, %v3754_v12  ;;  %v5485_v60 = vpop.f32.mrb[129].mxu0 }
 0x57c   : > { %v5508_v63 = vpop.f32.mrb[141].mxu1 }
 0x57d   : > { %v4004_v14 = vadd.f32 %v3988_v18, %v3879_v58 }
 0x57e   : > { %v3868_v20 = vpop.f32.mrb[130].mxu0 }
 0x57f   : > { %v3993_v6 = vpop.f32.mrb[142].mxu1  ;;  %v3880_v38 = vadd.f32 %v3868_v20, %v3755_v13  ;;  %v5488_v32 = vpop.f32.mrb[131].mxu0 }
 0x580   : > { %v5511_v40 = vpop.f32.mrb[143].mxu1 }
 0x581   : > { %v4005_v43 = vadd.f32 %v3993_v6, %v3880_v38 }
 0x582   : > { %v3873_v9 = vpop.f32.mrb[132].mxu0 }
 0x583   : > { %v3998_v56 = vpop.f32.mrb[144].mxu1  ;;  %v3881_v10 = vadd.f32 %v3873_v9, %v3756_v49  ;;  %v5491_v61 = vpop.f32.mrb[133].mxu0 }
 0x584   : > { %v5514_v19 = vpop.f32.mrb[145].mxu1 }
 0x585   : > { %v4006_v37 = vadd.f32 %v3998_v56, %v3881_v10 }
 0x586   : > { %v4103_v52 = vpop.f32.mrb[134].mxu0 }
 0x587   : > { %v4127_v45 = vadd.f32 %v4103_v52, %v4002_v3  ;;  %v5525_v5 = vpop.f32.mrb[135].mxu0 }
 0x589   : > { %v4139_v57 = vadd.f32 %v4589_v55, %v4127_v45 }
 0x58a   : > { %v4108_v59 = vpop.f32.mrb[136].mxu0 }
 0x58b   : > { %v4144_v62 = vmax.f32 %v4139_v57, 0.0  ;;  %v4128_v7 = vadd.f32 %v4108_v59, %v4003_v41  ;;  %v5528_v11 = vpop.f32.mrb[137].mxu0 }
 0x58d   : > { %v4140_v1 = vadd.f32 %v4589_v55, %v4128_v7  ;;  %5541 = vmatmul.mubr.msk.f32.vlgmr.msra.gmra.mrb[146].mxu1 %vm2885_vm4, %v4144_v62 }
 0x58e   : > { %v4113_v12 = vpop.f32.mrb[138].mxu0  ;;  %5543 = vmatprep.mubr.msk.f32.mxu1 %vm5780_vm1, %v5778_v0 }
 0x58f   : > { %v4145_v2 = vmax.f32 %v4140_v1, 0.0  ;;  %v4129_v15 = vadd.f32 %v4113_v12, %v4004_v14  ;;  %v5531_v27 = vpop.f32.mrb[139].mxu0 }
 0x591   : > { %v4141_v28 = vadd.f32 %v4589_v55, %v4129_v15  ;;  %5544 = vmatmul.mubr.msk.f32.gmra.mrb[148].mxu1 %vm2885_vm4, %v4145_v2 }
 0x592   : > { %v4118_v17 = vpop.f32.mrb[140].mxu0  ;;  %5546 = vmatprep.mubr.msk.f32.mxu1 %vm5780_vm1, %v5778_v0 }
 0x593   : > { %v4146_v13 = vmax.f32 %v4141_v28, 0.0  ;;  %v4130_v36 = vadd.f32 %v4118_v17, %v4005_v43  ;;  %v5534_v42 = vpop.f32.mrb[141].mxu0 }
 0x595   : > { %v4142_v24 = vadd.f32 %v4589_v55, %v4130_v36  ;;  %5547 = vmatmul.mubr.msk.f32.gmra.mrb[150].mxu1 %vm2885_vm4, %v4146_v13 }
 0x596   : > { %v4123_v31 = vpop.f32.mrb[142].mxu0  ;;  %5549 = vmatprep.mubr.msk.f32.mxu1 %vm5780_vm1, %v5778_v0 }
 0x597   : > { %v4147_v30 = vmax.f32 %v4142_v24, 0.0  ;;  %v4131_v49 = vadd.f32 %v4123_v31, %v4006_v37  ;;  %v5537_v21 = vpop.f32.mrb[143].mxu0 }
 0x599   : > { %v4143_v35 = vadd.f32 %v4589_v55, %v4131_v49  ;;  %5550 = vmatmul.mubr.msk.f32.gmra.mrb[152].mxu1 %vm2885_vm4, %v4147_v30 }
 0x59a   : > { %5552 = vmatprep.mubr.msk.f32.mxu1 %vm5780_vm1, %v5778_v0 }
 0x59b   : > { %v4148_v25 = vmax.f32 %v4143_v35, 0.0 }
 0x59d   : > { %5553 = vmatmul.mubr.msk.f32.gmra.mrb[154].mxu1 %vm2885_vm4, %v4148_v25 }
 0x660   : > { %v4231_v26 = vpop.f32.mrb[146].mxu1 }
 0x661   : > { %v4255_v3 = vadd.f32 %v4231_v26, %v6696_v23  ;;  %v5542_v44 = vpop.f32.mrb[147].mxu1 }
 0x663   : > { %v4267_v47 = vadd.f32 %v4595_v39, %v4255_v3 }
 0x664   : > { %v4236_v48 = vpop.f32.mrb[148].mxu1 }
 0x665   : > { %v4272_v51 = vmul.f32 %v4267_v47, %v6033_v16  ;;  %v4256_v4 = vadd.f32 %v4236_v48, %v6702_v29  ;;  %v5545_v41 = vpop.f32.mrb[149].mxu1 }
 0x667   : > { %v4277_v0 = vmax.f32 %v4272_v51, 0.0  ;;  %v4268_v53 = vadd.f32 %v4595_v39, %v4256_v4 }
 0x668   : > { %v4241_v18 = vpop.f32.mrb[150].mxu1 }
 0x669   : > { %4282 = vst.msk [vmem:[%s467_s24] sm:$0xff] %vm473_vm0, %v4277_v0  ;;  %v4273_v23 = vmul.f32 %v4268_v53, %v6036_v22  ;;  %v4257_v58 = vadd.f32 %v4241_v18, %v6714_v33  ;;  %v5548_v60 = vpop.f32.mrb[151].mxu1 }
 0x66b   : > { %v4278_v63 = vmax.f32 %v4273_v23, 0.0  ;;  %v4269_v14 = vadd.f32 %v4595_v39, %v4257_v58 }
 0x66c   : > { %v4246_v16 = vpop.f32.mrb[152].mxu1 }
 0x66d   : > { %4283 = vst.msk [vmem:[%s467_s24 + $0x8] sm:$0xff] %vm473_vm0, %v4278_v63  ;;  %v4274_v29 = vmul.f32 %v4269_v14, %v6047_v34  ;;  %v4258_v20 = vadd.f32 %v4246_v16, %v6732_v46  ;;  %v5551_v6 = vpop.f32.mrb[153].mxu1 }
 0x66f   : > { %v4279_v38 = vmax.f32 %v4274_v29, 0.0  ;;  %v4270_v32 = vadd.f32 %v4595_v39, %v4258_v20 }
 0x670   : > { %v4251_v40 = vpop.f32.mrb[154].mxu1 }
 0x671   : > { %4284 = vst.msk [vmem:[%s467_s24 + $0x10] sm:$0xff] %vm473_vm0, %v4279_v38  ;;  %v4275_v22 = vmul.f32 %v4270_v32, %v6028_v8  ;;  %v4259_v33 = vadd.f32 %v4251_v40, %v6754_v50  ;;  %v5554_v43 = vpop.f32.mrb[155].mxu1 }
 0x673   : > { %v4280_v9 = vmax.f32 %v4275_v22, 0.0  ;;  %v4271_v56 = vadd.f32 %v4595_v39, %v4259_v33 }
 0x675   : > { %4285 = vst.msk [vmem:[%s467_s24 + $0x18] sm:$0xff] %vm473_vm0, %v4280_v9  ;;  %v4276_v10 = vmul.f32 %v4271_v56, %v6076_v54 }
 0x677   : > { %v4281_v34 = vmax.f32 %v4276_v10, 0.0 }
 0x679   : > { %4286 = vst.msk [vmem:[%s467_s24 + $0x20] sm:$0xf] %vm660_vm3, %v4281_v34 }
 0x67a PF: > { %s24_s29 = sadd.s32 1, %s5775_s29  }
 0x67b   : > { %p21_p4 = scmp.ge.s32.totalorder %s24_s29, 4  }
 0x67d   :  { %23 = sbr.rel (!%p21_p4) target bundleno = 1 (0x1), region = 130 }

</bundles_post_ra>
